<compile_context>
chip_gen: v7x
topology: tpu7x:2x2x1
jax: 0.10.0
libtpu: 0.0.40
codegen_flags: <defaults>
</compile_context>

<pallas_src>
import jax
import jax.numpy as jnp
from jax.experimental import pallas as pl
from jax.experimental.pallas import tpu as pltpu


HIDDEN = 64
IN_CH = 2
INPUT_SIZE = 400
OUT_CHANNELS = (64, 128)
OUTPUT_SIZE = 400
CNN_FLAT = 384          # 128 * 1 * 1 * 3  (hard-codes T=6, same as the PyTorch fc)


# ----------------------------------------------------------------------------
# Pallas kernel: tiled matmul + bias (conv-as-GEMM), M-grid, lane-dense N
# ----------------------------------------------------------------------------
def _matmul_bias_kernel(a_ref, w_ref, b_ref, o_ref):
    o_ref[...] = (
        jnp.dot(a_ref[...], w_ref[...], preferred_element_type=jnp.float32)
        + b_ref[...]
    )


def _pick_tm(m, cap=512):
    """Largest tile <= cap that divides M and is a multiple of 8 (else whole M)."""
    if m <= cap:
        return m
    for tm in range(cap, 0, -8):
        if m % tm == 0:
            return tm
    return m


def matmul_bias(a, w, b):
    """(M, K) @ (K, N) + b on the MXU. M is gridded ('parallel'); K, N resident."""
    M, K = a.shape
    N = w.shape[1]
    tm = _pick_tm(M)
    return pl.pallas_call(
        _matmul_bias_kernel,
        out_shape=jax.ShapeDtypeStruct((M, N), jnp.float32),
        grid=(M // tm,),
        in_specs=[
            pl.BlockSpec((tm, K), lambda i: (i, 0)),
            pl.BlockSpec((K, N), lambda i: (0, 0)),
            pl.BlockSpec((1, N), lambda i: (0, 0)),
        ],
        out_specs=pl.BlockSpec((tm, N), lambda i: (i, 0)),
        compiler_params=pltpu.CompilerParams(dimension_semantics=("parallel",)),
    )(a, w, b)


# ----------------------------------------------------------------------------
# Pallas kernel: fused 2-layer LSTM + mean-over-time + FC + sigmoid
# ----------------------------------------------------------------------------
def lstm_fc_fused(x_tb, cnn_flat, p):
    """x_tb: (T*B, Din) time-major rows; cnn_flat: (B, 384). Returns (B, OUTPUT_SIZE)."""
    TB, _ = x_tb.shape
    B = cnn_flat.shape[0]
    T = TB // B
    H = p["lstm_whh0"].shape[0]
    N = p["fc_wc"].shape[1]

    def kernel(x_ref, cnn_ref, wih0_ref, whh0_ref, b0_ref,
               wih1_ref, whh1_ref, b1_ref, wc_ref, wg_ref, bfc_ref, o_ref):
        # Hoisted layer-1 input projection: one well-shaped MXU matmul.
        proj0 = (
            jnp.dot(x_ref[...], wih0_ref[...], preferred_element_type=jnp.float32)
            + b0_ref[...]
        )                                                   # (T*B, 4H)
        whh0 = whh0_ref[...]
        wih1 = wih1_ref[...]
        whh1 = whh1_ref[...]
        b1 = b1_ref[...]

        zeros = jnp.zeros((B, H), jnp.float32)
        h1, c1, h2, c2, acc2 = zeros, zeros, zeros, zeros, zeros

        def gates(g):   # PyTorch gate order i, f, g, o
            i = jax.nn.sigmoid(g[:, 0 * H:1 * H])
            f = jax.nn.sigmoid(g[:, 1 * H:2 * H])
            gg = jnp.tanh(g[:, 2 * H:3 * H])
            o = jax.nn.sigmoid(g[:, 3 * H:4 * H])
            return i, f, gg, o

        # Static unroll: T is a compile-time constant; keeps all cross-step
        # overlap visible to the scheduler and all state in registers/VMEM.
        for t in range(T):
            g1 = proj0[t * B:(t + 1) * B, :] + jnp.dot(
                h1, whh0, preferred_element_type=jnp.float32)
            i1, f1, gg1, o1 = gates(g1)
            c1 = f1 * c1 + i1 * gg1
            h1 = o1 * jnp.tanh(c1)

            g2 = (jnp.dot(h1, wih1, preferred_element_type=jnp.float32)
                  + jnp.dot(h2, whh1, preferred_element_type=jnp.float32) + b1)
            i2, f2, gg2, o2 = gates(g2)
            c2 = f2 * c2 + i2 * gg2
            h2 = o2 * jnp.tanh(c2)
            acc2 = acc2 + h2

        gmean = acc2 * (1.0 / T)                            # mean over time, (B, H)
        # dropout(p=0.5) -> identity (eval mode); concat avoided by split fc weight.
        logits = (
            jnp.dot(cnn_ref[...], wc_ref[...], preferred_element_type=jnp.float32)
            + jnp.dot(gmean, wg_ref[...], preferred_element_type=jnp.float32)
            + bfc_ref[...]
        )
        o_ref[...] = jax.nn.sigmoid(logits)

    return pl.pallas_call(
        kernel,
        out_shape=jax.ShapeDtypeStruct((B, N), jnp.float32),
        in_specs=[pl.BlockSpec(memory_space=pltpu.MemorySpace.VMEM)] * 11,
        out_specs=pl.BlockSpec(memory_space=pltpu.MemorySpace.VMEM),
    )(x_tb, cnn_flat, p["lstm_wih0"], p["lstm_whh0"], p["lstm_b0"],
      p["lstm_wih1"], p["lstm_whh1"], p["lstm_b1"],
      p["fc_wc"], p["fc_wg"], p["fc_b"])


# ----------------------------------------------------------------------------
# JAX glue (channel-last im2col / pooling — tiny, lane-dense)
# ----------------------------------------------------------------------------
def conv3d_valid_ndhwc(x, w_flat, b):
    """Valid 3x3x3 conv, channel-last. x: (B,D,H,W,C); w_flat: (27*C, Cout); b: (1, Cout)."""
    B, D, H, W, C = x.shape
    Do, Ho, Wo = D - 2, H - 2, W - 2
    cols = []
    for dz in range(3):
        for dy in range(3):
            for dx in range(3):
                cols.append(x[:, dz:dz + Do, dy:dy + Ho, dx:dx + Wo, :])
    a = jnp.concatenate(cols, axis=-1).reshape(B * Do * Ho * Wo, 27 * C)
    out = matmul_bias(a, w_flat, b)                         # Pallas MXU kernel
    return out.reshape(B, Do, Ho, Wo, w_flat.shape[1])


def maxpool3d_ndhwc(x, k):
    """MaxPool3d, stride == kernel, floor mode, channel-last (lane-dense)."""
    B, D, H, W, C = x.shape
    kd, kh, kw = k
    Do, Ho, Wo = D // kd, H // kh, W // kw
    x = x[:, :Do * kd, :Ho * kh, :Wo * kw, :]
    x = x.reshape(B, Do, kd, Ho, kh, Wo, kw, C)
    return x.max(axis=(2, 4, 6))


# ----------------------------------------------------------------------------
# Model
# ----------------------------------------------------------------------------
def cnn_lstm_forward(x, params):
    """x: (B, T, 400) -> (B, 400), matching CNNLSTM.forward (eval mode)."""
    B, T, F = x.shape
    assert F == INPUT_SIZE

    # --- CNN branch, channel-last end to end ---
    xc = jnp.transpose(x.reshape(B, T, IN_CH, 10, 20), (0, 1, 3, 4, 2))  # (B,T,10,20,2)
    c1 = conv3d_valid_ndhwc(xc, params["conv1_w"], params["conv1_b"])    # (B,T-2,8,18,128)
    p1 = maxpool3d_ndhwc(c1, (1, 2, 2))
    c2 = conv3d_valid_ndhwc(p1, params["conv2_w"], params["conv2_b"])
    p2 = maxpool3d_ndhwc(c2, (2, 2, 2))
    cnn_flat = p2.reshape(B, -1)
    # fc in-features hard-code T=6 (same limitation as the PyTorch original).
    assert cnn_flat.shape[1] == params["fc_wc"].shape[0], (
        f"CNN feature dim {cnn_flat.shape[1]} != fc_wc rows "
        f"{params['fc_wc'].shape[0]}; fc hard-codes T=6")

    # --- fused 2-layer LSTM + mean + dropout(eval) + fc + sigmoid ---
    x_tb = jnp.transpose(x, (1, 0, 2)).reshape(T * B, F)    # time-major rows
    return lstm_fc_fused(x_tb, cnn_flat, params)


def init_params(key):
    ks = jax.random.split(key, 14)
    H = HIDDEN

    def rnd(k, shape, scale=0.05):
        return scale * jax.random.normal(k, shape, dtype=jnp.float32)

    # conv1: (27*2, 64) padded to (54, 128); pad output channels are exactly zero.
    conv1_w = jnp.pad(rnd(ks[0], (27 * IN_CH, OUT_CHANNELS[0])), ((0, 0), (0, 64)))
    conv1_b = jnp.pad(rnd(ks[1], (1, OUT_CHANNELS[0])), ((0, 0), (0, 64)))
    # conv2: (27, 64, 128) with zero rows for the 64 padded input channels -> (3456, 128).
    conv2_w = jnp.pad(rnd(ks[2], (27, OUT_CHANNELS[0], OUT_CHANNELS[1])),
                      ((0, 0), (0, 64), (0, 0))).reshape(27 * 128, OUT_CHANNELS[1])
    conv2_b = rnd(ks[3], (1, OUT_CHANNELS[1]))

    return {
        "conv1_w": conv1_w, "conv1_b": conv1_b,
        "conv2_w": conv2_w, "conv2_b": conv2_b,
        # LSTM weights pre-transposed (in, 4H); bias = b_ih + b_hh combined.
        "lstm_wih0": rnd(ks[4], (INPUT_SIZE, 4 * H)),
        "lstm_whh0": rnd(ks[5], (H, 4 * H)),
        "lstm_b0": rnd(ks[6], (1, 4 * H)),
        "lstm_wih1": rnd(ks[7], (H, 4 * H)),
        "lstm_whh1": rnd(ks[8], (H, 4 * H)),
        "lstm_b1": rnd(ks[9], (1, 4 * H)),
        # fc weight split: cnn half (rows in channel-last flatten order) and gru half.
        "fc_wc": rnd(ks[10], (CNN_FLAT, OUTPUT_SIZE)),
        "fc_wg": rnd(ks[11], (H, OUTPUT_SIZE)),
        "fc_b": jnp.zeros((1, OUTPUT_SIZE), jnp.float32),
    }


if __name__ == "__main__":
    key = jax.random.PRNGKey(0)
    kx, kp = jax.random.split(key)
    B, T = 2, 6  # T=6 -> CNN features flatten to 384, consistent with fc = Linear(384+64, 400)
    x = jax.random.normal(kx, (B, T, INPUT_SIZE), dtype=jnp.float32)
    params = init_params(kp)

    fwd = jax.jit(lambda xx: cnn_lstm_forward(xx, params))
    out = fwd(x)
    jax.block_until_ready(out)
    assert out.shape == (B, OUTPUT_SIZE)
    assert bool(jnp.all(jnp.isfinite(out)))
    assert bool(jnp.all((out >= 0.0) & (out <= 1.0)))
    print("KERNEL_OK")
</pallas_src>

<mosaic_0001>
module attributes {stable_mosaic.version = 11 : i64} {
  func.func @_matmul_bias_kernel(%arg0: i32, %arg1: memref<384x54xf32, #tpu.memory_space<vmem>>, %arg2: memref<54x128xf32, #tpu.memory_space<vmem>>, %arg3: memref<1x128xf32, #tpu.memory_space<vmem>>, %arg4: memref<384x128xf32, #tpu.memory_space<vmem>>) attributes {dimension_semantics = [#tpu.dimension_semantics<parallel>], iteration_bounds = array<i64: 3>, scalar_prefetch = 0 : i64, scratch_operands = 0 : i64, tpu.core_type = #tpu.core_type<tc>, window_params = [{transform_indices = @transform_0, window_bounds = array<i64: 384, 54>}, {pipeline_mode = #tpu.pipeline_mode<synchronous>, transform_indices = @transform_1, window_bounds = array<i64: 54, 128>}, {pipeline_mode = #tpu.pipeline_mode<synchronous>, transform_indices = @transform_2, window_bounds = array<i64: 1, 128>}, {transform_indices = @transform_3, window_bounds = array<i64: 384, 128>}]} {
    %c0 = arith.constant 0 : index
    %c0_0 = arith.constant 0 : index
    %0 = vector.load %arg1[%c0, %c0_0] : memref<384x54xf32, #tpu.memory_space<vmem>>, vector<384x54xf32>
    %c0_1 = arith.constant 0 : index
    %c0_2 = arith.constant 0 : index
    %1 = vector.load %arg2[%c0_1, %c0_2] : memref<54x128xf32, #tpu.memory_space<vmem>>, vector<54x128xf32>
    %cst = arith.constant dense<0.000000e+00> : vector<384x128xf32>
    %2 = tpu.matmul %0, %1, %cst {dimension_numbers = #tpu.dot_dimension_numbers<[1], [0], [0], [1], [0, 0, 1, 1], [], []>} : vector<384x54xf32>, vector<54x128xf32>, vector<384x128xf32> -> vector<384x128xf32>
    %c0_3 = arith.constant 0 : index
    %c0_4 = arith.constant 0 : index
    %3 = vector.load %arg3[%c0_3, %c0_4] : memref<1x128xf32, #tpu.memory_space<vmem>>, vector<1x128xf32>
    %4 = vector.broadcast %3 : vector<1x128xf32> to vector<384x128xf32>
    %5 = arith.addf %2, %4 : vector<384x128xf32>
    %c0_5 = arith.constant 0 : index
    %c0_6 = arith.constant 0 : index
    %6 = vector.load %arg4[%c0_5, %c0_6] : memref<384x128xf32, #tpu.memory_space<vmem>>, vector<384x128xf32>
    tpu.vector_store %arg4[%c0_5, %c0_6], %5 {strides = array<i32>} : memref<384x128xf32, #tpu.memory_space<vmem>>, vector<384x128xf32>,
    return
  }
  func.func @transform_0(%arg0: i32) -> (i32, i32) {
    %c0_i32 = arith.constant 0 : i32
    %c0_i32_0 = arith.constant 0 : i32
    return %arg0, %c0_i32 : i32, i32
  }
  func.func @transform_1(%arg0: i32) -> (i32, i32) {
    %c0_i32 = arith.constant 0 : i32
    %c0_i32_0 = arith.constant 0 : i32
    %c0_i32_1 = arith.constant 0 : i32
    return %c0_i32, %c0_i32_0 : i32, i32
  }
  func.func @transform_2(%arg0: i32) -> (i32, i32) {
    %c0_i32 = arith.constant 0 : i32
    %c0_i32_0 = arith.constant 0 : i32
    %c0_i32_1 = arith.constant 0 : i32
    return %c0_i32, %c0_i32_0 : i32, i32
  }
  func.func @transform_3(%arg0: i32) -> (i32, i32) {
    %c0_i32 = arith.constant 0 : i32
    %c0_i32_0 = arith.constant 0 : i32
    return %arg0, %c0_i32 : i32, i32
  }
}

module attributes {stable_mosaic.version = 11 : i64} {
  func.func @_matmul_bias_kernel(%arg0: i32, %arg1: memref<56x3456xf32, #tpu.memory_space<vmem>>, %arg2: memref<3456x128xf32, #tpu.memory_space<vmem>>, %arg3: memref<1x128xf32, #tpu.memory_space<vmem>>, %arg4: memref<56x128xf32, #tpu.memory_space<vmem>>) attributes {dimension_semantics = [#tpu.dimension_semantics<parallel>], iteration_bounds = array<i64: 1>, scalar_prefetch = 0 : i64, scratch_operands = 0 : i64, tpu.core_type = #tpu.core_type<tc>, window_params = [{transform_indices = @transform_0, window_bounds = array<i64: 56, 3456>}, {pipeline_mode = #tpu.pipeline_mode<synchronous>, transform_indices = @transform_1, window_bounds = array<i64: 3456, 128>}, {pipeline_mode = #tpu.pipeline_mode<synchronous>, transform_indices = @transform_2, window_bounds = array<i64: 1, 128>}, {transform_indices = @transform_3, window_bounds = array<i64: 56, 128>}]} {
    %c0 = arith.constant 0 : index
    %c0_0 = arith.constant 0 : index
    %0 = vector.load %arg1[%c0, %c0_0] : memref<56x3456xf32, #tpu.memory_space<vmem>>, vector<56x3456xf32>
    %c0_1 = arith.constant 0 : index
    %c0_2 = arith.constant 0 : index
    %1 = vector.load %arg2[%c0_1, %c0_2] : memref<3456x128xf32, #tpu.memory_space<vmem>>, vector<3456x128xf32>
    %cst = arith.constant dense<0.000000e+00> : vector<56x128xf32>
    %2 = tpu.matmul %0, %1, %cst {dimension_numbers = #tpu.dot_dimension_numbers<[1], [0], [0], [1], [0, 0, 1, 1], [], []>} : vector<56x3456xf32>, vector<3456x128xf32>, vector<56x128xf32> -> vector<56x128xf32>
    %c0_3 = arith.constant 0 : index
    %c0_4 = arith.constant 0 : index
    %3 = vector.load %arg3[%c0_3, %c0_4] : memref<1x128xf32, #tpu.memory_space<vmem>>, vector<1x128xf32>
    %4 = vector.broadcast %3 : vector<1x128xf32> to vector<56x128xf32>
    %5 = arith.addf %2, %4 : vector<56x128xf32>
    %c0_5 = arith.constant 0 : index
    %c0_6 = arith.constant 0 : index
    %6 = vector.load %arg4[%c0_5, %c0_6] : memref<56x128xf32, #tpu.memory_space<vmem>>, vector<56x128xf32>
    tpu.vector_store %arg4[%c0_5, %c0_6], %5 {strides = array<i32>} : memref<56x128xf32, #tpu.memory_space<vmem>>, vector<56x128xf32>,
    return
  }
  func.func @transform_0(%arg0: i32) -> (i32, i32) {
    %c0_i32 = arith.constant 0 : i32
    %c0_i32_0 = arith.constant 0 : i32
    return %arg0, %c0_i32 : i32, i32
  }
  func.func @transform_1(%arg0: i32) -> (i32, i32) {
    %c0_i32 = arith.constant 0 : i32
    %c0_i32_0 = arith.constant 0 : i32
    %c0_i32_1 = arith.constant 0 : i32
    return %c0_i32, %c0_i32_0 : i32, i32
  }
  func.func @transform_2(%arg0: i32) -> (i32, i32) {
    %c0_i32 = arith.constant 0 : i32
    %c0_i32_0 = arith.constant 0 : i32
    %c0_i32_1 = arith.constant 0 : i32
    return %c0_i32, %c0_i32_0 : i32, i32
  }
  func.func @transform_3(%arg0: i32) -> (i32, i32) {
    %c0_i32 = arith.constant 0 : i32
    %c0_i32_0 = arith.constant 0 : i32
    return %arg0, %c0_i32 : i32, i32
  }
}

module attributes {stable_mosaic.version = 11 : i64} {
  func.func @kernel(%arg0: memref<12x400xf32, #tpu.memory_space<vmem>>, %arg1: memref<2x384xf32, #tpu.memory_space<vmem>>, %arg2: memref<400x256xf32, #tpu.memory_space<vmem>>, %arg3: memref<64x256xf32, #tpu.memory_space<vmem>>, %arg4: memref<1x256xf32, #tpu.memory_space<vmem>>, %arg5: memref<64x256xf32, #tpu.memory_space<vmem>>, %arg6: memref<64x256xf32, #tpu.memory_space<vmem>>, %arg7: memref<1x256xf32, #tpu.memory_space<vmem>>, %arg8: memref<384x400xf32, #tpu.memory_space<vmem>>, %arg9: memref<64x400xf32, #tpu.memory_space<vmem>>, %arg10: memref<1x400xf32, #tpu.memory_space<vmem>>, %arg11: memref<2x400xf32, #tpu.memory_space<vmem>>) attributes {dimension_semantics = [], scalar_prefetch = 0 : i64, scratch_operands = 0 : i64, tpu.core_type = #tpu.core_type<tc>} {
    %c0 = arith.constant 0 : index
    %c0_0 = arith.constant 0 : index
    %0 = vector.load %arg0[%c0, %c0_0] : memref<12x400xf32, #tpu.memory_space<vmem>>, vector<12x400xf32>
    %c0_1 = arith.constant 0 : index
    %c0_2 = arith.constant 0 : index
    %1 = vector.load %arg2[%c0_1, %c0_2] : memref<400x256xf32, #tpu.memory_space<vmem>>, vector<400x256xf32>
    %cst = arith.constant dense<0.000000e+00> : vector<12x256xf32>
    %2 = tpu.matmul %0, %1, %cst {dimension_numbers = #tpu.dot_dimension_numbers<[1], [0], [0], [1], [0, 0, 1, 1], [], []>} : vector<12x400xf32>, vector<400x256xf32>, vector<12x256xf32> -> vector<12x256xf32>
    %c0_3 = arith.constant 0 : index
    %c0_4 = arith.constant 0 : index
    %3 = vector.load %arg4[%c0_3, %c0_4] : memref<1x256xf32, #tpu.memory_space<vmem>>, vector<1x256xf32>
    %4 = vector.broadcast %3 : vector<1x256xf32> to vector<12x256xf32>
    %5 = arith.addf %2, %4 : vector<12x256xf32>
    %c0_5 = arith.constant 0 : index
    %c0_6 = arith.constant 0 : index
    %6 = vector.load %arg3[%c0_5, %c0_6] : memref<64x256xf32, #tpu.memory_space<vmem>>, vector<64x256xf32>
    %c0_7 = arith.constant 0 : index
    %c0_8 = arith.constant 0 : index
    %7 = vector.load %arg5[%c0_7, %c0_8] : memref<64x256xf32, #tpu.memory_space<vmem>>, vector<64x256xf32>
    %c0_9 = arith.constant 0 : index
    %c0_10 = arith.constant 0 : index
    %8 = vector.load %arg6[%c0_9, %c0_10] : memref<64x256xf32, #tpu.memory_space<vmem>>, vector<64x256xf32>
    %c0_11 = arith.constant 0 : index
    %c0_12 = arith.constant 0 : index
    %9 = vector.load %arg7[%c0_11, %c0_12] : memref<1x256xf32, #tpu.memory_space<vmem>>, vector<1x256xf32>
    %cst_13 = arith.constant 0.000000e+00 : f32
    %10 = vector.broadcast %cst_13 : f32 to vector<2x64xf32>
    %11 = vector.extract_strided_slice %5 {offsets = [0, 0], sizes = [2, 256], strides = [1, 1]} : vector<12x256xf32> to vector<2x256xf32>
    %cst_14 = arith.constant dense<0.000000e+00> : vector<2x256xf32>
    %12 = tpu.matmul %10, %6, %cst_14 {dimension_numbers = #tpu.dot_dimension_numbers<[1], [0], [0], [1], [0, 0, 1, 1], [], []>} : vector<2x64xf32>, vector<64x256xf32>, vector<2x256xf32> -> vector<2x256xf32>
    %13 = arith.addf %11, %12 : vector<2x256xf32>
    %14 = vector.extract_strided_slice %13 {offsets = [0, 0], sizes = [2, 64], strides = [1, 1]} : vector<2x256xf32> to vector<2x64xf32>
    %15 = arith.negf %14 : vector<2x64xf32>
    %16 = math.exp %15 : vector<2x64xf32>
    %cst_15 = arith.constant 1.000000e+00 : f32
    %17 = vector.broadcast %cst_15 : f32 to vector<2x64xf32>
    %18 = arith.addf %17, %16 : vector<2x64xf32>
    %19 = arith.divf %17, %18 : vector<2x64xf32>
    %20 = vector.extract_strided_slice %13 {offsets = [0, 64], sizes = [2, 64], strides = [1, 1]} : vector<2x256xf32> to vector<2x64xf32>
    %21 = arith.negf %20 : vector<2x64xf32>
    %22 = math.exp %21 : vector<2x64xf32>
    %cst_16 = arith.constant 1.000000e+00 : f32
    %23 = vector.broadcast %cst_16 : f32 to vector<2x64xf32>
    %24 = arith.addf %23, %22 : vector<2x64xf32>
    %25 = arith.divf %23, %24 : vector<2x64xf32>
    %26 = vector.extract_strided_slice %13 {offsets = [0, 128], sizes = [2, 64], strides = [1, 1]} : vector<2x256xf32> to vector<2x64xf32>
    %27 = math.tanh %26 : vector<2x64xf32>
    %28 = vector.extract_strided_slice %13 {offsets = [0, 192], sizes = [2, 64], strides = [1, 1]} : vector<2x256xf32> to vector<2x64xf32>
    %29 = arith.negf %28 : vector<2x64xf32>
    %30 = math.exp %29 : vector<2x64xf32>
    %cst_17 = arith.constant 1.000000e+00 : f32
    %31 = vector.broadcast %cst_17 : f32 to vector<2x64xf32>
    %32 = arith.addf %31, %30 : vector<2x64xf32>
    %33 = arith.divf %31, %32 : vector<2x64xf32>
    %34 = arith.mulf %25, %10 : vector<2x64xf32>
    %35 = arith.mulf %19, %27 : vector<2x64xf32>
    %36 = arith.addf %34, %35 : vector<2x64xf32>
    %37 = math.tanh %36 : vector<2x64xf32>
    %38 = arith.mulf %33, %37 : vector<2x64xf32>
    %cst_18 = arith.constant dense<0.000000e+00> : vector<2x256xf32>
    %39 = tpu.matmul %38, %7, %cst_18 {dimension_numbers = #tpu.dot_dimension_numbers<[1], [0], [0], [1], [0, 0, 1, 1], [], []>} : vector<2x64xf32>, vector<64x256xf32>, vector<2x256xf32> -> vector<2x256xf32>
    %cst_19 = arith.constant dense<0.000000e+00> : vector<2x256xf32>
    %40 = tpu.matmul %10, %8, %cst_19 {dimension_numbers = #tpu.dot_dimension_numbers<[1], [0], [0], [1], [0, 0, 1, 1], [], []>} : vector<2x64xf32>, vector<64x256xf32>, vector<2x256xf32> -> vector<2x256xf32>
    %41 = arith.addf %39, %40 : vector<2x256xf32>
    %42 = vector.broadcast %9 : vector<1x256xf32> to vector<2x256xf32>
    %43 = arith.addf %41, %42 : vector<2x256xf32>
    %44 = vector.extract_strided_slice %43 {offsets = [0, 0], sizes = [2, 64], strides = [1, 1]} : vector<2x256xf32> to vector<2x64xf32>
    %45 = arith.negf %44 : vector<2x64xf32>
    %46 = math.exp %45 : vector<2x64xf32>
    %cst_20 = arith.constant 1.000000e+00 : f32
    %47 = vector.broadcast %cst_20 : f32 to vector<2x64xf32>
    %48 = arith.addf %47, %46 : vector<2x64xf32>
    %49 = arith.divf %47, %48 : vector<2x64xf32>
    %50 = vector.extract_strided_slice %43 {offsets = [0, 64], sizes = [2, 64], strides = [1, 1]} : vector<2x256xf32> to vector<2x64xf32>
    %51 = arith.negf %50 : vector<2x64xf32>
    %52 = math.exp %51 : vector<2x64xf32>
    %cst_21 = arith.constant 1.000000e+00 : f32
    %53 = vector.broadcast %cst_21 : f32 to vector<2x64xf32>
    %54 = arith.addf %53, %52 : vector<2x64xf32>
    %55 = arith.divf %53, %54 : vector<2x64xf32>
    %56 = vector.extract_strided_slice %43 {offsets = [0, 128], sizes = [2, 64], strides = [1, 1]} : vector<2x256xf32> to vector<2x64xf32>
    %57 = math.tanh %56 : vector<2x64xf32>
    %58 = vector.extract_strided_slice %43 {offsets = [0, 192], sizes = [2, 64], strides = [1, 1]} : vector<2x256xf32> to vector<2x64xf32>
    %59 = arith.negf %58 : vector<2x64xf32>
    %60 = math.exp %59 : vector<2x64xf32>
    %cst_22 = arith.constant 1.000000e+00 : f32
    %61 = vector.broadcast %cst_22 : f32 to vector<2x64xf32>
    %62 = arith.addf %61, %60 : vector<2x64xf32>
    %63 = arith.divf %61, %62 : vector<2x64xf32>
    %64 = arith.mulf %55, %10 : vector<2x64xf32>
    %65 = arith.mulf %49, %57 : vector<2x64xf32>
    %66 = arith.addf %64, %65 : vector<2x64xf32>
    %67 = math.tanh %66 : vector<2x64xf32>
    %68 = arith.mulf %63, %67 : vector<2x64xf32>
    %69 = arith.addf %10, %68 : vector<2x64xf32>
    %70 = vector.extract_strided_slice %5 {offsets = [2, 0], sizes = [2, 256], strides = [1, 1]} : vector<12x256xf32> to vector<2x256xf32>
    %cst_23 = arith.constant dense<0.000000e+00> : vector<2x256xf32>
    %71 = tpu.matmul %38, %6, %cst_23 {dimension_numbers = #tpu.dot_dimension_numbers<[1], [0], [0], [1], [0, 0, 1, 1], [], []>} : vector<2x64xf32>, vector<64x256xf32>, vector<2x256xf32> -> vector<2x256xf32>
    %72 = arith.addf %70, %71 : vector<2x256xf32>
    %73 = vector.extract_strided_slice %72 {offsets = [0, 0], sizes = [2, 64], strides = [1, 1]} : vector<2x256xf32> to vector<2x64xf32>
    %74 = arith.negf %73 : vector<2x64xf32>
    %75 = math.exp %74 : vector<2x64xf32>
    %cst_24 = arith.constant 1.000000e+00 : f32
    %76 = vector.broadcast %cst_24 : f32 to vector<2x64xf32>
    %77 = arith.addf %76, %75 : vector<2x64xf32>
    %78 = arith.divf %76, %77 : vector<2x64xf32>
    %79 = vector.extract_strided_slice %72 {offsets = [0, 64], sizes = [2, 64], strides = [1, 1]} : vector<2x256xf32> to vector<2x64xf32>
    %80 = arith.negf %79 : vector<2x64xf32>
    %81 = math.exp %80 : vector<2x64xf32>
    %cst_25 = arith.constant 1.000000e+00 : f32
    %82 = vector.broadcast %cst_25 : f32 to vector<2x64xf32>
    %83 = arith.addf %82, %81 : vector<2x64xf32>
    %84 = arith.divf %82, %83 : vector<2x64xf32>
    %85 = vector.extract_strided_slice %72 {offsets = [0, 128], sizes = [2, 64], strides = [1, 1]} : vector<2x256xf32> to vector<2x64xf32>
    %86 = math.tanh %85 : vector<2x64xf32>
    %87 = vector.extract_strided_slice %72 {offsets = [0, 192], sizes = [2, 64], strides = [1, 1]} : vector<2x256xf32> to vector<2x64xf32>
    %88 = arith.negf %87 : vector<2x64xf32>
    %89 = math.exp %88 : vector<2x64xf32>
    %cst_26 = arith.constant 1.000000e+00 : f32
    %90 = vector.broadcast %cst_26 : f32 to vector<2x64xf32>
    %91 = arith.addf %90, %89 : vector<2x64xf32>
    %92 = arith.divf %90, %91 : vector<2x64xf32>
    %93 = arith.mulf %84, %36 : vector<2x64xf32>
    %94 = arith.mulf %78, %86 : vector<2x64xf32>
    %95 = arith.addf %93, %94 : vector<2x64xf32>
    %96 = math.tanh %95 : vector<2x64xf32>
    %97 = arith.mulf %92, %96 : vector<2x64xf32>
    %cst_27 = arith.constant dense<0.000000e+00> : vector<2x256xf32>
    %98 = tpu.matmul %97, %7, %cst_27 {dimension_numbers = #tpu.dot_dimension_numbers<[1], [0], [0], [1], [0, 0, 1, 1], [], []>} : vector<2x64xf32>, vector<64x256xf32>, vector<2x256xf32> -> vector<2x256xf32>
    %cst_28 = arith.constant dense<0.000000e+00> : vector<2x256xf32>
    %99 = tpu.matmul %68, %8, %cst_28 {dimension_numbers = #tpu.dot_dimension_numbers<[1], [0], [0], [1], [0, 0, 1, 1], [], []>} : vector<2x64xf32>, vector<64x256xf32>, vector<2x256xf32> -> vector<2x256xf32>
    %100 = arith.addf %98, %99 : vector<2x256xf32>
    %101 = vector.broadcast %9 : vector<1x256xf32> to vector<2x256xf32>
    %102 = arith.addf %100, %101 : vector<2x256xf32>
    %103 = vector.extract_strided_slice %102 {offsets = [0, 0], sizes = [2, 64], strides = [1, 1]} : vector<2x256xf32> to vector<2x64xf32>
    %104 = arith.negf %103 : vector<2x64xf32>
    %105 = math.exp %104 : vector<2x64xf32>
    %cst_29 = arith.constant 1.000000e+00 : f32
    %106 = vector.broadcast %cst_29 : f32 to vector<2x64xf32>
    %107 = arith.addf %106, %105 : vector<2x64xf32>
    %108 = arith.divf %106, %107 : vector<2x64xf32>
    %109 = vector.extract_strided_slice %102 {offsets = [0, 64], sizes = [2, 64], strides = [1, 1]} : vector<2x256xf32> to vector<2x64xf32>
    %110 = arith.negf %109 : vector<2x64xf32>
    %111 = math.exp %110 : vector<2x64xf32>
    %cst_30 = arith.constant 1.000000e+00 : f32
    %112 = vector.broadcast %cst_30 : f32 to vector<2x64xf32>
    %113 = arith.addf %112, %111 : vector<2x64xf32>
    %114 = arith.divf %112, %113 : vector<2x64xf32>
    %115 = vector.extract_strided_slice %102 {offsets = [0, 128], sizes = [2, 64], strides = [1, 1]} : vector<2x256xf32> to vector<2x64xf32>
    %116 = math.tanh %115 : vector<2x64xf32>
    %117 = vector.extract_strided_slice %102 {offsets = [0, 192], sizes = [2, 64], strides = [1, 1]} : vector<2x256xf32> to vector<2x64xf32>
    %118 = arith.negf %117 : vector<2x64xf32>
    %119 = math.exp %118 : vector<2x64xf32>
    %cst_31 = arith.constant 1.000000e+00 : f32
    %120 = vector.broadcast %cst_31 : f32 to vector<2x64xf32>
    %121 = arith.addf %120, %119 : vector<2x64xf32>
    %122 = arith.divf %120, %121 : vector<2x64xf32>
    %123 = arith.mulf %114, %66 : vector<2x64xf32>
    %124 = arith.mulf %108, %116 : vector<2x64xf32>
    %125 = arith.addf %123, %124 : vector<2x64xf32>
    %126 = math.tanh %125 : vector<2x64xf32>
    %127 = arith.mulf %122, %126 : vector<2x64xf32>
    %128 = arith.addf %69, %127 : vector<2x64xf32>
    %129 = vector.extract_strided_slice %5 {offsets = [4, 0], sizes = [2, 256], strides = [1, 1]} : vector<12x256xf32> to vector<2x256xf32>
    %cst_32 = arith.constant dense<0.000000e+00> : vector<2x256xf32>
    %130 = tpu.matmul %97, %6, %cst_32 {dimension_numbers = #tpu.dot_dimension_numbers<[1], [0], [0], [1], [0, 0, 1, 1], [], []>} : vector<2x64xf32>, vector<64x256xf32>, vector<2x256xf32> -> vector<2x256xf32>
    %131 = arith.addf %129, %130 : vector<2x256xf32>
    %132 = vector.extract_strided_slice %131 {offsets = [0, 0], sizes = [2, 64], strides = [1, 1]} : vector<2x256xf32> to vector<2x64xf32>
    %133 = arith.negf %132 : vector<2x64xf32>
    %134 = math.exp %133 : vector<2x64xf32>
    %cst_33 = arith.constant 1.000000e+00 : f32
    %135 = vector.broadcast %cst_33 : f32 to vector<2x64xf32>
    %136 = arith.addf %135, %134 : vector<2x64xf32>
    %137 = arith.divf %135, %136 : vector<2x64xf32>
    %138 = vector.extract_strided_slice %131 {offsets = [0, 64], sizes = [2, 64], strides = [1, 1]} : vector<2x256xf32> to vector<2x64xf32>
    %139 = arith.negf %138 : vector<2x64xf32>
    %140 = math.exp %139 : vector<2x64xf32>
    %cst_34 = arith.constant 1.000000e+00 : f32
    %141 = vector.broadcast %cst_34 : f32 to vector<2x64xf32>
    %142 = arith.addf %141, %140 : vector<2x64xf32>
    %143 = arith.divf %141, %142 : vector<2x64xf32>
    %144 = vector.extract_strided_slice %131 {offsets = [0, 128], sizes = [2, 64], strides = [1, 1]} : vector<2x256xf32> to vector<2x64xf32>
    %145 = math.tanh %144 : vector<2x64xf32>
    %146 = vector.extract_strided_slice %131 {offsets = [0, 192], sizes = [2, 64], strides = [1, 1]} : vector<2x256xf32> to vector<2x64xf32>
    %147 = arith.negf %146 : vector<2x64xf32>
    %148 = math.exp %147 : vector<2x64xf32>
    %cst_35 = arith.constant 1.000000e+00 : f32
    %149 = vector.broadcast %cst_35 : f32 to vector<2x64xf32>
    %150 = arith.addf %149, %148 : vector<2x64xf32>
    %151 = arith.divf %149, %150 : vector<2x64xf32>
    %152 = arith.mulf %143, %95 : vector<2x64xf32>
    %153 = arith.mulf %137, %145 : vector<2x64xf32>
    %154 = arith.addf %152, %153 : vector<2x64xf32>
    %155 = math.tanh %154 : vector<2x64xf32>
    %156 = arith.mulf %151, %155 : vector<2x64xf32>
    %cst_36 = arith.constant dense<0.000000e+00> : vector<2x256xf32>
    %157 = tpu.matmul %156, %7, %cst_36 {dimension_numbers = #tpu.dot_dimension_numbers<[1], [0], [0], [1], [0, 0, 1, 1], [], []>} : vector<2x64xf32>, vector<64x256xf32>, vector<2x256xf32> -> vector<2x256xf32>
    %cst_37 = arith.constant dense<0.000000e+00> : vector<2x256xf32>
    %158 = tpu.matmul %127, %8, %cst_37 {dimension_numbers = #tpu.dot_dimension_numbers<[1], [0], [0], [1], [0, 0, 1, 1], [], []>} : vector<2x64xf32>, vector<64x256xf32>, vector<2x256xf32> -> vector<2x256xf32>
    %159 = arith.addf %157, %158 : vector<2x256xf32>
    %160 = vector.broadcast %9 : vector<1x256xf32> to vector<2x256xf32>
    %161 = arith.addf %159, %160 : vector<2x256xf32>
    %162 = vector.extract_strided_slice %161 {offsets = [0, 0], sizes = [2, 64], strides = [1, 1]} : vector<2x256xf32> to vector<2x64xf32>
    %163 = arith.negf %162 : vector<2x64xf32>
    %164 = math.exp %163 : vector<2x64xf32>
    %cst_38 = arith.constant 1.000000e+00 : f32
    %165 = vector.broadcast %cst_38 : f32 to vector<2x64xf32>
    %166 = arith.addf %165, %164 : vector<2x64xf32>
    %167 = arith.divf %165, %166 : vector<2x64xf32>
    %168 = vector.extract_strided_slice %161 {offsets = [0, 64], sizes = [2, 64], strides = [1, 1]} : vector<2x256xf32> to vector<2x64xf32>
    %169 = arith.negf %168 : vector<2x64xf32>
    %170 = math.exp %169 : vector<2x64xf32>
    %cst_39 = arith.constant 1.000000e+00 : f32
    %171 = vector.broadcast %cst_39 : f32 to vector<2x64xf32>
    %172 = arith.addf %171, %170 : vector<2x64xf32>
    %173 = arith.divf %171, %172 : vector<2x64xf32>
    %174 = vector.extract_strided_slice %161 {offsets = [0, 128], sizes = [2, 64], strides = [1, 1]} : vector<2x256xf32> to vector<2x64xf32>
    %175 = math.tanh %174 : vector<2x64xf32>
    %176 = vector.extract_strided_slice %161 {offsets = [0, 192], sizes = [2, 64], strides = [1, 1]} : vector<2x256xf32> to vector<2x64xf32>
    %177 = arith.negf %176 : vector<2x64xf32>
    %178 = math.exp %177 : vector<2x64xf32>
    %cst_40 = arith.constant 1.000000e+00 : f32
    %179 = vector.broadcast %cst_40 : f32 to vector<2x64xf32>
    %180 = arith.addf %179, %178 : vector<2x64xf32>
    %181 = arith.divf %179, %180 : vector<2x64xf32>
    %182 = arith.mulf %173, %125 : vector<2x64xf32>
    %183 = arith.mulf %167, %175 : vector<2x64xf32>
    %184 = arith.addf %182, %183 : vector<2x64xf32>
    %185 = math.tanh %184 : vector<2x64xf32>
    %186 = arith.mulf %181, %185 : vector<2x64xf32>
    %187 = arith.addf %128, %186 : vector<2x64xf32>
    %188 = vector.extract_strided_slice %5 {offsets = [6, 0], sizes = [2, 256], strides = [1, 1]} : vector<12x256xf32> to vector<2x256xf32>
    %cst_41 = arith.constant dense<0.000000e+00> : vector<2x256xf32>
    %189 = tpu.matmul %156, %6, %cst_41 {dimension_numbers = #tpu.dot_dimension_numbers<[1], [0], [0], [1], [0, 0, 1, 1], [], []>} : vector<2x64xf32>, vector<64x256xf32>, vector<2x256xf32> -> vector<2x256xf32>
    %190 = arith.addf %188, %189 : vector<2x256xf32>
    %191 = vector.extract_strided_slice %190 {offsets = [0, 0], sizes = [2, 64], strides = [1, 1]} : vector<2x256xf32> to vector<2x64xf32>
    %192 = arith.negf %191 : vector<2x64xf32>
    %193 = math.exp %192 : vector<2x64xf32>
    %cst_42 = arith.constant 1.000000e+00 : f32
    %194 = vector.broadcast %cst_42 : f32 to vector<2x64xf32>
    %195 = arith.addf %194, %193 : vector<2x64xf32>
    %196 = arith.divf %194, %195 : vector<2x64xf32>
    %197 = vector.extract_strided_slice %190 {offsets = [0, 64], sizes = [2, 64], strides = [1, 1]} : vector<2x256xf32> to vector<2x64xf32>
    %198 = arith.negf %197 : vector<2x64xf32>
    %199 = math.exp %198 : vector<2x64xf32>
    %cst_43 = arith.constant 1.000000e+00 : f32
    %200 = vector.broadcast %cst_43 : f32 to vector<2x64xf32>
    %201 = arith.addf %200, %199 : vector<2x64xf32>
    %202 = arith.divf %200, %201 : vector<2x64xf32>
    %203 = vector.extract_strided_slice %190 {offsets = [0, 128], sizes = [2, 64], strides = [1, 1]} : vector<2x256xf32> to vector<2x64xf32>
    %204 = math.tanh %203 : vector<2x64xf32>
    %205 = vector.extract_strided_slice %190 {offsets = [0, 192], sizes = [2, 64], strides = [1, 1]} : vector<2x256xf32> to vector<2x64xf32>
    %206 = arith.negf %205 : vector<2x64xf32>
    %207 = math.exp %206 : vector<2x64xf32>
    %cst_44 = arith.constant 1.000000e+00 : f32
    %208 = vector.broadcast %cst_44 : f32 to vector<2x64xf32>
    %209 = arith.addf %208, %207 : vector<2x64xf32>
    %210 = arith.divf %208, %209 : vector<2x64xf32>
    %211 = arith.mulf %202, %154 : vector<2x64xf32>
    %212 = arith.mulf %196, %204 : vector<2x64xf32>
    %213 = arith.addf %211, %212 : vector<2x64xf32>
    %214 = math.tanh %213 : vector<2x64xf32>
    %215 = arith.mulf %210, %214 : vector<2x64xf32>
    %cst_45 = arith.constant dense<0.000000e+00> : vector<2x256xf32>
    %216 = tpu.matmul %215, %7, %cst_45 {dimension_numbers = #tpu.dot_dimension_numbers<[1], [0], [0], [1], [0, 0, 1, 1], [], []>} : vector<2x64xf32>, vector<64x256xf32>, vector<2x256xf32> -> vector<2x256xf32>
    %cst_46 = arith.constant dense<0.000000e+00> : vector<2x256xf32>
    %217 = tpu.matmul %186, %8, %cst_46 {dimension_numbers = #tpu.dot_dimension_numbers<[1], [0], [0], [1], [0, 0, 1, 1], [], []>} : vector<2x64xf32>, vector<64x256xf32>, vector<2x256xf32> -> vector<2x256xf32>
    %218 = arith.addf %216, %217 : vector<2x256xf32>
    %219 = vector.broadcast %9 : vector<1x256xf32> to vector<2x256xf32>
    %220 = arith.addf %218, %219 : vector<2x256xf32>
    %221 = vector.extract_strided_slice %220 {offsets = [0, 0], sizes = [2, 64], strides = [1, 1]} : vector<2x256xf32> to vector<2x64xf32>
    %222 = arith.negf %221 : vector<2x64xf32>
    %223 = math.exp %222 : vector<2x64xf32>
    %cst_47 = arith.constant 1.000000e+00 : f32
    %224 = vector.broadcast %cst_47 : f32 to vector<2x64xf32>
    %225 = arith.addf %224, %223 : vector<2x64xf32>
    %226 = arith.divf %224, %225 : vector<2x64xf32>
    %227 = vector.extract_strided_slice %220 {offsets = [0, 64], sizes = [2, 64], strides = [1, 1]} : vector<2x256xf32> to vector<2x64xf32>
    %228 = arith.negf %227 : vector<2x64xf32>
    %229 = math.exp %228 : vector<2x64xf32>
    %cst_48 = arith.constant 1.000000e+00 : f32
    %230 = vector.broadcast %cst_48 : f32 to vector<2x64xf32>
    %231 = arith.addf %230, %229 : vector<2x64xf32>
    %232 = arith.divf %230, %231 : vector<2x64xf32>
    %233 = vector.extract_strided_slice %220 {offsets = [0, 128], sizes = [2, 64], strides = [1, 1]} : vector<2x256xf32> to vector<2x64xf32>
    %234 = math.tanh %233 : vector<2x64xf32>
    %235 = vector.extract_strided_slice %220 {offsets = [0, 192], sizes = [2, 64], strides = [1, 1]} : vector<2x256xf32> to vector<2x64xf32>
    %236 = arith.negf %235 : vector<2x64xf32>
    %237 = math.exp %236 : vector<2x64xf32>
    %cst_49 = arith.constant 1.000000e+00 : f32
    %238 = vector.broadcast %cst_49 : f32 to vector<2x64xf32>
    %239 = arith.addf %238, %237 : vector<2x64xf32>
    %240 = arith.divf %238, %239 : vector<2x64xf32>
    %241 = arith.mulf %232, %184 : vector<2x64xf32>
    %242 = arith.mulf %226, %234 : vector<2x64xf32>
    %243 = arith.addf %241, %242 : vector<2x64xf32>
    %244 = math.tanh %243 : vector<2x64xf32>
    %245 = arith.mulf %240, %244 : vector<2x64xf32>
    %246 = arith.addf %187, %245 : vector<2x64xf32>
    %247 = vector.extract_strided_slice %5 {offsets = [8, 0], sizes = [2, 256], strides = [1, 1]} : vector<12x256xf32> to vector<2x256xf32>
    %cst_50 = arith.constant dense<0.000000e+00> : vector<2x256xf32>
    %248 = tpu.matmul %215, %6, %cst_50 {dimension_numbers = #tpu.dot_dimension_numbers<[1], [0], [0], [1], [0, 0, 1, 1], [], []>} : vector<2x64xf32>, vector<64x256xf32>, vector<2x256xf32> -> vector<2x256xf32>
    %249 = arith.addf %247, %248 : vector<2x256xf32>
    %250 = vector.extract_strided_slice %249 {offsets = [0, 0], sizes = [2, 64], strides = [1, 1]} : vector<2x256xf32> to vector<2x64xf32>
    %251 = arith.negf %250 : vector<2x64xf32>
    %252 = math.exp %251 : vector<2x64xf32>
    %cst_51 = arith.constant 1.000000e+00 : f32
    %253 = vector.broadcast %cst_51 : f32 to vector<2x64xf32>
    %254 = arith.addf %253, %252 : vector<2x64xf32>
    %255 = arith.divf %253, %254 : vector<2x64xf32>
    %256 = vector.extract_strided_slice %249 {offsets = [0, 64], sizes = [2, 64], strides = [1, 1]} : vector<2x256xf32> to vector<2x64xf32>
    %257 = arith.negf %256 : vector<2x64xf32>
    %258 = math.exp %257 : vector<2x64xf32>
    %cst_52 = arith.constant 1.000000e+00 : f32
    %259 = vector.broadcast %cst_52 : f32 to vector<2x64xf32>
    %260 = arith.addf %259, %258 : vector<2x64xf32>
    %261 = arith.divf %259, %260 : vector<2x64xf32>
    %262 = vector.extract_strided_slice %249 {offsets = [0, 128], sizes = [2, 64], strides = [1, 1]} : vector<2x256xf32> to vector<2x64xf32>
    %263 = math.tanh %262 : vector<2x64xf32>
    %264 = vector.extract_strided_slice %249 {offsets = [0, 192], sizes = [2, 64], strides = [1, 1]} : vector<2x256xf32> to vector<2x64xf32>
    %265 = arith.negf %264 : vector<2x64xf32>
    %266 = math.exp %265 : vector<2x64xf32>
    %cst_53 = arith.constant 1.000000e+00 : f32
    %267 = vector.broadcast %cst_53 : f32 to vector<2x64xf32>
    %268 = arith.addf %267, %266 : vector<2x64xf32>
    %269 = arith.divf %267, %268 : vector<2x64xf32>
    %270 = arith.mulf %261, %213 : vector<2x64xf32>
    %271 = arith.mulf %255, %263 : vector<2x64xf32>
    %272 = arith.addf %270, %271 : vector<2x64xf32>
    %273 = math.tanh %272 : vector<2x64xf32>
    %274 = arith.mulf %269, %273 : vector<2x64xf32>
    %cst_54 = arith.constant dense<0.000000e+00> : vector<2x256xf32>
    %275 = tpu.matmul %274, %7, %cst_54 {dimension_numbers = #tpu.dot_dimension_numbers<[1], [0], [0], [1], [0, 0, 1, 1], [], []>} : vector<2x64xf32>, vector<64x256xf32>, vector<2x256xf32> -> vector<2x256xf32>
    %cst_55 = arith.constant dense<0.000000e+00> : vector<2x256xf32>
    %276 = tpu.matmul %245, %8, %cst_55 {dimension_numbers = #tpu.dot_dimension_numbers<[1], [0], [0], [1], [0, 0, 1, 1], [], []>} : vector<2x64xf32>, vector<64x256xf32>, vector<2x256xf32> -> vector<2x256xf32>
    %277 = arith.addf %275, %276 : vector<2x256xf32>
    %278 = vector.broadcast %9 : vector<1x256xf32> to vector<2x256xf32>
    %279 = arith.addf %277, %278 : vector<2x256xf32>
    %280 = vector.extract_strided_slice %279 {offsets = [0, 0], sizes = [2, 64], strides = [1, 1]} : vector<2x256xf32> to vector<2x64xf32>
    %281 = arith.negf %280 : vector<2x64xf32>
    %282 = math.exp %281 : vector<2x64xf32>
    %cst_56 = arith.constant 1.000000e+00 : f32
    %283 = vector.broadcast %cst_56 : f32 to vector<2x64xf32>
    %284 = arith.addf %283, %282 : vector<2x64xf32>
    %285 = arith.divf %283, %284 : vector<2x64xf32>
    %286 = vector.extract_strided_slice %279 {offsets = [0, 64], sizes = [2, 64], strides = [1, 1]} : vector<2x256xf32> to vector<2x64xf32>
    %287 = arith.negf %286 : vector<2x64xf32>
    %288 = math.exp %287 : vector<2x64xf32>
    %cst_57 = arith.constant 1.000000e+00 : f32
    %289 = vector.broadcast %cst_57 : f32 to vector<2x64xf32>
    %290 = arith.addf %289, %288 : vector<2x64xf32>
    %291 = arith.divf %289, %290 : vector<2x64xf32>
    %292 = vector.extract_strided_slice %279 {offsets = [0, 128], sizes = [2, 64], strides = [1, 1]} : vector<2x256xf32> to vector<2x64xf32>
    %293 = math.tanh %292 : vector<2x64xf32>
    %294 = vector.extract_strided_slice %279 {offsets = [0, 192], sizes = [2, 64], strides = [1, 1]} : vector<2x256xf32> to vector<2x64xf32>
    %295 = arith.negf %294 : vector<2x64xf32>
    %296 = math.exp %295 : vector<2x64xf32>
    %cst_58 = arith.constant 1.000000e+00 : f32
    %297 = vector.broadcast %cst_58 : f32 to vector<2x64xf32>
    %298 = arith.addf %297, %296 : vector<2x64xf32>
    %299 = arith.divf %297, %298 : vector<2x64xf32>
    %300 = arith.mulf %291, %243 : vector<2x64xf32>
    %301 = arith.mulf %285, %293 : vector<2x64xf32>
    %302 = arith.addf %300, %301 : vector<2x64xf32>
    %303 = math.tanh %302 : vector<2x64xf32>
    %304 = arith.mulf %299, %303 : vector<2x64xf32>
    %305 = arith.addf %246, %304 : vector<2x64xf32>
    %306 = vector.extract_strided_slice %5 {offsets = [10, 0], sizes = [2, 256], strides = [1, 1]} : vector<12x256xf32> to vector<2x256xf32>
    %cst_59 = arith.constant dense<0.000000e+00> : vector<2x256xf32>
    %307 = tpu.matmul %274, %6, %cst_59 {dimension_numbers = #tpu.dot_dimension_numbers<[1], [0], [0], [1], [0, 0, 1, 1], [], []>} : vector<2x64xf32>, vector<64x256xf32>, vector<2x256xf32> -> vector<2x256xf32>
    %308 = arith.addf %306, %307 : vector<2x256xf32>
    %309 = vector.extract_strided_slice %308 {offsets = [0, 0], sizes = [2, 64], strides = [1, 1]} : vector<2x256xf32> to vector<2x64xf32>
    %310 = arith.negf %309 : vector<2x64xf32>
    %311 = math.exp %310 : vector<2x64xf32>
    %cst_60 = arith.constant 1.000000e+00 : f32
    %312 = vector.broadcast %cst_60 : f32 to vector<2x64xf32>
    %313 = arith.addf %312, %311 : vector<2x64xf32>
    %314 = arith.divf %312, %313 : vector<2x64xf32>
    %315 = vector.extract_strided_slice %308 {offsets = [0, 64], sizes = [2, 64], strides = [1, 1]} : vector<2x256xf32> to vector<2x64xf32>
    %316 = arith.negf %315 : vector<2x64xf32>
    %317 = math.exp %316 : vector<2x64xf32>
    %cst_61 = arith.constant 1.000000e+00 : f32
    %318 = vector.broadcast %cst_61 : f32 to vector<2x64xf32>
    %319 = arith.addf %318, %317 : vector<2x64xf32>
    %320 = arith.divf %318, %319 : vector<2x64xf32>
    %321 = vector.extract_strided_slice %308 {offsets = [0, 128], sizes = [2, 64], strides = [1, 1]} : vector<2x256xf32> to vector<2x64xf32>
    %322 = math.tanh %321 : vector<2x64xf32>
    %323 = vector.extract_strided_slice %308 {offsets = [0, 192], sizes = [2, 64], strides = [1, 1]} : vector<2x256xf32> to vector<2x64xf32>
    %324 = arith.negf %323 : vector<2x64xf32>
    %325 = math.exp %324 : vector<2x64xf32>
    %cst_62 = arith.constant 1.000000e+00 : f32
    %326 = vector.broadcast %cst_62 : f32 to vector<2x64xf32>
    %327 = arith.addf %326, %325 : vector<2x64xf32>
    %328 = arith.divf %326, %327 : vector<2x64xf32>
    %329 = arith.mulf %320, %272 : vector<2x64xf32>
    %330 = arith.mulf %314, %322 : vector<2x64xf32>
    %331 = arith.addf %329, %330 : vector<2x64xf32>
    %332 = math.tanh %331 : vector<2x64xf32>
    %333 = arith.mulf %328, %332 : vector<2x64xf32>
    %cst_63 = arith.constant dense<0.000000e+00> : vector<2x256xf32>
    %334 = tpu.matmul %333, %7, %cst_63 {dimension_numbers = #tpu.dot_dimension_numbers<[1], [0], [0], [1], [0, 0, 1, 1], [], []>} : vector<2x64xf32>, vector<64x256xf32>, vector<2x256xf32> -> vector<2x256xf32>
    %cst_64 = arith.constant dense<0.000000e+00> : vector<2x256xf32>
    %335 = tpu.matmul %304, %8, %cst_64 {dimension_numbers = #tpu.dot_dimension_numbers<[1], [0], [0], [1], [0, 0, 1, 1], [], []>} : vector<2x64xf32>, vector<64x256xf32>, vector<2x256xf32> -> vector<2x256xf32>
    %336 = arith.addf %334, %335 : vector<2x256xf32>
    %337 = vector.broadcast %9 : vector<1x256xf32> to vector<2x256xf32>
    %338 = arith.addf %336, %337 : vector<2x256xf32>
    %339 = vector.extract_strided_slice %338 {offsets = [0, 0], sizes = [2, 64], strides = [1, 1]} : vector<2x256xf32> to vector<2x64xf32>
    %340 = arith.negf %339 : vector<2x64xf32>
    %341 = math.exp %340 : vector<2x64xf32>
    %cst_65 = arith.constant 1.000000e+00 : f32
    %342 = vector.broadcast %cst_65 : f32 to vector<2x64xf32>
    %343 = arith.addf %342, %341 : vector<2x64xf32>
    %344 = arith.divf %342, %343 : vector<2x64xf32>
    %345 = vector.extract_strided_slice %338 {offsets = [0, 64], sizes = [2, 64], strides = [1, 1]} : vector<2x256xf32> to vector<2x64xf32>
    %346 = arith.negf %345 : vector<2x64xf32>
    %347 = math.exp %346 : vector<2x64xf32>
    %cst_66 = arith.constant 1.000000e+00 : f32
    %348 = vector.broadcast %cst_66 : f32 to vector<2x64xf32>
    %349 = arith.addf %348, %347 : vector<2x64xf32>
    %350 = arith.divf %348, %349 : vector<2x64xf32>
    %351 = vector.extract_strided_slice %338 {offsets = [0, 128], sizes = [2, 64], strides = [1, 1]} : vector<2x256xf32> to vector<2x64xf32>
    %352 = math.tanh %351 : vector<2x64xf32>
    %353 = vector.extract_strided_slice %338 {offsets = [0, 192], sizes = [2, 64], strides = [1, 1]} : vector<2x256xf32> to vector<2x64xf32>
    %354 = arith.negf %353 : vector<2x64xf32>
    %355 = math.exp %354 : vector<2x64xf32>
    %cst_67 = arith.constant 1.000000e+00 : f32
    %356 = vector.broadcast %cst_67 : f32 to vector<2x64xf32>
    %357 = arith.addf %356, %355 : vector<2x64xf32>
    %358 = arith.divf %356, %357 : vector<2x64xf32>
    %359 = arith.mulf %350, %302 : vector<2x64xf32>
    %360 = arith.mulf %344, %352 : vector<2x64xf32>
    %361 = arith.addf %359, %360 : vector<2x64xf32>
    %362 = math.tanh %361 : vector<2x64xf32>
    %363 = arith.mulf %358, %362 : vector<2x64xf32>
    %364 = arith.addf %305, %363 : vector<2x64xf32>
    %cst_68 = arith.constant 0.166666672 : f32
    %365 = vector.broadcast %cst_68 : f32 to vector<2x64xf32>
    %366 = arith.mulf %364, %365 : vector<2x64xf32>
    %c0_69 = arith.constant 0 : index
    %c0_70 = arith.constant 0 : index
    %367 = vector.load %arg1[%c0_69, %c0_70] : memref<2x384xf32, #tpu.memory_space<vmem>>, vector<2x384xf32>
    %c0_71 = arith.constant 0 : index
    %c0_72 = arith.constant 0 : index
    %368 = vector.load %arg8[%c0_71, %c0_72] : memref<384x400xf32, #tpu.memory_space<vmem>>, vector<384x400xf32>
    %cst_73 = arith.constant dense<0.000000e+00> : vector<2x400xf32>
    %369 = tpu.matmul %367, %368, %cst_73 {dimension_numbers = #tpu.dot_dimension_numbers<[1], [0], [0], [1], [0, 0, 1, 1], [], []>} : vector<2x384xf32>, vector<384x400xf32>, vector<2x400xf32> -> vector<2x400xf32>
    %c0_74 = arith.constant 0 : index
    %c0_75 = arith.constant 0 : index
    %370 = vector.load %arg9[%c0_74, %c0_75] : memref<64x400xf32, #tpu.memory_space<vmem>>, vector<64x400xf32>
    %cst_76 = arith.constant dense<0.000000e+00> : vector<2x400xf32>
    %371 = tpu.matmul %366, %370, %cst_76 {dimension_numbers = #tpu.dot_dimension_numbers<[1], [0], [0], [1], [0, 0, 1, 1], [], []>} : vector<2x64xf32>, vector<64x400xf32>, vector<2x400xf32> -> vector<2x400xf32>
    %372 = arith.addf %369, %371 : vector<2x400xf32>
    %c0_77 = arith.constant 0 : index
    %c0_78 = arith.constant 0 : index
    %373 = vector.load %arg10[%c0_77, %c0_78] : memref<1x400xf32, #tpu.memory_space<vmem>>, vector<1x400xf32>
    %374 = vector.broadcast %373 : vector<1x400xf32> to vector<2x400xf32>
    %375 = arith.addf %372, %374 : vector<2x400xf32>
    %376 = arith.negf %375 : vector<2x400xf32>
    %377 = math.exp %376 : vector<2x400xf32>
    %cst_79 = arith.constant 1.000000e+00 : f32
    %378 = vector.broadcast %cst_79 : f32 to vector<2x400xf32>
    %379 = arith.addf %378, %377 : vector<2x400xf32>
    %380 = arith.divf %378, %379 : vector<2x400xf32>
    %c0_80 = arith.constant 0 : index
    %c0_81 = arith.constant 0 : index
    %381 = vector.load %arg11[%c0_80, %c0_81] : memref<2x400xf32, #tpu.memory_space<vmem>>, vector<2x400xf32>
    tpu.vector_store %arg11[%c0_80, %c0_81], %380 {strides = array<i32>} : memref<2x400xf32, #tpu.memory_space<vmem>>, vector<2x400xf32>,
    return
  }
}

</mosaic_0001>

<bundles_post_ra>
// kernel: _lambda_.3
= control target key start
LH: loop header
LB: loop body
LE: loop exit
PB: predicated region body
PF: predicated region fallthrough
CT: control target
= control target key end

     0   :  { %s1050_s12 = smov 0   ;;  %s1296_s0 = inlined_call_operand.vmem [shape: f32[1152,54], index: 0, kind: input, shape index: {}]   ;;  %s1297_s1 = inlined_call_operand.vmem [shape: f32[54,128], index: 1, kind: input, shape index: {}]   ;;  %s1298_s2 = inlined_call_operand.vmem [shape: f32[1,128], index: 2, kind: input, shape index: {}]   ;;  %s1299_s3 = inlined_call_operand.vmem [shape: f32[1152,128], index: 3, kind: output, shape index: {}]  }
   0x1 LB: > { %s794_s13 = sadd.s32 4294967295, %s1028_s12   ;;  %p798_p0 = scmp.ge.s32.totalorder %s1028_s12, 1  ;;  %s1028_s12 = sphi %s1050_s12, %s13_s12  }
   0x2   : > { %p138_p1 = scmp.lt.s32.totalorder %s1028_s12, 4 }
   0x4   : > { %p139_p2 = pnand %p798_p0, %p138_p1 }
   0x5   : > { %v222_v0 = vld [vmem:[%s1297_s1] sm:$0xff] (!%p139_p2)  ;;  %v223_v1 = vld [vmem:[%s1297_s1 + $0x8] sm:$0xff] (!%p139_p2)  ;;  %v224_v2 = vld [vmem:[%s1297_s1 + $0x10] sm:$0xff] (!%p139_p2)  ;;  %s162_s20 = smul.u32 (!%p139_p2), 48, %s794_s13  ;;  %vm236_vm0 = vcmask (!%p139_p2), 441344   ;;  %vm381_vm1 = vcmask (!%p139_p2), 1045504  }
   0x6   : > { %142 = sbr.rel (%p139_p2) target bundleno = 283 (0x11b), region = 32  ;;  %v994_v3 = vpack.c.bf16 (!%p139_p2), %v223_v1, %v222_v0  ;;  %v225_v4 = vld [vmem:[%s1297_s1 + $0x18] sm:$0xff] (!%p139_p2)  ;;  %v226_v6 = vld [vmem:[%s1297_s1 + $0x20] sm:$0xff] (!%p139_p2)  ;;  %v227_v7 = vld [vmem:[%s1297_s1 + $0x28] sm:$0xff] (!%p139_p2) }
   0x7   : > { %v998_v5 = vpack.c.bf16 (!%p139_p2), %v225_v4, %v224_v2  ;;  %p163_p3 = scmp.lt.s32.totalorder (!%p139_p2), %s162_s20, 143  ;;  %v1002_v8 = vpack.c.bf16 (!%p139_p2), %v227_v7, %v226_v6  ;;  %v228_v11 = vld [vmem:[%s1297_s1 + $0x30] sm:$0x3f] (!%p139_p2)  ;;  %v1188_v58 = vld [vmem:[%s1298_s2] ss:$0 sm:$0xff] (!%p139_p2) }
   0x8   : > { %995 = vmatprep.subr.bf16.mxu0 (!%p139_p2), %v994_v3  ;;  %1006 = vmatprep.subr.bf16.mxu1 (!%p139_p2), %v994_v3 }
   0x9   : > { %997 = vmatpush3.bf16.msra.mxu0 (!%p139_p2), %v994_v3  ;;  %1010 = vmatpush3.bf16.msra.mxu1 (!%p139_p2), %v994_v3 }
   0xa   : > { %999 = vmatprep.subr.bf16.mxu0 (!%p139_p2), %v998_v5  ;;  %1007 = vmatprep.subr.bf16.mxu1 (!%p139_p2), %v998_v5 }
   0xd   : > { %s1301_s20 = smov (!%p163_p3, %s162_s20), 143  ;;  %1001 = vmatpush3.bf16.msra.mxu0 %v998_v5  ;;  %1011 = vmatpush3.bf16.msra.mxu1 %v998_v5 }
   0xe   : > { %s799_s27 = sshll.u32 %s1301_s20, 3  ;;  %1003 = vmatprep.subr.bf16.mxu0 %v1002_v8  ;;  %1008 = vmatprep.subr.bf16.mxu1 %v1002_v8 }
   0xf   : > { %s1084_s30 = scalar_lea.vmem %s1296_s0, %s799_s27  ;;  %s1195_s10 = scalar_lea.vmem %s1299_s3, %s799_s27 }
  0x10   : > { %v174_v9 = vld [vmem:[%s1084_s30] sm:$0xff]  ;;  %v175_v12 = vld [vmem:[%s1084_s30 + $0x8] sm:$0xff]  ;;  %v176_v14 = vld [vmem:[%s1084_s30 + $0x10] sm:$0xff] }
  0x11   : > { %v198_v10 = vld [vmem:[%s1084_s30 + $0xc0] sm:$0xff]  ;;  %922 = vmatprep.mubr.msk.f32.mxu0 %vm236_vm0, %v174_v9  ;;  %1005 = vmatpush3.bf16.msra.mxu0 %v1002_v8  ;;  %v199_v13 = vld [vmem:[%s1084_s30 + $0xc8] sm:$0xff]  ;;  %v200_v15 = vld [vmem:[%s1084_s30 + $0xd0] sm:$0xff] }
  0x12   : > { %958 = vmatprep.mubr.msk.f32.mxu1 %vm236_vm0, %v198_v10  ;;  %1012 = vmatpush3.bf16.msra.mxu1 %v1002_v8  ;;  %v177_v16 = vld [vmem:[%s1084_s30 + $0x18] sm:$0xff]  ;;  %v178_v18 = vld [vmem:[%s1084_s30 + $0x20] sm:$0xff]  ;;  %v179_v20 = vld [vmem:[%s1084_s30 + $0x28] sm:$0xff] }
  0x13   : > { %920 = vmatprep.subr.msk.mxu0 %vm381_vm1, %v228_v11  ;;  %1009 = vmatprep.subr.msk.mxu1 %vm381_vm1, %v228_v11  ;;  %v201_v17 = vld [vmem:[%s1084_s30 + $0xd8] sm:$0xff]  ;;  %v202_v19 = vld [vmem:[%s1084_s30 + $0xe0] sm:$0xff]  ;;  %v203_v21 = vld [vmem:[%s1084_s30 + $0xe8] sm:$0xff] }
  0x14   : > { %v180_v22 = vld [vmem:[%s1084_s30 + $0x30] sm:$0xff]  ;;  %v181_v24 = vld [vmem:[%s1084_s30 + $0x38] sm:$0xff]  ;;  %v182_v26 = vld [vmem:[%s1084_s30 + $0x40] sm:$0xff] }
  0x15   : > { %921 = vmatpush3.msk.msra.mxu0 %vm381_vm1, %v228_v11  ;;  %v204_v23 = vld [vmem:[%s1084_s30 + $0xf0] sm:$0xff]  ;;  %v205_v25 = vld [vmem:[%s1084_s30 + $0xf8] sm:$0xff]  ;;  %v206_v27 = vld [vmem:[%s1084_s30 + $0x100] sm:$0xff] }
  0x16   : > { %1013 = vmatpush3.msk.msra.mxu1 %vm381_vm1, %v228_v11  ;;  %923 = vmatmul.mubr.msk.f32.vlgmr.msra.gmra.mrb[0].mxu0 %vm236_vm0, %v175_v12  ;;  %v183_v28 = vld [vmem:[%s1084_s30 + $0x48] sm:$0xff]  ;;  %v184_v30 = vld [vmem:[%s1084_s30 + $0x50] sm:$0xff]  ;;  %v185_v32 = vld [vmem:[%s1084_s30 + $0x58] sm:$0xff] }
  0x17   : > { %959 = vmatmul.mubr.msk.f32.vlgmr.msra.gmra.mrb[0].mxu1 %vm236_vm0, %v199_v13  ;;  %925 = vmatprep.mubr.msk.f32.mxu0 %vm236_vm0, %v176_v14  ;;  %v207_v29 = vld [vmem:[%s1084_s30 + $0x108] sm:$0xff]  ;;  %v208_v31 = vld [vmem:[%s1084_s30 + $0x110] sm:$0xff]  ;;  %v209_v33 = vld [vmem:[%s1084_s30 + $0x118] sm:$0xff] }
  0x18   : > { %961 = vmatprep.mubr.msk.f32.mxu1 %vm236_vm0, %v200_v15  ;;  %v186_v34 = vld [vmem:[%s1084_s30 + $0x60] sm:$0xff]  ;;  %v187_v36 = vld [vmem:[%s1084_s30 + $0x68] sm:$0xff]  ;;  %v188_v38 = vld [vmem:[%s1084_s30 + $0x70] sm:$0xff] }
  0x19   : > { %v210_v35 = vld [vmem:[%s1084_s30 + $0x120] sm:$0xff]  ;;  %v211_v37 = vld [vmem:[%s1084_s30 + $0x128] sm:$0xff]  ;;  %v212_v39 = vld [vmem:[%s1084_s30 + $0x130] sm:$0xff] }
  0x1a   : > { %926 = vmatmul.mubr.msk.f32.gmra.mrb[2].mxu0 %vm236_vm0, %v177_v16  ;;  %v189_v40 = vld [vmem:[%s1084_s30 + $0x78] sm:$0xff]  ;;  %v190_v42 = vld [vmem:[%s1084_s30 + $0x80] sm:$0xff]  ;;  %v191_v44 = vld [vmem:[%s1084_s30 + $0x88] sm:$0xff] }
  0x1b   : > { %962 = vmatmul.mubr.msk.f32.gmra.mrb[2].mxu1 %vm236_vm0, %v201_v17  ;;  %928 = vmatprep.mubr.msk.f32.mxu0 %vm236_vm0, %v178_v18  ;;  %v213_v41 = vld [vmem:[%s1084_s30 + $0x138] sm:$0xff]  ;;  %v214_v43 = vld [vmem:[%s1084_s30 + $0x140] sm:$0xff]  ;;  %v215_v45 = vld [vmem:[%s1084_s30 + $0x148] sm:$0xff] }
  0x1c   : > { %964 = vmatprep.mubr.msk.f32.mxu1 %vm236_vm0, %v202_v19  ;;  %v192_v46 = vld [vmem:[%s1084_s30 + $0x90] sm:$0xff]  ;;  %v193_v48 = vld [vmem:[%s1084_s30 + $0x98] sm:$0xff]  ;;  %v194_v50 = vld [vmem:[%s1084_s30 + $0xa0] sm:$0xff] }
  0x1d   : > { %v216_v47 = vld [vmem:[%s1084_s30 + $0x150] sm:$0xff]  ;;  %v217_v49 = vld [vmem:[%s1084_s30 + $0x158] sm:$0xff]  ;;  %v218_v51 = vld [vmem:[%s1084_s30 + $0x160] sm:$0xff] }
  0x1e   : > { %929 = vmatmul.mubr.msk.f32.gmra.mrb[4].mxu0 %vm236_vm0, %v179_v20  ;;  %v195_v52 = vld [vmem:[%s1084_s30 + $0xa8] sm:$0xff]  ;;  %v196_v54 = vld [vmem:[%s1084_s30 + $0xb0] sm:$0xff]  ;;  %v197_v56 = vld [vmem:[%s1084_s30 + $0xb8] sm:$0xff] }
  0x1f   : > { %965 = vmatmul.mubr.msk.f32.gmra.mrb[4].mxu1 %vm236_vm0, %v203_v21  ;;  %931 = vmatprep.mubr.msk.f32.mxu0 %vm236_vm0, %v180_v22  ;;  %v219_v53 = vld [vmem:[%s1084_s30 + $0x168] sm:$0xff]  ;;  %v220_v55 = vld [vmem:[%s1084_s30 + $0x170] sm:$0xff]  ;;  %v221_v57 = vld [vmem:[%s1084_s30 + $0x178] sm:$0xff] }
  0x20   : > { %967 = vmatprep.mubr.msk.f32.mxu1 %vm236_vm0, %v204_v23 }
  0x22   : > { %932 = vmatmul.mubr.msk.f32.gmra.mrb[6].mxu0 %vm236_vm0, %v181_v24 }
  0x23   : > { %968 = vmatmul.mubr.msk.f32.gmra.mrb[6].mxu1 %vm236_vm0, %v205_v25  ;;  %934 = vmatprep.mubr.msk.f32.mxu0 %vm236_vm0, %v182_v26 }
  0x24   : > { %970 = vmatprep.mubr.msk.f32.mxu1 %vm236_vm0, %v206_v27 }
  0x26   : > { %935 = vmatmul.mubr.msk.f32.gmra.mrb[8].mxu0 %vm236_vm0, %v183_v28 }
  0x27   : > { %971 = vmatmul.mubr.msk.f32.gmra.mrb[8].mxu1 %vm236_vm0, %v207_v29  ;;  %937 = vmatprep.mubr.msk.f32.mxu0 %vm236_vm0, %v184_v30 }
  0x28   : > { %973 = vmatprep.mubr.msk.f32.mxu1 %vm236_vm0, %v208_v31 }
  0x2a   : > { %938 = vmatmul.mubr.msk.f32.gmra.mrb[10].mxu0 %vm236_vm0, %v185_v32 }
  0x2b   : > { %974 = vmatmul.mubr.msk.f32.gmra.mrb[10].mxu1 %vm236_vm0, %v209_v33  ;;  %940 = vmatprep.mubr.msk.f32.mxu0 %vm236_vm0, %v186_v34 }
  0x2c   : > { %976 = vmatprep.mubr.msk.f32.mxu1 %vm236_vm0, %v210_v35 }
  0x2e   : > { %941 = vmatmul.mubr.msk.f32.gmra.mrb[12].mxu0 %vm236_vm0, %v187_v36 }
  0x2f   : > { %977 = vmatmul.mubr.msk.f32.gmra.mrb[12].mxu1 %vm236_vm0, %v211_v37  ;;  %943 = vmatprep.mubr.msk.f32.mxu0 %vm236_vm0, %v188_v38 }
  0x30   : > { %979 = vmatprep.mubr.msk.f32.mxu1 %vm236_vm0, %v212_v39 }
  0x32   : > { %944 = vmatmul.mubr.msk.f32.gmra.mrb[14].mxu0 %vm236_vm0, %v189_v40 }
  0x33   : > { %980 = vmatmul.mubr.msk.f32.gmra.mrb[14].mxu1 %vm236_vm0, %v213_v41  ;;  %946 = vmatprep.mubr.msk.f32.mxu0 %vm236_vm0, %v190_v42 }
  0x34   : > { %982 = vmatprep.mubr.msk.f32.mxu1 %vm236_vm0, %v214_v43 }
  0x36   : > { %947 = vmatmul.mubr.msk.f32.gmra.mrb[16].mxu0 %vm236_vm0, %v191_v44 }
  0x37   : > { %983 = vmatmul.mubr.msk.f32.gmra.mrb[16].mxu1 %vm236_vm0, %v215_v45  ;;  %949 = vmatprep.mubr.msk.f32.mxu0 %vm236_vm0, %v192_v46 }
  0x38   : > { %985 = vmatprep.mubr.msk.f32.mxu1 %vm236_vm0, %v216_v47 }
  0x3a   : > { %950 = vmatmul.mubr.msk.f32.gmra.mrb[18].mxu0 %vm236_vm0, %v193_v48 }
  0x3b   : > { %986 = vmatmul.mubr.msk.f32.gmra.mrb[18].mxu1 %vm236_vm0, %v217_v49  ;;  %952 = vmatprep.mubr.msk.f32.mxu0 %vm236_vm0, %v194_v50 }
  0x3c   : > { %988 = vmatprep.mubr.msk.f32.mxu1 %vm236_vm0, %v218_v51 }
  0x3e   : > { %953 = vmatmul.mubr.msk.f32.gmra.mrb[20].mxu0 %vm236_vm0, %v195_v52 }
  0x3f   : > { %989 = vmatmul.mubr.msk.f32.gmra.mrb[20].mxu1 %vm236_vm0, %v219_v53  ;;  %955 = vmatprep.mubr.msk.f32.mxu0 %vm236_vm0, %v196_v54 }
  0x40   : > { %991 = vmatprep.mubr.msk.f32.mxu1 %vm236_vm0, %v220_v55 }
  0x42   : > { %956 = vmatmul.mubr.msk.f32.gmra.mrb[22].mxu0 %vm236_vm0, %v197_v56 }
  0x43   : > { %992 = vmatmul.mubr.msk.f32.gmra.mrb[22].mxu1 %vm236_vm0, %v221_v57 }
  0xe9   : > { %v924_v59 = vpop.f32.mrb[0].mxu0 }
  0xea   : > { %v960_v60 = vpop.f32.mrb[0].mxu1  ;;  %v457_v61 = vadd.f32 %v924_v59, %v1188_v58  ;;  %v451_v63 = vpop.f32.mrb[1].mxu0 }
  0xeb   : > { %v577_v62 = vadd.f32 %v960_v60, %v1188_v58  ;;  %v571_v0 = vpop.f32.mrb[1].mxu1  ;;  %v452_v1 = vadd.f32 %v1188_v58, %v451_v63 }
  0xec   : > { %v572_v2 = vadd.f32 %v1188_v58, %v571_v0  ;;  %691 = vst [vmem:[%s1195_s10 + $0x8] sm:$0xff] %v457_v61 }
  0xed   : > { %715 = vst [vmem:[%s1195_s10 + $0xc8] sm:$0xff] %v577_v62  ;;  %690 = vst [vmem:[%s1195_s10] sm:$0xff] %v452_v1  ;;  %v927_v3 = vpop.f32.mrb[2].mxu0 }
  0xee   : > { %714 = vst [vmem:[%s1195_s10 + $0xc0] sm:$0xff] %v572_v2  ;;  %v963_v4 = vpop.f32.mrb[2].mxu1  ;;  %v467_v5 = vadd.f32 %v927_v3, %v1188_v58  ;;  %v461_v7 = vpop.f32.mrb[3].mxu0 }
  0xef   : > { %v587_v6 = vadd.f32 %v963_v4, %v1188_v58  ;;  %v581_v8 = vpop.f32.mrb[3].mxu1  ;;  %v462_v9 = vadd.f32 %v1188_v58, %v461_v7 }
  0xf0   : > { %v582_v10 = vadd.f32 %v1188_v58, %v581_v8  ;;  %693 = vst [vmem:[%s1195_s10 + $0x18] sm:$0xff] %v467_v5 }
  0xf1   : > { %717 = vst [vmem:[%s1195_s10 + $0xd8] sm:$0xff] %v587_v6  ;;  %692 = vst [vmem:[%s1195_s10 + $0x10] sm:$0xff] %v462_v9  ;;  %v930_v11 = vpop.f32.mrb[4].mxu0 }
  0xf2   : > { %716 = vst [vmem:[%s1195_s10 + $0xd0] sm:$0xff] %v582_v10  ;;  %v966_v12 = vpop.f32.mrb[4].mxu1  ;;  %v477_v13 = vadd.f32 %v930_v11, %v1188_v58  ;;  %v471_v15 = vpop.f32.mrb[5].mxu0 }
  0xf3   : > { %v597_v14 = vadd.f32 %v966_v12, %v1188_v58  ;;  %v591_v16 = vpop.f32.mrb[5].mxu1  ;;  %v472_v17 = vadd.f32 %v1188_v58, %v471_v15 }
  0xf4   : > { %v592_v18 = vadd.f32 %v1188_v58, %v591_v16  ;;  %695 = vst [vmem:[%s1195_s10 + $0x28] sm:$0xff] %v477_v13 }
  0xf5   : > { %719 = vst [vmem:[%s1195_s10 + $0xe8] sm:$0xff] %v597_v14  ;;  %694 = vst [vmem:[%s1195_s10 + $0x20] sm:$0xff] %v472_v17  ;;  %v933_v19 = vpop.f32.mrb[6].mxu0 }
  0xf6   : > { %718 = vst [vmem:[%s1195_s10 + $0xe0] sm:$0xff] %v592_v18  ;;  %v969_v20 = vpop.f32.mrb[6].mxu1  ;;  %v487_v21 = vadd.f32 %v933_v19, %v1188_v58  ;;  %v481_v23 = vpop.f32.mrb[7].mxu0 }
  0xf7   : > { %v607_v22 = vadd.f32 %v969_v20, %v1188_v58  ;;  %v601_v24 = vpop.f32.mrb[7].mxu1  ;;  %v482_v25 = vadd.f32 %v1188_v58, %v481_v23 }
  0xf8   : > { %v602_v26 = vadd.f32 %v1188_v58, %v601_v24  ;;  %697 = vst [vmem:[%s1195_s10 + $0x38] sm:$0xff] %v487_v21 }
  0xf9   : > { %721 = vst [vmem:[%s1195_s10 + $0xf8] sm:$0xff] %v607_v22  ;;  %696 = vst [vmem:[%s1195_s10 + $0x30] sm:$0xff] %v482_v25  ;;  %v936_v27 = vpop.f32.mrb[8].mxu0 }
  0xfa   : > { %720 = vst [vmem:[%s1195_s10 + $0xf0] sm:$0xff] %v602_v26  ;;  %v972_v28 = vpop.f32.mrb[8].mxu1  ;;  %v497_v29 = vadd.f32 %v936_v27, %v1188_v58  ;;  %v491_v31 = vpop.f32.mrb[9].mxu0 }
  0xfb   : > { %v617_v30 = vadd.f32 %v972_v28, %v1188_v58  ;;  %v611_v32 = vpop.f32.mrb[9].mxu1  ;;  %v492_v33 = vadd.f32 %v1188_v58, %v491_v31 }
  0xfc   : > { %v612_v34 = vadd.f32 %v1188_v58, %v611_v32  ;;  %699 = vst [vmem:[%s1195_s10 + $0x48] sm:$0xff] %v497_v29 }
  0xfd   : > { %723 = vst [vmem:[%s1195_s10 + $0x108] sm:$0xff] %v617_v30  ;;  %698 = vst [vmem:[%s1195_s10 + $0x40] sm:$0xff] %v492_v33  ;;  %v939_v35 = vpop.f32.mrb[10].mxu0 }
  0xfe   : > { %722 = vst [vmem:[%s1195_s10 + $0x100] sm:$0xff] %v612_v34  ;;  %v975_v36 = vpop.f32.mrb[10].mxu1  ;;  %v507_v37 = vadd.f32 %v939_v35, %v1188_v58  ;;  %v501_v39 = vpop.f32.mrb[11].mxu0 }
  0xff   : > { %v627_v38 = vadd.f32 %v975_v36, %v1188_v58  ;;  %v621_v40 = vpop.f32.mrb[11].mxu1  ;;  %v502_v41 = vadd.f32 %v1188_v58, %v501_v39 }
 0x100   : > { %v622_v42 = vadd.f32 %v1188_v58, %v621_v40  ;;  %701 = vst [vmem:[%s1195_s10 + $0x58] sm:$0xff] %v507_v37 }
 0x101   : > { %725 = vst [vmem:[%s1195_s10 + $0x118] sm:$0xff] %v627_v38  ;;  %700 = vst [vmem:[%s1195_s10 + $0x50] sm:$0xff] %v502_v41  ;;  %v942_v43 = vpop.f32.mrb[12].mxu0 }
 0x102   : > { %724 = vst [vmem:[%s1195_s10 + $0x110] sm:$0xff] %v622_v42  ;;  %v978_v44 = vpop.f32.mrb[12].mxu1  ;;  %v517_v45 = vadd.f32 %v942_v43, %v1188_v58  ;;  %v511_v47 = vpop.f32.mrb[13].mxu0 }
 0x103   : > { %v637_v46 = vadd.f32 %v978_v44, %v1188_v58  ;;  %v631_v48 = vpop.f32.mrb[13].mxu1  ;;  %v512_v49 = vadd.f32 %v1188_v58, %v511_v47 }
 0x104   : > { %v632_v50 = vadd.f32 %v1188_v58, %v631_v48  ;;  %703 = vst [vmem:[%s1195_s10 + $0x68] sm:$0xff] %v517_v45 }
 0x105   : > { %727 = vst [vmem:[%s1195_s10 + $0x128] sm:$0xff] %v637_v46  ;;  %702 = vst [vmem:[%s1195_s10 + $0x60] sm:$0xff] %v512_v49  ;;  %v945_v51 = vpop.f32.mrb[14].mxu0 }
 0x106   : > { %726 = vst [vmem:[%s1195_s10 + $0x120] sm:$0xff] %v632_v50  ;;  %v981_v52 = vpop.f32.mrb[14].mxu1  ;;  %v527_v53 = vadd.f32 %v945_v51, %v1188_v58  ;;  %v521_v55 = vpop.f32.mrb[15].mxu0 }
 0x107   : > { %v647_v54 = vadd.f32 %v981_v52, %v1188_v58  ;;  %v641_v56 = vpop.f32.mrb[15].mxu1  ;;  %v522_v57 = vadd.f32 %v1188_v58, %v521_v55 }
 0x108   : > { %v642_v59 = vadd.f32 %v1188_v58, %v641_v56  ;;  %705 = vst [vmem:[%s1195_s10 + $0x78] sm:$0xff] %v527_v53 }
 0x109   : > { %729 = vst [vmem:[%s1195_s10 + $0x138] sm:$0xff] %v647_v54  ;;  %704 = vst [vmem:[%s1195_s10 + $0x70] sm:$0xff] %v522_v57  ;;  %v948_v60 = vpop.f32.mrb[16].mxu0 }
 0x10a   : > { %728 = vst [vmem:[%s1195_s10 + $0x130] sm:$0xff] %v642_v59  ;;  %v984_v61 = vpop.f32.mrb[16].mxu1  ;;  %v537_v62 = vadd.f32 %v948_v60, %v1188_v58  ;;  %v531_v0 = vpop.f32.mrb[17].mxu0 }
 0x10b   : > { %v657_v63 = vadd.f32 %v984_v61, %v1188_v58  ;;  %v651_v1 = vpop.f32.mrb[17].mxu1  ;;  %v532_v2 = vadd.f32 %v1188_v58, %v531_v0 }
 0x10c   : > { %v652_v3 = vadd.f32 %v1188_v58, %v651_v1  ;;  %707 = vst [vmem:[%s1195_s10 + $0x88] sm:$0xff] %v537_v62 }
 0x10d   : > { %731 = vst [vmem:[%s1195_s10 + $0x148] sm:$0xff] %v657_v63  ;;  %706 = vst [vmem:[%s1195_s10 + $0x80] sm:$0xff] %v532_v2  ;;  %v951_v4 = vpop.f32.mrb[18].mxu0 }
 0x10e   : > { %730 = vst [vmem:[%s1195_s10 + $0x140] sm:$0xff] %v652_v3  ;;  %v987_v5 = vpop.f32.mrb[18].mxu1  ;;  %v547_v6 = vadd.f32 %v951_v4, %v1188_v58  ;;  %v541_v8 = vpop.f32.mrb[19].mxu0 }
 0x10f   : > { %v667_v7 = vadd.f32 %v987_v5, %v1188_v58  ;;  %v661_v9 = vpop.f32.mrb[19].mxu1  ;;  %v542_v10 = vadd.f32 %v1188_v58, %v541_v8 }
 0x110   : > { %v662_v11 = vadd.f32 %v1188_v58, %v661_v9  ;;  %709 = vst [vmem:[%s1195_s10 + $0x98] sm:$0xff] %v547_v6 }
 0x111   : > { %733 = vst [vmem:[%s1195_s10 + $0x158] sm:$0xff] %v667_v7  ;;  %708 = vst [vmem:[%s1195_s10 + $0x90] sm:$0xff] %v542_v10  ;;  %v954_v12 = vpop.f32.mrb[20].mxu0 }
 0x112   : > { %732 = vst [vmem:[%s1195_s10 + $0x150] sm:$0xff] %v662_v11  ;;  %v990_v13 = vpop.f32.mrb[20].mxu1  ;;  %v557_v14 = vadd.f32 %v954_v12, %v1188_v58  ;;  %v551_v16 = vpop.f32.mrb[21].mxu0 }
 0x113   : > { %v677_v15 = vadd.f32 %v990_v13, %v1188_v58  ;;  %v671_v17 = vpop.f32.mrb[21].mxu1  ;;  %v552_v18 = vadd.f32 %v1188_v58, %v551_v16 }
 0x114   : > { %v672_v19 = vadd.f32 %v1188_v58, %v671_v17  ;;  %711 = vst [vmem:[%s1195_s10 + $0xa8] sm:$0xff] %v557_v14 }
 0x115   : > { %735 = vst [vmem:[%s1195_s10 + $0x168] sm:$0xff] %v677_v15  ;;  %710 = vst [vmem:[%s1195_s10 + $0xa0] sm:$0xff] %v552_v18  ;;  %v957_v20 = vpop.f32.mrb[22].mxu0 }
 0x116   : > { %734 = vst [vmem:[%s1195_s10 + $0x160] sm:$0xff] %v672_v19  ;;  %v993_v21 = vpop.f32.mrb[22].mxu1  ;;  %v567_v22 = vadd.f32 %v957_v20, %v1188_v58  ;;  %v561_v24 = vpop.f32.mrb[23].mxu0 }
 0x117   : > { %v687_v23 = vadd.f32 %v993_v21, %v1188_v58  ;;  %v681_v25 = vpop.f32.mrb[23].mxu1  ;;  %v562_v26 = vadd.f32 %v1188_v58, %v561_v24 }
 0x118   : > { %v682_v27 = vadd.f32 %v1188_v58, %v681_v25  ;;  %713 = vst [vmem:[%s1195_s10 + $0xb8] sm:$0xff] %v567_v22 }
 0x119   : > { %737 = vst [vmem:[%s1195_s10 + $0x178] sm:$0xff] %v687_v23  ;;  %712 = vst [vmem:[%s1195_s10 + $0xb0] sm:$0xff] %v562_v26 }
 0x11a   : > { %736 = vst [vmem:[%s1195_s10 + $0x170] sm:$0xff] %v682_v27 }
 0x11b PF: > { %s13_s12 = sadd.s32 1, %s1028_s12  }
 0x11c   : > { %p10_p4 = scmp.ge.s32.totalorder %s13_s12, 5  }
 0x11e   :  { %12 = sbr.rel (!%p10_p4) target bundleno = 1 (0x1), region = 62 }

// kernel: _lambda_.4
= control target key start
LH: loop header
LB: loop body
LE: loop exit
PB: predicated region body
PF: predicated region fallthrough
CT: control target
= control target key end

     0   :  { %vm3263_vm0 = vmmov 0   ;;  %s5187_s1 = inlined_call_operand.vmem [shape: f32[3456,128], index: 1, kind: input, shape index: {}]   ;;  %s5188_s0 = inlined_call_operand.vmem [shape: f32[56,3456], index: 0, kind: input, shape index: {}]   ;;  %s5189_s2 = inlined_call_operand.vmem [shape: f32[1,128], index: 2, kind: input, shape index: {}]   ;;  %s5190_s3 = inlined_call_operand.vmem [shape: f32[56,128], index: 3, kind: output, shape index: {}]  }
   0x1   :  { %v219_v0 = vld [vmem:[%s5187_s1 + $0x80] sm:$0xff]  ;;  %v220_v1 = vld [vmem:[%s5187_s1 + $0x88] sm:$0xff]  ;;  %v221_v11 = vld [vmem:[%s5187_s1 + $0x90] sm:$0xff] }
   0x2   :  { %v203_v2 = vld [vmem:[%s5187_s1] sm:$0xff]  ;;  %v2819_v3 = vpack.c.bf16 %v220_v1, %v219_v0  ;;  %v204_v4 = vld [vmem:[%s5187_s1 + $0x8] sm:$0xff]  ;;  %v222_v13 = vld [vmem:[%s5187_s1 + $0x98] sm:$0xff] }
   0x3   :  { %v251_v5 = vld [vmem:[%s5187_s1 + $0x180] sm:$0xff]  ;;  %v252_v6 = vld [vmem:[%s5187_s1 + $0x188] sm:$0xff]  ;;  %v2821_v7 = vpack.c.bf16 %v204_v4, %v203_v2  ;;  %v205_v14 = vld [vmem:[%s5187_s1 + $0x10] sm:$0xff]  ;;  %v2823_v16 = vpack.c.bf16 %v222_v13, %v221_v11 }
   0x4   :  { %v2851_v8 = vpack.c.bf16 %v252_v6, %v251_v5  ;;  %v235_v9 = vld [vmem:[%s5187_s1 + $0x100] sm:$0xff]  ;;  %v236_v10 = vld [vmem:[%s5187_s1 + $0x108] sm:$0xff]  ;;  %2820 = vmatprep.subr.bf16.mxu0 %v2819_v3  ;;  %v206_v15 = vld [vmem:[%s5187_s1 + $0x18] sm:$0xff] }
   0x5   :  { %v2853_v12 = vpack.c.bf16 %v236_v10, %v235_v9  ;;  %2822 = vmatpush3.bf16.msra.mxu0 %v2821_v7  ;;  %v2825_v17 = vpack.c.bf16 %v206_v15, %v205_v14  ;;  %v253_v18 = vld [vmem:[%s5187_s1 + $0x190] sm:$0xff]  ;;  %v254_v19 = vld [vmem:[%s5187_s1 + $0x198] sm:$0xff]  ;;  %v223_v23 = vld [vmem:[%s5187_s1 + $0xa0] sm:$0xff] }
   0x6   :  { %2852 = vmatprep.subr.bf16.mxu1 %v2851_v8  ;;  %v237_v20 = vld [vmem:[%s5187_s1 + $0x110] sm:$0xff]  ;;  %v2855_v21 = vpack.c.bf16 %v254_v19, %v253_v18  ;;  %v238_v22 = vld [vmem:[%s5187_s1 + $0x118] sm:$0xff]  ;;  %v224_v24 = vld [vmem:[%s5187_s1 + $0xa8] sm:$0xff]  ;;  %2824 = vmatprep.subr.bf16.mxu0 %v2823_v16 }
   0x7   :  { %2854 = vmatpush3.bf16.msra.mxu1 %v2853_v12  ;;  %v2857_v25 = vpack.c.bf16 %v238_v22, %v237_v20  ;;  %v2827_v26 = vpack.c.bf16 %v224_v24, %v223_v23  ;;  %v207_v27 = vld [vmem:[%s5187_s1 + $0x20] sm:$0xff]  ;;  %v208_v28 = vld [vmem:[%s5187_s1 + $0x28] sm:$0xff]  ;;  %v225_v35 = vld [vmem:[%s5187_s1 + $0xb0] sm:$0xff] }
   0x8   :  { %v255_v29 = vld [vmem:[%s5187_s1 + $0x1a0] sm:$0xff]  ;;  %2856 = vmatprep.subr.bf16.mxu1 %v2855_v21  ;;  %v256_v30 = vld [vmem:[%s5187_s1 + $0x1a8] sm:$0xff]  ;;  %v2829_v33 = vpack.c.bf16 %v208_v28, %v207_v27  ;;  %v226_v36 = vld [vmem:[%s5187_s1 + $0xb8] sm:$0xff] }
   0x9   :  { %v239_v31 = vld [vmem:[%s5187_s1 + $0x120] sm:$0xff]  ;;  %v240_v32 = vld [vmem:[%s5187_s1 + $0x128] sm:$0xff]  ;;  %2826 = vmatpush3.bf16.msra.mxu0 %v2825_v17  ;;  %v2859_v34 = vpack.c.bf16 %v256_v30, %v255_v29  ;;  %v209_v37 = vld [vmem:[%s5187_s1 + $0x30] sm:$0xff]  ;;  %v2831_v39 = vpack.c.bf16 %v226_v36, %v225_v35 }
   0xa   :  { %2828 = vmatprep.subr.bf16.mxu0 %v2827_v26  ;;  %v2861_v38 = vpack.c.bf16 %v240_v32, %v239_v31  ;;  %v210_v40 = vld [vmem:[%s5187_s1 + $0x38] sm:$0xff]  ;;  %v257_v41 = vld [vmem:[%s5187_s1 + $0x1b0] sm:$0xff]  ;;  %v227_v46 = vld [vmem:[%s5187_s1 + $0xc0] sm:$0xff] }
   0xb   :  { %2858 = vmatpush3.bf16.msra.mxu1 %v2857_v25  ;;  %v258_v42 = vld [vmem:[%s5187_s1 + $0x1b8] sm:$0xff]  ;;  %v241_v44 = vld [vmem:[%s5187_s1 + $0x130] sm:$0xff]  ;;  %v228_v47 = vld [vmem:[%s5187_s1 + $0xc8] sm:$0xff]  ;;  %v2833_v48 = vpack.c.bf16 %v210_v40, %v209_v37 }
   0xc   :  { %2860 = vmatprep.subr.bf16.mxu1 %v2859_v34  ;;  %v2863_v43 = vpack.c.bf16 %v258_v42, %v257_v41  ;;  %v242_v45 = vld [vmem:[%s5187_s1 + $0x138] sm:$0xff]  ;;  %v259_v49 = vld [vmem:[%s5187_s1 + $0x1c0] sm:$0xff]  ;;  %v260_v50 = vld [vmem:[%s5187_s1 + $0x1c8] sm:$0xff]  ;;  %v2835_v52 = vpack.c.bf16 %v228_v47, %v227_v46 }
   0xd   :  { %2830 = vmatpush3.bf16.msra.mxu0 %v2829_v33  ;;  %v2865_v51 = vpack.c.bf16 %v242_v45, %v241_v44  ;;  %v211_v53 = vld [vmem:[%s5187_s1 + $0x40] sm:$0xff]  ;;  %v212_v54 = vld [vmem:[%s5187_s1 + $0x48] sm:$0xff]  ;;  %v2867_v56 = vpack.c.bf16 %v260_v50, %v259_v49  ;;  %v229_v58 = vld [vmem:[%s5187_s1 + $0xd0] sm:$0xff] }
   0xe   :  { %2832 = vmatprep.subr.bf16.mxu0 %v2831_v39  ;;  %v243_v55 = vld [vmem:[%s5187_s1 + $0x140] sm:$0xff]  ;;  %v244_v57 = vld [vmem:[%s5187_s1 + $0x148] sm:$0xff]  ;;  %v230_v59 = vld [vmem:[%s5187_s1 + $0xd8] sm:$0xff]  ;;  %v2837_v62 = vpack.c.bf16 %v212_v54, %v211_v53 }
   0xf   :  { %2862 = vmatpush3.bf16.msra.mxu1 %v2861_v38  ;;  %v261_v60 = vld [vmem:[%s5187_s1 + $0x1d0] sm:$0xff]  ;;  %v262_v61 = vld [vmem:[%s5187_s1 + $0x1d8] sm:$0xff]  ;;  %v2869_v63 = vpack.c.bf16 %v244_v57, %v243_v55  ;;  %v2839_v0 = vpack.c.bf16 %v230_v59, %v229_v58  ;;  %v231_v6 = vld [vmem:[%s5187_s1 + $0xe0] sm:$0xff] }
  0x10   :  { %2864 = vmatprep.subr.bf16.mxu1 %v2863_v43  ;;  %v213_v1 = vld [vmem:[%s5187_s1 + $0x50] sm:$0xff]  ;;  %v214_v2 = vld [vmem:[%s5187_s1 + $0x58] sm:$0xff]  ;;  %v2871_v4 = vpack.c.bf16 %v262_v61, %v261_v60  ;;  %v232_v7 = vld [vmem:[%s5187_s1 + $0xe8] sm:$0xff] }
  0x11   :  { %2834 = vmatpush3.bf16.msra.mxu0 %v2833_v48  ;;  %v245_v3 = vld [vmem:[%s5187_s1 + $0x150] sm:$0xff]  ;;  %v246_v5 = vld [vmem:[%s5187_s1 + $0x158] sm:$0xff]  ;;  %v263_v8 = vld [vmem:[%s5187_s1 + $0x1e0] sm:$0xff]  ;;  %v2841_v10 = vpack.c.bf16 %v214_v2, %v213_v1  ;;  %v2843_v14 = vpack.c.bf16 %v232_v7, %v231_v6 }
  0x12   :  { %2836 = vmatprep.subr.bf16.mxu0 %v2835_v52  ;;  %v264_v9 = vld [vmem:[%s5187_s1 + $0x1e8] sm:$0xff]  ;;  %v215_v11 = vld [vmem:[%s5187_s1 + $0x60] sm:$0xff]  ;;  %v2873_v13 = vpack.c.bf16 %v246_v5, %v245_v3  ;;  %v233_v19 = vld [vmem:[%s5187_s1 + $0xf0] sm:$0xff] }
  0x13   :  { %2866 = vmatpush3.bf16.msra.mxu1 %v2865_v51  ;;  %v15_v12 = vld [vmem:[%s5188_s0 + $0x8] sm:$0xff]  ;;  %v247_v16 = vld [vmem:[%s5187_s1 + $0x160] sm:$0xff]  ;;  %v2875_v18 = vpack.c.bf16 %v264_v9, %v263_v8  ;;  %v234_v20 = vld [vmem:[%s5187_s1 + $0xf8] sm:$0xff] }
  0x14   :  { %2868 = vmatprep.subr.bf16.mxu1 %v2867_v56  ;;  %v216_v15 = vld [vmem:[%s5187_s1 + $0x68] sm:$0xff]  ;;  %706 = vmatprep.mubr.f32.mxu0 %v15_v12  ;;  %v17_v21 = vld [vmem:[%s5188_s0 + $0x18] sm:$0xff]  ;;  %v265_v22 = vld [vmem:[%s5187_s1 + $0x1f0] sm:$0xff]  ;;  %v2847_v26 = vpack.c.bf16 %v234_v20, %v233_v19 }
  0x15   :  { %2838 = vmatpush3.bf16.msra.mxu0 %v2837_v62  ;;  %v248_v17 = vld [vmem:[%s5187_s1 + $0x168] sm:$0xff]  ;;  %v266_v23 = vld [vmem:[%s5187_s1 + $0x1f8] sm:$0xff]  ;;  %806 = vmatprep.mubr.f32.mxu1 %v17_v21  ;;  %v2845_v24 = vpack.c.bf16 %v216_v15, %v215_v11  ;;  %v217_v27 = vld [vmem:[%s5187_s1 + $0x70] sm:$0xff] }
  0x16   :  { %2840 = vmatprep.subr.bf16.mxu0 %v2839_v0  ;;  %v2877_v25 = vpack.c.bf16 %v248_v17, %v247_v16  ;;  %v218_v28 = vld [vmem:[%s5187_s1 + $0x78] sm:$0xff]  ;;  %v249_v29 = vld [vmem:[%s5187_s1 + $0x170] sm:$0xff]  ;;  %v2879_v30 = vpack.c.bf16 %v266_v23, %v265_v22  ;;  %v283_v32 = vld [vmem:[%s5187_s1 + $0x280] sm:$0xff] }
  0x17   :  { %2870 = vmatpush3.bf16.msra.mxu1 %v2869_v63  ;;  %v250_v31 = vld [vmem:[%s5187_s1 + $0x178] sm:$0xff]  ;;  %v284_v33 = vld [vmem:[%s5187_s1 + $0x288] sm:$0xff]  ;;  %v315_v34 = vld [vmem:[%s5187_s1 + $0x380] sm:$0xff]  ;;  %v2849_v36 = vpack.c.bf16 %v218_v28, %v217_v27 }
  0x18   :  { %2872 = vmatprep.subr.bf16.mxu1 %v2871_v4  ;;  %v316_v35 = vld [vmem:[%s5187_s1 + $0x388] sm:$0xff]  ;;  %v2881_v37 = vpack.c.bf16 %v250_v31, %v249_v29  ;;  %v2883_v38 = vpack.c.bf16 %v284_v33, %v283_v32  ;;  %v267_v39 = vld [vmem:[%s5187_s1 + $0x200] sm:$0xff]  ;;  %v285_v44 = vld [vmem:[%s5187_s1 + $0x290] sm:$0xff] }
  0x19   :  { %2842 = vmatpush3.bf16.msra.mxu0 %v2841_v10  ;;  %v268_v40 = vld [vmem:[%s5187_s1 + $0x208] sm:$0xff]  ;;  %v299_v41 = vld [vmem:[%s5187_s1 + $0x300] sm:$0xff]  ;;  %v2915_v42 = vpack.c.bf16 %v316_v35, %v315_v34  ;;  %v286_v45 = vld [vmem:[%s5187_s1 + $0x298] sm:$0xff] }
  0x1a   :  { %2844 = vmatprep.subr.bf16.mxu0 %v2843_v14  ;;  %v300_v43 = vld [vmem:[%s5187_s1 + $0x308] sm:$0xff]  ;;  %v317_v46 = vld [vmem:[%s5187_s1 + $0x390] sm:$0xff]  ;;  %v318_v47 = vld [vmem:[%s5187_s1 + $0x398] sm:$0xff]  ;;  %v2885_v49 = vpack.c.bf16 %v268_v40, %v267_v39  ;;  %v2887_v52 = vpack.c.bf16 %v286_v45, %v285_v44 }
  0x1b   :  { %2874 = vmatpush3.bf16.msra.mxu1 %v2873_v13  ;;  %v14_v48 = vld [vmem:[%s5188_s0] sm:$0xff]  ;;  %v16_v50 = vld [vmem:[%s5188_s0 + $0x10] sm:$0xff]  ;;  %v2917_v51 = vpack.c.bf16 %v300_v43, %v299_v41  ;;  %v270_v54 = vld [vmem:[%s5187_s1 + $0x218] sm:$0xff]  ;;  %v2919_v56 = vpack.c.bf16 %v318_v47, %v317_v46 }
  0x1c   :  { %2876 = vmatprep.subr.bf16.mxu1 %v2875_v18  ;;  %v269_v53 = vld [vmem:[%s5187_s1 + $0x210] sm:$0xff]  ;;  %v302_v57 = vld [vmem:[%s5187_s1 + $0x318] sm:$0xff]  ;;  %v287_v58 = vld [vmem:[%s5187_s1 + $0x2a0] sm:$0xff] }
  0x1d   :  { %2846 = vmatpush3.bf16.msra.mxu0 %v2845_v24  ;;  %v301_v55 = vld [vmem:[%s5187_s1 + $0x310] sm:$0xff]  ;;  %v288_v59 = vld [vmem:[%s5187_s1 + $0x2a8] sm:$0xff]  ;;  %v42_v60 = vld [vmem:[%s5188_s0 + $0xe0] sm:$0xff]  ;;  %v2889_v63 = vpack.c.bf16 %v270_v54, %v269_v53 }
  0x1e   :  { %2848 = vmatprep.subr.bf16.mxu0 %v2847_v26  ;;  %v319_v61 = vld [vmem:[%s5187_s1 + $0x3a0] sm:$0xff]  ;;  %v320_v62 = vld [vmem:[%s5187_s1 + $0x3a8] sm:$0xff]  ;;  %v41_v0 = vld [vmem:[%s5188_s0 + $0xd8] sm:$0xff]  ;;  %v2921_v3 = vpack.c.bf16 %v302_v57, %v301_v55  ;;  %v2891_v4 = vpack.c.bf16 %v288_v59, %v287_v58 }
  0x1f   :  { %2878 = vmatpush3.bf16.msra.mxu1 %v2877_v25  ;;  %v44_v1 = vld [vmem:[%s5188_s0 + $0xf0] sm:$0xff]  ;;  %v271_v2 = vld [vmem:[%s5187_s1 + $0x220] sm:$0xff]  ;;  %v272_v5 = vld [vmem:[%s5187_s1 + $0x228] sm:$0xff]  ;;  %v2923_v8 = vpack.c.bf16 %v320_v62, %v319_v61 }
  0x20   :  { %2880 = vmatprep.subr.bf16.mxu1 %v2879_v30  ;;  %v43_v6 = vld [vmem:[%s5188_s0 + $0xe8] sm:$0xff]  ;;  %v303_v7 = vld [vmem:[%s5187_s1 + $0x320] sm:$0xff]  ;;  %v289_v10 = vld [vmem:[%s5187_s1 + $0x2b0] sm:$0xff]  ;;  %v2893_v15 = vpack.c.bf16 %v272_v5, %v271_v2 }
  0x21   :  { %2850 = vmatpush3.bf16.msra.mxu0 %v2849_v36  ;;  %v304_v9 = vld [vmem:[%s5187_s1 + $0x328] sm:$0xff]  ;;  %v290_v11 = vld [vmem:[%s5187_s1 + $0x2b8] sm:$0xff]  ;;  %v321_v13 = vld [vmem:[%s5187_s1 + $0x3b0] sm:$0xff] }
  0x22   :  { %2884 = vmatprep.subr.bf16.mxu0 %v2883_v38  ;;  %v69_v12 = vld [vmem:[%s5188_s0 + $0x1b8] sm:$0xff]  ;;  %v68_v16 = vld [vmem:[%s5188_s0 + $0x1b0] sm:$0xff]  ;;  %v71_v17 = vld [vmem:[%s5188_s0 + $0x1c8] sm:$0xff]  ;;  %v2925_v19 = vpack.c.bf16 %v304_v9, %v303_v7  ;;  %v2895_v20 = vpack.c.bf16 %v290_v11, %v289_v10 }
  0x23   :  { %2882 = vmatpush3.bf16.msra.mxu1 %v2881_v37  ;;  %v322_v14 = vld [vmem:[%s5187_s1 + $0x3b8] sm:$0xff]  ;;  %v273_v18 = vld [vmem:[%s5187_s1 + $0x230] sm:$0xff]  ;;  %v70_v22 = vld [vmem:[%s5188_s0 + $0x1c0] sm:$0xff] }
  0x24   :  { %2916 = vmatprep.subr.bf16.mxu1 %v2915_v42  ;;  %707 = vmatmul.mubr.f32.vlgmr.msra.gmra.mrb[0].mxu0 %v14_v48  ;;  %v274_v21 = vld [vmem:[%s5187_s1 + $0x238] sm:$0xff]  ;;  %v305_v23 = vld [vmem:[%s5187_s1 + $0x330] sm:$0xff]  ;;  %v2927_v24 = vpack.c.bf16 %v322_v14, %v321_v13  ;;  %v291_v26 = vld [vmem:[%s5187_s1 + $0x2c0] sm:$0xff] }
  0x25   :  { %2886 = vmatpush3.bf16.msra.mxu0 %v2885_v49  ;;  %711 = vmatprep.mubr.f32.mxu0 %v42_v60  ;;  %v306_v25 = vld [vmem:[%s5187_s1 + $0x338] sm:$0xff]  ;;  %v292_v27 = vld [vmem:[%s5187_s1 + $0x2c8] sm:$0xff]  ;;  %v96_v28 = vld [vmem:[%s5188_s0 + $0x290] sm:$0xff]  ;;  %v2897_v31 = vpack.c.bf16 %v274_v21, %v273_v18 }
  0x26   :  { %807 = vmatmul.mubr.f32.vlgmr.msra.gmra.mrb[0].mxu1 %v16_v50  ;;  %2888 = vmatprep.subr.bf16.mxu0 %v2887_v52  ;;  %v323_v29 = vld [vmem:[%s5187_s1 + $0x3c0] sm:$0xff]  ;;  %v324_v30 = vld [vmem:[%s5187_s1 + $0x3c8] sm:$0xff]  ;;  %v2929_v35 = vpack.c.bf16 %v306_v25, %v305_v23  ;;  %v2899_v36 = vpack.c.bf16 %v292_v27, %v291_v26  ;;  %v97_v38 = vld [vmem:[%s5188_s0 + $0x298] sm:$0xff] }
  0x27   :  { %2918 = vmatpush3.bf16.msra.mxu1 %v2917_v51  ;;  %811 = vmatprep.mubr.f32.mxu1 %v44_v1  ;;  %v95_v32 = vld [vmem:[%s5188_s0 + $0x288] sm:$0xff]  ;;  %v98_v33 = vld [vmem:[%s5188_s0 + $0x2a0] sm:$0xff]  ;;  %v2931_v40 = vpack.c.bf16 %v324_v30, %v323_v29  ;;  %v293_v42 = vld [vmem:[%s5187_s1 + $0x2d0] sm:$0xff] }
  0x28   :  { %2920 = vmatprep.subr.bf16.mxu1 %v2919_v56  ;;  %712 = vmatmul.mubr.f32.gmra.mrb[2].mxu0 %v41_v0  ;;  %v275_v34 = vld [vmem:[%s5187_s1 + $0x240] sm:$0xff]  ;;  %v276_v37 = vld [vmem:[%s5187_s1 + $0x248] sm:$0xff]  ;;  %v294_v43 = vld [vmem:[%s5187_s1 + $0x2d8] sm:$0xff] }
  0x29   :  { %2890 = vmatpush3.bf16.msra.mxu0 %v2889_v63  ;;  %716 = vmatprep.mubr.f32.mxu0 %v69_v12  ;;  %v307_v39 = vld [vmem:[%s5187_s1 + $0x340] sm:$0xff]  ;;  %v308_v41 = vld [vmem:[%s5187_s1 + $0x348] sm:$0xff]  ;;  %v325_v45 = vld [vmem:[%s5187_s1 + $0x3d0] sm:$0xff]  ;;  %v2901_v47 = vpack.c.bf16 %v276_v37, %v275_v34  ;;  %v2903_v52 = vpack.c.bf16 %v294_v43, %v293_v42 }
  0x2a   :  { %812 = vmatmul.mubr.f32.gmra.mrb[2].mxu1 %v43_v6  ;;  %2892 = vmatprep.subr.bf16.mxu0 %v2891_v4  ;;  %v123_v44 = vld [vmem:[%s5188_s0 + $0x368] sm:$0xff]  ;;  %v326_v46 = vld [vmem:[%s5187_s1 + $0x3d8] sm:$0xff]  ;;  %v122_v48 = vld [vmem:[%s5188_s0 + $0x360] sm:$0xff]  ;;  %v2933_v51 = vpack.c.bf16 %v308_v41, %v307_v39 }
  0x2b   :  { %2922 = vmatpush3.bf16.msra.mxu1 %v2921_v3  ;;  %816 = vmatprep.mubr.f32.mxu1 %v71_v17  ;;  %v125_v49 = vld [vmem:[%s5188_s0 + $0x378] sm:$0xff]  ;;  %v277_v50 = vld [vmem:[%s5187_s1 + $0x250] sm:$0xff]  ;;  %v2935_v56 = vpack.c.bf16 %v326_v46, %v325_v45  ;;  %v295_v58 = vld [vmem:[%s5187_s1 + $0x2e0] sm:$0xff] }
  0x2c   :  { %2924 = vmatprep.subr.bf16.mxu1 %v2923_v8  ;;  %717 = vmatmul.mubr.f32.gmra.mrb[4].mxu0 %v68_v16  ;;  %v278_v53 = vld [vmem:[%s5187_s1 + $0x258] sm:$0xff]  ;;  %v124_v54 = vld [vmem:[%s5188_s0 + $0x370] sm:$0xff]  ;;  %v296_v59 = vld [vmem:[%s5187_s1 + $0x2e8] sm:$0xff] }
  0x2d   :  { %2894 = vmatpush3.bf16.msra.mxu0 %v2893_v15  ;;  %721 = vmatprep.mubr.f32.mxu0 %v96_v28  ;;  %v309_v55 = vld [vmem:[%s5187_s1 + $0x350] sm:$0xff]  ;;  %v310_v57 = vld [vmem:[%s5187_s1 + $0x358] sm:$0xff]  ;;  %v150_v60 = vld [vmem:[%s5188_s0 + $0x440] sm:$0xff]  ;;  %v2905_v63 = vpack.c.bf16 %v278_v53, %v277_v50  ;;  %v2907_v4 = vpack.c.bf16 %v296_v59, %v295_v58 }
  0x2e   :  { %817 = vmatmul.mubr.f32.gmra.mrb[4].mxu1 %v70_v22  ;;  %2896 = vmatprep.subr.bf16.mxu0 %v2895_v20  ;;  %v327_v61 = vld [vmem:[%s5187_s1 + $0x3e0] sm:$0xff]  ;;  %v328_v62 = vld [vmem:[%s5187_s1 + $0x3e8] sm:$0xff]  ;;  %v149_v0 = vld [vmem:[%s5188_s0 + $0x438] sm:$0xff]  ;;  %v2937_v3 = vpack.c.bf16 %v310_v57, %v309_v55 }
  0x2f   :  { %2926 = vmatpush3.bf16.msra.mxu1 %v2925_v19  ;;  %821 = vmatprep.mubr.f32.mxu1 %v98_v33  ;;  %v152_v1 = vld [vmem:[%s5188_s0 + $0x450] sm:$0xff]  ;;  %v279_v2 = vld [vmem:[%s5187_s1 + $0x260] sm:$0xff]  ;;  %v280_v5 = vld [vmem:[%s5187_s1 + $0x268] sm:$0xff]  ;;  %v2939_v8 = vpack.c.bf16 %v328_v62, %v327_v61 }
  0x30   :  { %2928 = vmatprep.subr.bf16.mxu1 %v2927_v24  ;;  %722 = vmatmul.mubr.f32.gmra.mrb[6].mxu0 %v95_v32  ;;  %v151_v6 = vld [vmem:[%s5188_s0 + $0x448] sm:$0xff]  ;;  %v311_v7 = vld [vmem:[%s5187_s1 + $0x360] sm:$0xff]  ;;  %v297_v10 = vld [vmem:[%s5187_s1 + $0x2f0] sm:$0xff]  ;;  %v2909_v15 = vpack.c.bf16 %v280_v5, %v279_v2 }
  0x31   :  { %2898 = vmatpush3.bf16.msra.mxu0 %v2897_v31  ;;  %726 = vmatprep.mubr.f32.mxu0 %v123_v44  ;;  %v312_v9 = vld [vmem:[%s5187_s1 + $0x368] sm:$0xff]  ;;  %v298_v11 = vld [vmem:[%s5187_s1 + $0x2f8] sm:$0xff]  ;;  %v329_v13 = vld [vmem:[%s5187_s1 + $0x3f0] sm:$0xff] }
  0x32   :  { %822 = vmatmul.mubr.f32.gmra.mrb[6].mxu1 %v97_v38  ;;  %2900 = vmatprep.subr.bf16.mxu0 %v2899_v36  ;;  %v177_v12 = vld [vmem:[%s5188_s0 + $0x518] sm:$0xff]  ;;  %v176_v16 = vld [vmem:[%s5188_s0 + $0x510] sm:$0xff]  ;;  %v179_v17 = vld [vmem:[%s5188_s0 + $0x528] sm:$0xff]  ;;  %v2941_v19 = vpack.c.bf16 %v312_v9, %v311_v7  ;;  %v2911_v20 = vpack.c.bf16 %v298_v11, %v297_v10 }
  0x33   :  { %2930 = vmatpush3.bf16.msra.mxu1 %v2929_v35  ;;  %826 = vmatprep.mubr.f32.mxu1 %v125_v49  ;;  %v330_v14 = vld [vmem:[%s5187_s1 + $0x3f8] sm:$0xff]  ;;  %v281_v18 = vld [vmem:[%s5187_s1 + $0x270] sm:$0xff]  ;;  %v178_v22 = vld [vmem:[%s5188_s0 + $0x520] sm:$0xff] }
  0x34   :  { %2932 = vmatprep.subr.bf16.mxu1 %v2931_v40  ;;  %727 = vmatmul.mubr.f32.gmra.mrb[8].mxu0 %v122_v48  ;;  %v282_v21 = vld [vmem:[%s5187_s1 + $0x278] sm:$0xff]  ;;  %v313_v23 = vld [vmem:[%s5187_s1 + $0x370] sm:$0xff]  ;;  %v2943_v24 = vpack.c.bf16 %v330_v14, %v329_v13  ;;  %v347_v26 = vld [vmem:[%s5187_s1 + $0x480] sm:$0xff] }
  0x35   :  { %2902 = vmatpush3.bf16.msra.mxu0 %v2901_v47  ;;  %731 = vmatprep.mubr.f32.mxu0 %v150_v60  ;;  %v314_v25 = vld [vmem:[%s5187_s1 + $0x378] sm:$0xff]  ;;  %v348_v27 = vld [vmem:[%s5187_s1 + $0x488] sm:$0xff]  ;;  %v379_v29 = vld [vmem:[%s5187_s1 + $0x580] sm:$0xff]  ;;  %v2913_v31 = vpack.c.bf16 %v282_v21, %v281_v18 }
  0x36   :  { %827 = vmatmul.mubr.f32.gmra.mrb[8].mxu1 %v124_v54  ;;  %2904 = vmatprep.subr.bf16.mxu0 %v2903_v52  ;;  %v19_v28 = vld [vmem:[%s5188_s0 + $0x28] sm:$0xff]  ;;  %v21_v32 = vld [vmem:[%s5188_s0 + $0x38] sm:$0xff]  ;;  %v2945_v33 = vpack.c.bf16 %v314_v25, %v313_v23  ;;  %v2947_v34 = vpack.c.bf16 %v348_v27, %v347_v26  ;;  %v331_v35 = vld [vmem:[%s5187_s1 + $0x400] sm:$0xff] }
  0x37   :  { %2934 = vmatpush3.bf16.msra.mxu1 %v2933_v51  ;;  %831 = vmatprep.mubr.f32.mxu1 %v152_v1  ;;  %v380_v30 = vld [vmem:[%s5187_s1 + $0x588] sm:$0xff]  ;;  %v363_v38 = vld [vmem:[%s5187_s1 + $0x500] sm:$0xff]  ;;  %v349_v41 = vld [vmem:[%s5187_s1 + $0x490] sm:$0xff] }
  0x38   :  { %2936 = vmatprep.subr.bf16.mxu1 %v2935_v56  ;;  %732 = vmatmul.mubr.f32.gmra.mrb[10].mxu0 %v149_v0  ;;  %v332_v36 = vld [vmem:[%s5187_s1 + $0x408] sm:$0xff]  ;;  %v2979_v37 = vpack.c.bf16 %v380_v30, %v379_v29  ;;  %v18_v40 = vld [vmem:[%s5188_s0 + $0x20] sm:$0xff]  ;;  %v350_v42 = vld [vmem:[%s5187_s1 + $0x498] sm:$0xff] }
  0x39   :  { %2906 = vmatpush3.bf16.msra.mxu0 %v2905_v63  ;;  %736 = vmatprep.mubr.f32.mxu0 %v177_v12  ;;  %v364_v39 = vld [vmem:[%s5187_s1 + $0x508] sm:$0xff]  ;;  %v2949_v43 = vpack.c.bf16 %v332_v36, %v331_v35  ;;  %v20_v44 = vld [vmem:[%s5188_s0 + $0x30] sm:$0xff]  ;;  %v382_v46 = vld [vmem:[%s5187_s1 + $0x598] sm:$0xff]  ;;  %v2951_v52 = vpack.c.bf16 %v350_v42, %v349_v41 }
  0x3a   :  { %832 = vmatmul.mubr.f32.gmra.mrb[10].mxu1 %v151_v6  ;;  %2908 = vmatprep.subr.bf16.mxu0 %v2907_v4  ;;  %v381_v45 = vld [vmem:[%s5187_s1 + $0x590] sm:$0xff]  ;;  %v46_v47 = vld [vmem:[%s5188_s0 + $0x100] sm:$0xff]  ;;  %v2981_v48 = vpack.c.bf16 %v364_v39, %v363_v38  ;;  %v334_v50 = vld [vmem:[%s5187_s1 + $0x418] sm:$0xff] }
  0x3b   :  { %2938 = vmatpush3.bf16.msra.mxu1 %v2937_v3  ;;  %836 = vmatprep.mubr.f32.mxu1 %v179_v17  ;;  %v333_v49 = vld [vmem:[%s5187_s1 + $0x410] sm:$0xff]  ;;  %v45_v51 = vld [vmem:[%s5188_s0 + $0xf8] sm:$0xff]  ;;  %v2983_v56 = vpack.c.bf16 %v382_v46, %v381_v45  ;;  %v351_v57 = vld [vmem:[%s5187_s1 + $0x4a0] sm:$0xff] }
  0x3c   :  { %2940 = vmatprep.subr.bf16.mxu1 %v2939_v8  ;;  %737 = vmatmul.mubr.f32.gmra.mrb[12].mxu0 %v176_v16  ;;  %v365_v53 = vld [vmem:[%s5187_s1 + $0x510] sm:$0xff]  ;;  %v366_v54 = vld [vmem:[%s5187_s1 + $0x518] sm:$0xff]  ;;  %v352_v58 = vld [vmem:[%s5187_s1 + $0x4a8] sm:$0xff]  ;;  %v2953_v59 = vpack.c.bf16 %v334_v50, %v333_v49 }
  0x3d   :  { %2910 = vmatpush3.bf16.msra.mxu0 %v2909_v15  ;;  %906 = vmatprep.mubr.f32.mxu0 %v19_v28  ;;  %v48_v55 = vld [vmem:[%s5188_s0 + $0x110] sm:$0xff]  ;;  %v47_v60 = vld [vmem:[%s5188_s0 + $0x108] sm:$0xff]  ;;  %v383_v61 = vld [vmem:[%s5187_s1 + $0x5a0] sm:$0xff]  ;;  %v2985_v0 = vpack.c.bf16 %v366_v54, %v365_v53  ;;  %v2955_v4 = vpack.c.bf16 %v352_v58, %v351_v57 }
  0x3e   :  { %837 = vmatmul.mubr.f32.gmra.mrb[12].mxu1 %v178_v22  ;;  %2912 = vmatprep.subr.bf16.mxu0 %v2911_v20  ;;  %v384_v62 = vld [vmem:[%s5187_s1 + $0x5a8] sm:$0xff]  ;;  %v73_v63 = vld [vmem:[%s5188_s0 + $0x1d8] sm:$0xff]  ;;  %v335_v1 = vld [vmem:[%s5187_s1 + $0x420] sm:$0xff] }
  0x3f   :  { %2942 = vmatpush3.bf16.msra.mxu1 %v2941_v19  ;;  %1006 = vmatprep.mubr.f32.mxu1 %v21_v32  ;;  %v336_v2 = vld [vmem:[%s5187_s1 + $0x428] sm:$0xff]  ;;  %v72_v3 = vld [vmem:[%s5188_s0 + $0x1d0] sm:$0xff]  ;;  %v367_v5 = vld [vmem:[%s5187_s1 + $0x520] sm:$0xff]  ;;  %v2987_v8 = vpack.c.bf16 %v384_v62, %v383_v61 }
  0x40   :  { %2944 = vmatprep.subr.bf16.mxu1 %v2943_v24  ;;  %v368_v6 = vld [vmem:[%s5187_s1 + $0x528] sm:$0xff]  ;;  %v353_v9 = vld [vmem:[%s5187_s1 + $0x4b0] sm:$0xff]  ;;  %v354_v10 = vld [vmem:[%s5187_s1 + $0x4b8] sm:$0xff]  ;;  %v2957_v11 = vpack.c.bf16 %v336_v2, %v335_v1 }
  0x41   :  { %2914 = vmatpush3.bf16.msra.mxu0 %v2913_v31  ;;  %v75_v7 = vld [vmem:[%s5188_s0 + $0x1e8] sm:$0xff]  ;;  %v74_v12 = vld [vmem:[%s5188_s0 + $0x1e0] sm:$0xff]  ;;  %v385_v13 = vld [vmem:[%s5187_s1 + $0x5b0] sm:$0xff]  ;;  %v2989_v16 = vpack.c.bf16 %v368_v6, %v367_v5  ;;  %v2959_v20 = vpack.c.bf16 %v354_v10, %v353_v9 }
  0x42   :  { %2948 = vmatprep.subr.bf16.mxu0 %v2947_v34  ;;  %v386_v14 = vld [vmem:[%s5187_s1 + $0x5b8] sm:$0xff]  ;;  %v100_v15 = vld [vmem:[%s5188_s0 + $0x2b0] sm:$0xff]  ;;  %v99_v19 = vld [vmem:[%s5188_s0 + $0x2a8] sm:$0xff] }
  0x43   :  { %2946 = vmatpush3.bf16.msra.mxu1 %v2945_v33  ;;  %v337_v17 = vld [vmem:[%s5187_s1 + $0x430] sm:$0xff]  ;;  %v338_v18 = vld [vmem:[%s5187_s1 + $0x438] sm:$0xff]  ;;  %v102_v23 = vld [vmem:[%s5188_s0 + $0x2c0] sm:$0xff]  ;;  %v2991_v24 = vpack.c.bf16 %v386_v14, %v385_v13 }
  0x44   :  { %2980 = vmatprep.subr.bf16.mxu1 %v2979_v37  ;;  %907 = vmatmul.mubr.f32.vlgmr.msra.gmra.mrb[14].mxu0 %v18_v40  ;;  %v369_v21 = vld [vmem:[%s5187_s1 + $0x530] sm:$0xff]  ;;  %v370_v22 = vld [vmem:[%s5187_s1 + $0x538] sm:$0xff]  ;;  %v355_v25 = vld [vmem:[%s5187_s1 + $0x4c0] sm:$0xff]  ;;  %v2961_v27 = vpack.c.bf16 %v338_v18, %v337_v17 }
  0x45   :  { %2950 = vmatpush3.bf16.msra.mxu0 %v2949_v43  ;;  %911 = vmatprep.mubr.f32.mxu0 %v46_v47  ;;  %v356_v26 = vld [vmem:[%s5187_s1 + $0x4c8] sm:$0xff]  ;;  %v101_v28 = vld [vmem:[%s5188_s0 + $0x2b8] sm:$0xff]  ;;  %v387_v29 = vld [vmem:[%s5187_s1 + $0x5c0] sm:$0xff]  ;;  %v2993_v32 = vpack.c.bf16 %v370_v22, %v369_v21 }
  0x46   :  { %1007 = vmatmul.mubr.f32.vlgmr.msra.gmra.mrb[14].mxu1 %v20_v44  ;;  %2952 = vmatprep.subr.bf16.mxu0 %v2951_v52  ;;  %v388_v30 = vld [vmem:[%s5187_s1 + $0x5c8] sm:$0xff]  ;;  %v339_v33 = vld [vmem:[%s5187_s1 + $0x440] sm:$0xff]  ;;  %v2963_v36 = vpack.c.bf16 %v356_v26, %v355_v25  ;;  %v129_v39 = vld [vmem:[%s5188_s0 + $0x398] sm:$0xff] }
  0x47   :  { %2982 = vmatpush3.bf16.msra.mxu1 %v2981_v48  ;;  %1011 = vmatprep.mubr.f32.mxu1 %v48_v55  ;;  %v127_v31 = vld [vmem:[%s5188_s0 + $0x388] sm:$0xff]  ;;  %v126_v35 = vld [vmem:[%s5188_s0 + $0x380] sm:$0xff]  ;;  %v2995_v40 = vpack.c.bf16 %v388_v30, %v387_v29  ;;  %v357_v41 = vld [vmem:[%s5187_s1 + $0x4d0] sm:$0xff] }
  0x48   :  { %912 = vmatmul.mubr.f32.gmra.mrb[16].mxu0 %v45_v51  ;;  %2984 = vmatprep.subr.bf16.mxu1 %v2983_v56  ;;  %v340_v34 = vld [vmem:[%s5187_s1 + $0x448] sm:$0xff]  ;;  %v371_v37 = vld [vmem:[%s5187_s1 + $0x540] sm:$0xff]  ;;  %v358_v42 = vld [vmem:[%s5187_s1 + $0x4d8] sm:$0xff] }
  0x49   :  { %2954 = vmatpush3.bf16.msra.mxu0 %v2953_v59  ;;  %916 = vmatprep.mubr.f32.mxu0 %v73_v63  ;;  %v372_v38 = vld [vmem:[%s5187_s1 + $0x548] sm:$0xff]  ;;  %v2965_v43 = vpack.c.bf16 %v340_v34, %v339_v33  ;;  %v128_v44 = vld [vmem:[%s5188_s0 + $0x390] sm:$0xff]  ;;  %v390_v46 = vld [vmem:[%s5187_s1 + $0x5d8] sm:$0xff]  ;;  %v2967_v52 = vpack.c.bf16 %v358_v42, %v357_v41 }
  0x4a   :  { %1012 = vmatmul.mubr.f32.gmra.mrb[16].mxu1 %v47_v60  ;;  %2956 = vmatprep.subr.bf16.mxu0 %v2955_v4  ;;  %v389_v45 = vld [vmem:[%s5187_s1 + $0x5d0] sm:$0xff]  ;;  %v154_v47 = vld [vmem:[%s5188_s0 + $0x460] sm:$0xff]  ;;  %v2997_v48 = vpack.c.bf16 %v372_v38, %v371_v37  ;;  %v342_v50 = vld [vmem:[%s5187_s1 + $0x458] sm:$0xff] }
  0x4b   :  { %2986 = vmatpush3.bf16.msra.mxu1 %v2985_v0  ;;  %1016 = vmatprep.mubr.f32.mxu1 %v75_v7  ;;  %v341_v49 = vld [vmem:[%s5187_s1 + $0x450] sm:$0xff]  ;;  %v153_v51 = vld [vmem:[%s5188_s0 + $0x458] sm:$0xff]  ;;  %v155_v56 = vld [vmem:[%s5188_s0 + $0x468] sm:$0xff]  ;;  %v2999_v57 = vpack.c.bf16 %v390_v46, %v389_v45 }
  0x4c   :  { %917 = vmatmul.mubr.f32.gmra.mrb[18].mxu0 %v72_v3  ;;  %2988 = vmatprep.subr.bf16.mxu1 %v2987_v8  ;;  %v156_v53 = vld [vmem:[%s5188_s0 + $0x470] sm:$0xff]  ;;  %v374_v55 = vld [vmem:[%s5187_s1 + $0x558] sm:$0xff]  ;;  %v359_v58 = vld [vmem:[%s5187_s1 + $0x4e0] sm:$0xff]  ;;  %v2969_v60 = vpack.c.bf16 %v342_v50, %v341_v49 }
  0x4d   :  { %2958 = vmatpush3.bf16.msra.mxu0 %v2957_v11  ;;  %921 = vmatprep.mubr.f32.mxu0 %v100_v15  ;;  %v373_v54 = vld [vmem:[%s5187_s1 + $0x550] sm:$0xff]  ;;  %v360_v59 = vld [vmem:[%s5187_s1 + $0x4e8] sm:$0xff]  ;;  %v181_v61 = vld [vmem:[%s5188_s0 + $0x538] sm:$0xff] }
  0x4e   :  { %1017 = vmatmul.mubr.f32.gmra.mrb[18].mxu1 %v74_v12  ;;  %2960 = vmatprep.subr.bf16.mxu0 %v2959_v20  ;;  %v391_v62 = vld [vmem:[%s5187_s1 + $0x5e0] sm:$0xff]  ;;  %v392_v63 = vld [vmem:[%s5187_s1 + $0x5e8] sm:$0xff]  ;;  %v3001_v0 = vpack.c.bf16 %v374_v55, %v373_v54  ;;  %v2971_v4 = vpack.c.bf16 %v360_v59, %v359_v58  ;;  %v361_v6 = vld [vmem:[%s5187_s1 + $0x4f0] sm:$0xff] }
  0x4f   :  { %2990 = vmatpush3.bf16.msra.mxu1 %v2989_v16  ;;  %1021 = vmatprep.mubr.f32.mxu1 %v102_v23  ;;  %v343_v1 = vld [vmem:[%s5187_s1 + $0x460] sm:$0xff]  ;;  %v344_v2 = vld [vmem:[%s5187_s1 + $0x468] sm:$0xff]  ;;  %v362_v7 = vld [vmem:[%s5187_s1 + $0x4f8] sm:$0xff]  ;;  %v3003_v9 = vpack.c.bf16 %v392_v63, %v391_v62 }
  0x50   :  { %922 = vmatmul.mubr.f32.gmra.mrb[20].mxu0 %v99_v19  ;;  %2992 = vmatprep.subr.bf16.mxu1 %v2991_v24  ;;  %v375_v3 = vld [vmem:[%s5187_s1 + $0x560] sm:$0xff]  ;;  %v376_v5 = vld [vmem:[%s5187_s1 + $0x568] sm:$0xff]  ;;  %v393_v10 = vld [vmem:[%s5187_s1 + $0x5f0] sm:$0xff]  ;;  %v2973_v13 = vpack.c.bf16 %v344_v2, %v343_v1  ;;  %v2975_v16 = vpack.c.bf16 %v362_v7, %v361_v6 }
  0x51   :  { %2962 = vmatpush3.bf16.msra.mxu0 %v2961_v27  ;;  %926 = vmatprep.mubr.f32.mxu0 %v127_v31  ;;  %v183_v8 = vld [vmem:[%s5188_s0 + $0x548] sm:$0xff]  ;;  %v394_v11 = vld [vmem:[%s5187_s1 + $0x5f8] sm:$0xff]  ;;  %v180_v12 = vld [vmem:[%s5188_s0 + $0x530] sm:$0xff]  ;;  %v3005_v15 = vpack.c.bf16 %v376_v5, %v375_v3 }
  0x52   :  { %1022 = vmatmul.mubr.f32.gmra.mrb[20].mxu1 %v101_v28  ;;  %2964 = vmatprep.subr.bf16.mxu0 %v2963_v36  ;;  %v182_v14 = vld [vmem:[%s5188_s0 + $0x540] sm:$0xff]  ;;  %v345_v17 = vld [vmem:[%s5187_s1 + $0x470] sm:$0xff]  ;;  %v346_v18 = vld [vmem:[%s5187_s1 + $0x478] sm:$0xff]  ;;  %v3007_v20 = vpack.c.bf16 %v394_v11, %v393_v10 }
  0x53   :  { %2994 = vmatpush3.bf16.msra.mxu1 %v2993_v32  ;;  %1026 = vmatprep.mubr.f32.mxu1 %v129_v39  ;;  %v377_v19 = vld [vmem:[%s5187_s1 + $0x570] sm:$0xff]  ;;  %v378_v21 = vld [vmem:[%s5187_s1 + $0x578] sm:$0xff]  ;;  %v411_v22 = vld [vmem:[%s5187_s1 + $0x680] sm:$0xff]  ;;  %v2977_v27 = vpack.c.bf16 %v346_v18, %v345_v17 }
  0x54   :  { %927 = vmatmul.mubr.f32.gmra.mrb[22].mxu0 %v126_v35  ;;  %2996 = vmatprep.subr.bf16.mxu1 %v2995_v40  ;;  %v412_v23 = vld [vmem:[%s5187_s1 + $0x688] sm:$0xff]  ;;  %v443_v25 = vld [vmem:[%s5187_s1 + $0x780] sm:$0xff]  ;;  %v25_v28 = vld [vmem:[%s5188_s0 + $0x58] sm:$0xff]  ;;  %v3009_v29 = vpack.c.bf16 %v378_v21, %v377_v19 }
  0x55   :  { %2966 = vmatpush3.bf16.msra.mxu0 %v2965_v43  ;;  %931 = vmatprep.mubr.f32.mxu0 %v154_v47  ;;  %v23_v24 = vld [vmem:[%s5188_s0 + $0x48] sm:$0xff]  ;;  %v3011_v30 = vpack.c.bf16 %v412_v23, %v411_v22  ;;  %v395_v31 = vld [vmem:[%s5187_s1 + $0x600] sm:$0xff]  ;;  %v413_v37 = vld [vmem:[%s5187_s1 + $0x690] sm:$0xff] }
  0x56   :  { %1027 = vmatmul.mubr.f32.gmra.mrb[22].mxu1 %v128_v44  ;;  %2968 = vmatprep.subr.bf16.mxu0 %v2967_v52  ;;  %v444_v26 = vld [vmem:[%s5187_s1 + $0x788] sm:$0xff]  ;;  %v427_v34 = vld [vmem:[%s5187_s1 + $0x700] sm:$0xff]  ;;  %v414_v38 = vld [vmem:[%s5187_s1 + $0x698] sm:$0xff] }
  0x57   :  { %2998 = vmatpush3.bf16.msra.mxu1 %v2997_v48  ;;  %1031 = vmatprep.mubr.f32.mxu1 %v156_v53  ;;  %v396_v32 = vld [vmem:[%s5187_s1 + $0x608] sm:$0xff]  ;;  %v3043_v33 = vpack.c.bf16 %v444_v26, %v443_v25  ;;  %v22_v36 = vld [vmem:[%s5188_s0 + $0x40] sm:$0xff]  ;;  %v24_v40 = vld [vmem:[%s5188_s0 + $0x50] sm:$0xff]  ;;  %v3015_v48 = vpack.c.bf16 %v414_v38, %v413_v37 }
  0x58   :  { %932 = vmatmul.mubr.f32.gmra.mrb[24].mxu0 %v153_v51  ;;  %3000 = vmatprep.subr.bf16.mxu1 %v2999_v57  ;;  %v428_v35 = vld [vmem:[%s5187_s1 + $0x708] sm:$0xff]  ;;  %v3013_v39 = vpack.c.bf16 %v396_v32, %v395_v31  ;;  %v445_v41 = vld [vmem:[%s5187_s1 + $0x790] sm:$0xff]  ;;  %v446_v42 = vld [vmem:[%s5187_s1 + $0x798] sm:$0xff] }
  0x59   :  { %2970 = vmatpush3.bf16.msra.mxu0 %v2969_v60  ;;  %936 = vmatprep.mubr.f32.mxu0 %v181_v61  ;;  %v50_v43 = vld [vmem:[%s5188_s0 + $0x120] sm:$0xff]  ;;  %v3045_v44 = vpack.c.bf16 %v428_v35, %v427_v34  ;;  %v397_v45 = vld [vmem:[%s5187_s1 + $0x610] sm:$0xff]  ;;  %v398_v46 = vld [vmem:[%s5187_s1 + $0x618] sm:$0xff]  ;;  %v3047_v52 = vpack.c.bf16 %v446_v42, %v445_v41 }
  0x5a   :  { %1032 = vmatmul.mubr.f32.gmra.mrb[24].mxu1 %v155_v56  ;;  %2972 = vmatprep.subr.bf16.mxu0 %v2971_v4  ;;  %v49_v47 = vld [vmem:[%s5188_s0 + $0x118] sm:$0xff]  ;;  %v429_v49 = vld [vmem:[%s5187_s1 + $0x710] sm:$0xff]  ;;  %v415_v53 = vld [vmem:[%s5187_s1 + $0x6a0] sm:$0xff]  ;;  %v3017_v55 = vpack.c.bf16 %v398_v46, %v397_v45 }
  0x5b   :  { %3002 = vmatpush3.bf16.msra.mxu1 %v3001_v0  ;;  %1036 = vmatprep.mubr.f32.mxu1 %v183_v8  ;;  %v430_v50 = vld [vmem:[%s5187_s1 + $0x718] sm:$0xff]  ;;  %v52_v51 = vld [vmem:[%s5188_s0 + $0x130] sm:$0xff]  ;;  %v416_v54 = vld [vmem:[%s5187_s1 + $0x6a8] sm:$0xff] }
  0x5c   :  { %937 = vmatmul.mubr.f32.gmra.mrb[26].mxu0 %v180_v12  ;;  %3004 = vmatprep.subr.bf16.mxu1 %v3003_v9  ;;  %v51_v56 = vld [vmem:[%s5188_s0 + $0x128] sm:$0xff]  ;;  %v447_v57 = vld [vmem:[%s5187_s1 + $0x7a0] sm:$0xff]  ;;  %v77_v59 = vld [vmem:[%s5188_s0 + $0x1f8] sm:$0xff]  ;;  %v3049_v60 = vpack.c.bf16 %v430_v50, %v429_v49  ;;  %v3019_v0 = vpack.c.bf16 %v416_v54, %v415_v53 }
  0x5d   :  { %2974 = vmatpush3.bf16.msra.mxu0 %v2973_v13  ;;  %1106 = vmatprep.mubr.f32.mxu0 %v23_v24  ;;  %v448_v58 = vld [vmem:[%s5187_s1 + $0x7a8] sm:$0xff]  ;;  %v399_v61 = vld [vmem:[%s5187_s1 + $0x620] sm:$0xff]  ;;  %v76_v63 = vld [vmem:[%s5188_s0 + $0x1f0] sm:$0xff] }
  0x5e   :  { %1037 = vmatmul.mubr.f32.gmra.mrb[26].mxu1 %v182_v14  ;;  %2976 = vmatprep.subr.bf16.mxu0 %v2975_v16  ;;  %v400_v62 = vld [vmem:[%s5187_s1 + $0x628] sm:$0xff]  ;;  %v431_v1 = vld [vmem:[%s5187_s1 + $0x720] sm:$0xff]  ;;  %v3051_v4 = vpack.c.bf16 %v448_v58, %v447_v57  ;;  %v417_v5 = vld [vmem:[%s5187_s1 + $0x6b0] sm:$0xff] }
  0x5f   :  { %3006 = vmatpush3.bf16.msra.mxu1 %v3005_v15  ;;  %1206 = vmatprep.mubr.f32.mxu1 %v25_v28  ;;  %v432_v2 = vld [vmem:[%s5187_s1 + $0x728] sm:$0xff]  ;;  %v418_v6 = vld [vmem:[%s5187_s1 + $0x6b8] sm:$0xff]  ;;  %v3021_v7 = vpack.c.bf16 %v400_v62, %v399_v61  ;;  %v78_v8 = vld [vmem:[%s5188_s0 + $0x200] sm:$0xff] }
  0x60   :  { %3008 = vmatprep.subr.bf16.mxu1 %v3007_v20  ;;  %v79_v3 = vld [vmem:[%s5188_s0 + $0x208] sm:$0xff]  ;;  %v449_v9 = vld [vmem:[%s5187_s1 + $0x7b0] sm:$0xff]  ;;  %v450_v10 = vld [vmem:[%s5187_s1 + $0x7b8] sm:$0xff]  ;;  %v3053_v12 = vpack.c.bf16 %v432_v2, %v431_v1  ;;  %v3023_v16 = vpack.c.bf16 %v418_v6, %v417_v5 }
  0x61   :  { %2978 = vmatpush3.bf16.msra.mxu0 %v2977_v27  ;;  %v104_v11 = vld [vmem:[%s5188_s0 + $0x2d0] sm:$0xff]  ;;  %v402_v14 = vld [vmem:[%s5187_s1 + $0x638] sm:$0xff]  ;;  %v103_v15 = vld [vmem:[%s5188_s0 + $0x2c8] sm:$0xff]  ;;  %v3055_v20 = vpack.c.bf16 %v450_v10, %v449_v9 }
  0x62   :  { %3012 = vmatprep.subr.bf16.mxu0 %v3011_v30  ;;  %v401_v13 = vld [vmem:[%s5187_s1 + $0x630] sm:$0xff]  ;;  %v434_v18 = vld [vmem:[%s5187_s1 + $0x738] sm:$0xff]  ;;  %v106_v19 = vld [vmem:[%s5188_s0 + $0x2e0] sm:$0xff] }
  0x63   :  { %3010 = vmatpush3.bf16.msra.mxu1 %v3009_v29  ;;  %v433_v17 = vld [vmem:[%s5187_s1 + $0x730] sm:$0xff]  ;;  %v419_v21 = vld [vmem:[%s5187_s1 + $0x6c0] sm:$0xff]  ;;  %v420_v22 = vld [vmem:[%s5187_s1 + $0x6c8] sm:$0xff]  ;;  %v3025_v23 = vpack.c.bf16 %v402_v14, %v401_v13 }
  0x64   :  { %3044 = vmatprep.subr.bf16.mxu1 %v3043_v33  ;;  %1107 = vmatmul.mubr.f32.vlgmr.msra.gmra.mrb[28].mxu0 %v22_v36  ;;  %v105_v24 = vld [vmem:[%s5188_s0 + $0x2d8] sm:$0xff]  ;;  %v451_v25 = vld [vmem:[%s5187_s1 + $0x7c0] sm:$0xff]  ;;  %v452_v26 = vld [vmem:[%s5187_s1 + $0x7c8] sm:$0xff]  ;;  %v3057_v28 = vpack.c.bf16 %v434_v18, %v433_v17  ;;  %v3027_v32 = vpack.c.bf16 %v420_v22, %v419_v21 }
  0x65   :  { %3014 = vmatpush3.bf16.msra.mxu0 %v3013_v39  ;;  %1111 = vmatprep.mubr.f32.mxu0 %v50_v43  ;;  %v131_v27 = vld [vmem:[%s5188_s0 + $0x3a8] sm:$0xff]  ;;  %v403_v29 = vld [vmem:[%s5187_s1 + $0x640] sm:$0xff]  ;;  %v133_v35 = vld [vmem:[%s5188_s0 + $0x3b8] sm:$0xff]  ;;  %v3059_v36 = vpack.c.bf16 %v452_v26, %v451_v25 }
  0x66   :  { %1207 = vmatmul.mubr.f32.vlgmr.msra.gmra.mrb[28].mxu1 %v24_v40  ;;  %3016 = vmatprep.subr.bf16.mxu0 %v3015_v48  ;;  %v404_v30 = vld [vmem:[%s5187_s1 + $0x648] sm:$0xff]  ;;  %v130_v31 = vld [vmem:[%s5188_s0 + $0x3a0] sm:$0xff]  ;;  %v421_v37 = vld [vmem:[%s5187_s1 + $0x6d0] sm:$0xff] }
  0x67   :  { %3046 = vmatpush3.bf16.msra.mxu1 %v3045_v44  ;;  %1211 = vmatprep.mubr.f32.mxu1 %v52_v51  ;;  %v435_v33 = vld [vmem:[%s5187_s1 + $0x740] sm:$0xff]  ;;  %v436_v34 = vld [vmem:[%s5187_s1 + $0x748] sm:$0xff]  ;;  %v422_v38 = vld [vmem:[%s5187_s1 + $0x6d8] sm:$0xff]  ;;  %v3029_v39 = vpack.c.bf16 %v404_v30, %v403_v29 }
  0x68   :  { %1112 = vmatmul.mubr.f32.gmra.mrb[30].mxu0 %v49_v47  ;;  %3048 = vmatprep.subr.bf16.mxu1 %v3047_v52  ;;  %v132_v40 = vld [vmem:[%s5188_s0 + $0x3b0] sm:$0xff]  ;;  %v454_v42 = vld [vmem:[%s5187_s1 + $0x7d8] sm:$0xff]  ;;  %v158_v43 = vld [vmem:[%s5188_s0 + $0x480] sm:$0xff]  ;;  %v3061_v44 = vpack.c.bf16 %v436_v34, %v435_v33  ;;  %v3031_v48 = vpack.c.bf16 %v422_v38, %v421_v37 }
  0x69   :  { %3018 = vmatpush3.bf16.msra.mxu0 %v3017_v55  ;;  %1116 = vmatprep.mubr.f32.mxu0 %v77_v59  ;;  %v453_v41 = vld [vmem:[%s5187_s1 + $0x7d0] sm:$0xff]  ;;  %v406_v46 = vld [vmem:[%s5187_s1 + $0x658] sm:$0xff]  ;;  %v159_v52 = vld [vmem:[%s5188_s0 + $0x488] sm:$0xff] }
  0x6a   :  { %1212 = vmatmul.mubr.f32.gmra.mrb[30].mxu1 %v51_v56  ;;  %3020 = vmatprep.subr.bf16.mxu0 %v3019_v0  ;;  %v405_v45 = vld [vmem:[%s5187_s1 + $0x650] sm:$0xff]  ;;  %v157_v47 = vld [vmem:[%s5188_s0 + $0x478] sm:$0xff]  ;;  %v3063_v53 = vpack.c.bf16 %v454_v42, %v453_v41  ;;  %v423_v54 = vld [vmem:[%s5187_s1 + $0x6e0] sm:$0xff] }
  0x6b   :  { %3050 = vmatpush3.bf16.msra.mxu1 %v3049_v60  ;;  %1216 = vmatprep.mubr.f32.mxu1 %v79_v3  ;;  %v160_v49 = vld [vmem:[%s5188_s0 + $0x490] sm:$0xff]  ;;  %v438_v51 = vld [vmem:[%s5187_s1 + $0x758] sm:$0xff]  ;;  %v424_v55 = vld [vmem:[%s5187_s1 + $0x6e8] sm:$0xff]  ;;  %v3033_v56 = vpack.c.bf16 %v406_v46, %v405_v45 }
  0x6c   :  { %1117 = vmatmul.mubr.f32.gmra.mrb[32].mxu0 %v76_v63  ;;  %3052 = vmatprep.subr.bf16.mxu1 %v3051_v4  ;;  %v437_v50 = vld [vmem:[%s5187_s1 + $0x750] sm:$0xff]  ;;  %v185_v57 = vld [vmem:[%s5188_s0 + $0x558] sm:$0xff]  ;;  %v455_v58 = vld [vmem:[%s5187_s1 + $0x7e0] sm:$0xff]  ;;  %v3035_v0 = vpack.c.bf16 %v424_v55, %v423_v54 }
  0x6d   :  { %3022 = vmatpush3.bf16.msra.mxu0 %v3021_v7  ;;  %1121 = vmatprep.mubr.f32.mxu0 %v104_v11  ;;  %v456_v59 = vld [vmem:[%s5187_s1 + $0x7e8] sm:$0xff]  ;;  %v3065_v60 = vpack.c.bf16 %v438_v51, %v437_v50  ;;  %v407_v61 = vld [vmem:[%s5187_s1 + $0x660] sm:$0xff]  ;;  %v425_v2 = vld [vmem:[%s5187_s1 + $0x6f0] sm:$0xff] }
  0x6e   :  { %1217 = vmatmul.mubr.f32.gmra.mrb[32].mxu1 %v78_v8  ;;  %3024 = vmatprep.subr.bf16.mxu0 %v3023_v16  ;;  %v408_v62 = vld [vmem:[%s5187_s1 + $0x668] sm:$0xff]  ;;  %v439_v63 = vld [vmem:[%s5187_s1 + $0x760] sm:$0xff]  ;;  %v426_v3 = vld [vmem:[%s5187_s1 + $0x6f8] sm:$0xff]  ;;  %v3067_v5 = vpack.c.bf16 %v456_v59, %v455_v58 }
  0x6f   :  { %3054 = vmatpush3.bf16.msra.mxu1 %v3053_v12  ;;  %1221 = vmatprep.mubr.f32.mxu1 %v106_v19  ;;  %v440_v1 = vld [vmem:[%s5187_s1 + $0x768] sm:$0xff]  ;;  %v457_v6 = vld [vmem:[%s5187_s1 + $0x7f0] sm:$0xff]  ;;  %v458_v7 = vld [vmem:[%s5187_s1 + $0x7f8] sm:$0xff]  ;;  %v3037_v9 = vpack.c.bf16 %v408_v62, %v407_v61  ;;  %v3039_v12 = vpack.c.bf16 %v426_v3, %v425_v2 }
  0x70   :  { %1122 = vmatmul.mubr.f32.gmra.mrb[34].mxu0 %v103_v15  ;;  %3056 = vmatprep.subr.bf16.mxu1 %v3055_v20  ;;  %v187_v4 = vld [vmem:[%s5188_s0 + $0x568] sm:$0xff]  ;;  %v184_v8 = vld [vmem:[%s5188_s0 + $0x550] sm:$0xff]  ;;  %v186_v10 = vld [vmem:[%s5188_s0 + $0x560] sm:$0xff]  ;;  %v3069_v11 = vpack.c.bf16 %v440_v1, %v439_v63  ;;  %v3071_v16 = vpack.c.bf16 %v458_v7, %v457_v6 }
  0x71   :  { %3026 = vmatpush3.bf16.msra.mxu0 %v3025_v23  ;;  %1126 = vmatprep.mubr.f32.mxu0 %v131_v27  ;;  %v409_v13 = vld [vmem:[%s5187_s1 + $0x670] sm:$0xff]  ;;  %v410_v14 = vld [vmem:[%s5187_s1 + $0x678] sm:$0xff]  ;;  %v475_v18 = vld [vmem:[%s5187_s1 + $0x880] sm:$0xff] }
  0x72   :  { %1222 = vmatmul.mubr.f32.gmra.mrb[34].mxu1 %v105_v24  ;;  %3028 = vmatprep.subr.bf16.mxu0 %v3027_v32  ;;  %v441_v15 = vld [vmem:[%s5187_s1 + $0x770] sm:$0xff]  ;;  %v442_v17 = vld [vmem:[%s5187_s1 + $0x778] sm:$0xff]  ;;  %v476_v19 = vld [vmem:[%s5187_s1 + $0x888] sm:$0xff]  ;;  %v3041_v23 = vpack.c.bf16 %v410_v14, %v409_v13 }
  0x73   :  { %3058 = vmatpush3.bf16.msra.mxu1 %v3057_v28  ;;  %1226 = vmatprep.mubr.f32.mxu1 %v133_v35  ;;  %v27_v20 = vld [vmem:[%s5188_s0 + $0x68] sm:$0xff]  ;;  %v507_v21 = vld [vmem:[%s5187_s1 + $0x980] sm:$0xff]  ;;  %v29_v24 = vld [vmem:[%s5188_s0 + $0x78] sm:$0xff]  ;;  %v3073_v25 = vpack.c.bf16 %v442_v17, %v441_v15  ;;  %v3075_v26 = vpack.c.bf16 %v476_v19, %v475_v18 }
  0x74   :  { %1127 = vmatmul.mubr.f32.gmra.mrb[36].mxu0 %v130_v31  ;;  %3060 = vmatprep.subr.bf16.mxu1 %v3059_v36  ;;  %v508_v22 = vld [vmem:[%s5187_s1 + $0x988] sm:$0xff]  ;;  %v459_v27 = vld [vmem:[%s5187_s1 + $0x800] sm:$0xff]  ;;  %v477_v33 = vld [vmem:[%s5187_s1 + $0x890] sm:$0xff] }
  0x75   :  { %3030 = vmatpush3.bf16.msra.mxu0 %v3029_v39  ;;  %1131 = vmatprep.mubr.f32.mxu0 %v158_v43  ;;  %v460_v28 = vld [vmem:[%s5187_s1 + $0x808] sm:$0xff]  ;;  %v3107_v29 = vpack.c.bf16 %v508_v22, %v507_v21  ;;  %v491_v30 = vld [vmem:[%s5187_s1 + $0x900] sm:$0xff]  ;;  %v478_v34 = vld [vmem:[%s5187_s1 + $0x898] sm:$0xff] }
  0x76   :  { %1227 = vmatmul.mubr.f32.gmra.mrb[36].mxu1 %v132_v40  ;;  %3032 = vmatprep.subr.bf16.mxu0 %v3031_v48  ;;  %v492_v31 = vld [vmem:[%s5187_s1 + $0x908] sm:$0xff]  ;;  %v26_v32 = vld [vmem:[%s5188_s0 + $0x60] sm:$0xff]  ;;  %v3077_v35 = vpack.c.bf16 %v460_v28, %v459_v27  ;;  %v28_v36 = vld [vmem:[%s5188_s0 + $0x70] sm:$0xff] }
  0x77   :  { %3062 = vmatpush3.bf16.msra.mxu1 %v3061_v44  ;;  %1231 = vmatprep.mubr.f32.mxu1 %v160_v49  ;;  %v509_v37 = vld [vmem:[%s5187_s1 + $0x990] sm:$0xff]  ;;  %v510_v38 = vld [vmem:[%s5187_s1 + $0x998] sm:$0xff]  ;;  %v54_v39 = vld [vmem:[%s5188_s0 + $0x140] sm:$0xff]  ;;  %v3109_v40 = vpack.c.bf16 %v492_v31, %v491_v30  ;;  %v3079_v44 = vpack.c.bf16 %v478_v34, %v477_v33 }
  0x78   :  { %1132 = vmatmul.mubr.f32.gmra.mrb[38].mxu0 %v157_v47  ;;  %3064 = vmatprep.subr.bf16.mxu1 %v3063_v53  ;;  %v461_v41 = vld [vmem:[%s5187_s1 + $0x810] sm:$0xff]  ;;  %v462_v42 = vld [vmem:[%s5187_s1 + $0x818] sm:$0xff]  ;;  %v3111_v48 = vpack.c.bf16 %v510_v38, %v509_v37  ;;  %v479_v49 = vld [vmem:[%s5187_s1 + $0x8a0] sm:$0xff] }
  0x79   :  { %3034 = vmatpush3.bf16.msra.mxu0 %v3033_v56  ;;  %1136 = vmatprep.mubr.f32.mxu0 %v185_v57  ;;  %v53_v43 = vld [vmem:[%s5188_s0 + $0x138] sm:$0xff]  ;;  %v493_v45 = vld [vmem:[%s5187_s1 + $0x910] sm:$0xff]  ;;  %v480_v50 = vld [vmem:[%s5187_s1 + $0x8a8] sm:$0xff]  ;;  %v3081_v51 = vpack.c.bf16 %v462_v42, %v461_v41 }
  0x7a   :  { %1232 = vmatmul.mubr.f32.gmra.mrb[38].mxu1 %v159_v52  ;;  %3036 = vmatprep.subr.bf16.mxu0 %v3035_v0  ;;  %v494_v46 = vld [vmem:[%s5187_s1 + $0x918] sm:$0xff]  ;;  %v56_v47 = vld [vmem:[%s5188_s0 + $0x150] sm:$0xff]  ;;  %v55_v52 = vld [vmem:[%s5188_s0 + $0x148] sm:$0xff] }
  0x7b   :  { %3066 = vmatpush3.bf16.msra.mxu1 %v3065_v60  ;;  %1236 = vmatprep.mubr.f32.mxu1 %v187_v4  ;;  %v511_v53 = vld [vmem:[%s5187_s1 + $0x9a0] sm:$0xff]  ;;  %v512_v54 = vld [vmem:[%s5187_s1 + $0x9a8] sm:$0xff]  ;;  %v81_v55 = vld [vmem:[%s5188_s0 + $0x218] sm:$0xff]  ;;  %v3113_v56 = vpack.c.bf16 %v494_v46, %v493_v45  ;;  %v3083_v60 = vpack.c.bf16 %v480_v50, %v479_v49 }
  0x7c   :  { %1137 = vmatmul.mubr.f32.gmra.mrb[40].mxu0 %v184_v8  ;;  %3068 = vmatprep.subr.bf16.mxu1 %v3067_v5  ;;  %v463_v57 = vld [vmem:[%s5187_s1 + $0x820] sm:$0xff]  ;;  %v464_v58 = vld [vmem:[%s5187_s1 + $0x828] sm:$0xff]  ;;  %v80_v59 = vld [vmem:[%s5188_s0 + $0x210] sm:$0xff]  ;;  %v3115_v0 = vpack.c.bf16 %v512_v54, %v511_v53 }
  0x7d   :  { %3038 = vmatpush3.bf16.msra.mxu0 %v3037_v9  ;;  %1306 = vmatprep.mubr.f32.mxu0 %v27_v20  ;;  %v495_v61 = vld [vmem:[%s5187_s1 + $0x920] sm:$0xff]  ;;  %v496_v62 = vld [vmem:[%s5187_s1 + $0x928] sm:$0xff]  ;;  %v481_v1 = vld [vmem:[%s5187_s1 + $0x8b0] sm:$0xff]  ;;  %v3085_v3 = vpack.c.bf16 %v464_v58, %v463_v57 }
  0x7e   :  { %1237 = vmatmul.mubr.f32.gmra.mrb[40].mxu1 %v186_v10  ;;  %3040 = vmatprep.subr.bf16.mxu0 %v3039_v12  ;;  %v83_v63 = vld [vmem:[%s5188_s0 + $0x228] sm:$0xff]  ;;  %v482_v2 = vld [vmem:[%s5187_s1 + $0x8b8] sm:$0xff]  ;;  %v82_v4 = vld [vmem:[%s5188_s0 + $0x220] sm:$0xff]  ;;  %v3117_v8 = vpack.c.bf16 %v496_v62, %v495_v61 }
  0x7f   :  { %3070 = vmatpush3.bf16.msra.mxu1 %v3069_v11  ;;  %1406 = vmatprep.mubr.f32.mxu1 %v29_v24  ;;  %v513_v5 = vld [vmem:[%s5187_s1 + $0x9b0] sm:$0xff]  ;;  %v514_v6 = vld [vmem:[%s5187_s1 + $0x9b8] sm:$0xff]  ;;  %v107_v11 = vld [vmem:[%s5188_s0 + $0x2e8] sm:$0xff]  ;;  %v3087_v12 = vpack.c.bf16 %v482_v2, %v481_v1 }
  0x80   :  { %3072 = vmatprep.subr.bf16.mxu1 %v3071_v16  ;;  %v108_v7 = vld [vmem:[%s5188_s0 + $0x2f0] sm:$0xff]  ;;  %v466_v10 = vld [vmem:[%s5187_s1 + $0x838] sm:$0xff]  ;;  %v110_v15 = vld [vmem:[%s5188_s0 + $0x300] sm:$0xff]  ;;  %v3119_v16 = vpack.c.bf16 %v514_v6, %v513_v5 }
  0x81   :  { %3042 = vmatpush3.bf16.msra.mxu0 %v3041_v23  ;;  %v465_v9 = vld [vmem:[%s5187_s1 + $0x830] sm:$0xff]  ;;  %v498_v14 = vld [vmem:[%s5187_s1 + $0x938] sm:$0xff]  ;;  %v483_v17 = vld [vmem:[%s5187_s1 + $0x8c0] sm:$0xff] }
  0x82   :  { %3076 = vmatprep.subr.bf16.mxu0 %v3075_v26  ;;  %v497_v13 = vld [vmem:[%s5187_s1 + $0x930] sm:$0xff]  ;;  %v484_v18 = vld [vmem:[%s5187_s1 + $0x8c8] sm:$0xff]  ;;  %v3089_v19 = vpack.c.bf16 %v466_v10, %v465_v9  ;;  %v109_v20 = vld [vmem:[%s5188_s0 + $0x2f8] sm:$0xff] }
  0x83   :  { %3074 = vmatpush3.bf16.msra.mxu1 %v3073_v25  ;;  %v515_v21 = vld [vmem:[%s5187_s1 + $0x9c0] sm:$0xff]  ;;  %v516_v22 = vld [vmem:[%s5187_s1 + $0x9c8] sm:$0xff]  ;;  %v3121_v24 = vpack.c.bf16 %v498_v14, %v497_v13  ;;  %v3091_v28 = vpack.c.bf16 %v484_v18, %v483_v17  ;;  %v137_v31 = vld [vmem:[%s5188_s0 + $0x3d8] sm:$0xff] }
  0x84   :  { %3108 = vmatprep.subr.bf16.mxu1 %v3107_v29  ;;  %1307 = vmatmul.mubr.f32.vlgmr.msra.gmra.mrb[42].mxu0 %v26_v32  ;;  %v135_v23 = vld [vmem:[%s5188_s0 + $0x3c8] sm:$0xff]  ;;  %v467_v25 = vld [vmem:[%s5187_s1 + $0x840] sm:$0xff]  ;;  %v3123_v32 = vpack.c.bf16 %v516_v22, %v515_v21  ;;  %v485_v33 = vld [vmem:[%s5187_s1 + $0x8d0] sm:$0xff] }
  0x85   :  { %3078 = vmatpush3.bf16.msra.mxu0 %v3077_v35  ;;  %1311 = vmatprep.mubr.f32.mxu0 %v54_v39  ;;  %v468_v26 = vld [vmem:[%s5187_s1 + $0x848] sm:$0xff]  ;;  %v134_v27 = vld [vmem:[%s5188_s0 + $0x3c0] sm:$0xff]  ;;  %v486_v34 = vld [vmem:[%s5187_s1 + $0x8d8] sm:$0xff] }
  0x86   :  { %1407 = vmatmul.mubr.f32.vlgmr.msra.gmra.mrb[42].mxu1 %v28_v36  ;;  %3080 = vmatprep.subr.bf16.mxu0 %v3079_v44  ;;  %v499_v29 = vld [vmem:[%s5187_s1 + $0x940] sm:$0xff]  ;;  %v500_v30 = vld [vmem:[%s5187_s1 + $0x948] sm:$0xff]  ;;  %v3093_v35 = vpack.c.bf16 %v468_v26, %v467_v25  ;;  %v136_v36 = vld [vmem:[%s5188_s0 + $0x3d0] sm:$0xff]  ;;  %v3095_v44 = vpack.c.bf16 %v486_v34, %v485_v33 }
  0x87   :  { %3110 = vmatpush3.bf16.msra.mxu1 %v3109_v40  ;;  %1411 = vmatprep.mubr.f32.mxu1 %v56_v47  ;;  %v517_v37 = vld [vmem:[%s5187_s1 + $0x9d0] sm:$0xff]  ;;  %v518_v38 = vld [vmem:[%s5187_s1 + $0x9d8] sm:$0xff]  ;;  %v162_v39 = vld [vmem:[%s5188_s0 + $0x4a0] sm:$0xff]  ;;  %v3125_v40 = vpack.c.bf16 %v500_v30, %v499_v29 }
  0x88   :  { %1312 = vmatmul.mubr.f32.gmra.mrb[44].mxu0 %v53_v43  ;;  %3112 = vmatprep.subr.bf16.mxu1 %v3111_v48  ;;  %v469_v41 = vld [vmem:[%s5187_s1 + $0x850] sm:$0xff]  ;;  %v470_v42 = vld [vmem:[%s5187_s1 + $0x858] sm:$0xff]  ;;  %v163_v48 = vld [vmem:[%s5188_s0 + $0x4a8] sm:$0xff]  ;;  %v3127_v49 = vpack.c.bf16 %v518_v38, %v517_v37 }
  0x89   :  { %3082 = vmatpush3.bf16.msra.mxu0 %v3081_v51  ;;  %1316 = vmatprep.mubr.f32.mxu0 %v81_v55  ;;  %v161_v43 = vld [vmem:[%s5188_s0 + $0x498] sm:$0xff]  ;;  %v164_v45 = vld [vmem:[%s5188_s0 + $0x4b0] sm:$0xff]  ;;  %v487_v50 = vld [vmem:[%s5187_s1 + $0x8e0] sm:$0xff] }
  0x8a   :  { %1412 = vmatmul.mubr.f32.gmra.mrb[44].mxu1 %v55_v52  ;;  %3084 = vmatprep.subr.bf16.mxu0 %v3083_v60  ;;  %v501_v46 = vld [vmem:[%s5187_s1 + $0x950] sm:$0xff]  ;;  %v502_v47 = vld [vmem:[%s5187_s1 + $0x958] sm:$0xff]  ;;  %v488_v51 = vld [vmem:[%s5187_s1 + $0x8e8] sm:$0xff]  ;;  %v3097_v52 = vpack.c.bf16 %v470_v42, %v469_v41 }
  0x8b   :  { %3114 = vmatpush3.bf16.msra.mxu1 %v3113_v56  ;;  %1416 = vmatprep.mubr.f32.mxu1 %v83_v63  ;;  %v189_v53 = vld [vmem:[%s5188_s0 + $0x578] sm:$0xff]  ;;  %v519_v54 = vld [vmem:[%s5187_s1 + $0x9e0] sm:$0xff]  ;;  %v520_v55 = vld [vmem:[%s5187_s1 + $0x9e8] sm:$0xff]  ;;  %v3129_v56 = vpack.c.bf16 %v502_v47, %v501_v46  ;;  %v3099_v60 = vpack.c.bf16 %v488_v51, %v487_v50 }
  0x8c   :  { %1317 = vmatmul.mubr.f32.gmra.mrb[46].mxu0 %v80_v59  ;;  %3116 = vmatprep.subr.bf16.mxu1 %v3115_v0  ;;  %v471_v57 = vld [vmem:[%s5187_s1 + $0x860] sm:$0xff]  ;;  %v472_v58 = vld [vmem:[%s5187_s1 + $0x868] sm:$0xff]  ;;  %v489_v62 = vld [vmem:[%s5187_s1 + $0x8f0] sm:$0xff]  ;;  %v3131_v1 = vpack.c.bf16 %v520_v55, %v519_v54 }
  0x8d   :  { %3086 = vmatpush3.bf16.msra.mxu0 %v3085_v3  ;;  %1321 = vmatprep.mubr.f32.mxu0 %v108_v7  ;;  %v503_v59 = vld [vmem:[%s5187_s1 + $0x960] sm:$0xff]  ;;  %v504_v61 = vld [vmem:[%s5187_s1 + $0x968] sm:$0xff]  ;;  %v490_v63 = vld [vmem:[%s5187_s1 + $0x8f8] sm:$0xff]  ;;  %v3101_v5 = vpack.c.bf16 %v472_v58, %v471_v57 }
  0x8e   :  { %1417 = vmatmul.mubr.f32.gmra.mrb[46].mxu1 %v82_v4  ;;  %3088 = vmatprep.subr.bf16.mxu0 %v3087_v12  ;;  %v191_v0 = vld [vmem:[%s5188_s0 + $0x588] sm:$0xff]  ;;  %v521_v2 = vld [vmem:[%s5187_s1 + $0x9f0] sm:$0xff]  ;;  %v522_v3 = vld [vmem:[%s5187_s1 + $0x9f8] sm:$0xff]  ;;  %v3133_v7 = vpack.c.bf16 %v504_v61, %v503_v59 }
  0x8f   :  { %3118 = vmatpush3.bf16.msra.mxu1 %v3117_v8  ;;  %1421 = vmatprep.mubr.f32.mxu1 %v110_v15  ;;  %v188_v4 = vld [vmem:[%s5188_s0 + $0x570] sm:$0xff]  ;;  %v190_v6 = vld [vmem:[%s5188_s0 + $0x580] sm:$0xff]  ;;  %v3103_v8 = vpack.c.bf16 %v490_v63, %v489_v62  ;;  %v474_v10 = vld [vmem:[%s5187_s1 + $0x878] sm:$0xff]  ;;  %v3135_v12 = vpack.c.bf16 %v522_v3, %v521_v2 }
  0x90   :  { %1322 = vmatmul.mubr.f32.gmra.mrb[48].mxu0 %v107_v11  ;;  %3120 = vmatprep.subr.bf16.mxu1 %v3119_v16  ;;  %v473_v9 = vld [vmem:[%s5187_s1 + $0x870] sm:$0xff]  ;;  %v506_v13 = vld [vmem:[%s5187_s1 + $0x978] sm:$0xff]  ;;  %v539_v14 = vld [vmem:[%s5187_s1 + $0xa80] sm:$0xff] }
  0x91   :  { %3090 = vmatpush3.bf16.msra.mxu0 %v3089_v19  ;;  %1326 = vmatprep.mubr.f32.mxu0 %v135_v23  ;;  %v505_v11 = vld [vmem:[%s5187_s1 + $0x970] sm:$0xff]  ;;  %v540_v15 = vld [vmem:[%s5187_s1 + $0xa88] sm:$0xff]  ;;  %v571_v17 = vld [vmem:[%s5187_s1 + $0xb80] sm:$0xff]  ;;  %v3105_v19 = vpack.c.bf16 %v474_v10, %v473_v9 }
  0x92   :  { %1422 = vmatmul.mubr.f32.gmra.mrb[48].mxu1 %v109_v20  ;;  %3092 = vmatprep.subr.bf16.mxu0 %v3091_v28  ;;  %v31_v16 = vld [vmem:[%s5188_s0 + $0x88] sm:$0xff]  ;;  %v33_v20 = vld [vmem:[%s5188_s0 + $0x98] sm:$0xff]  ;;  %v3137_v21 = vpack.c.bf16 %v506_v13, %v505_v11  ;;  %v3139_v22 = vpack.c.bf16 %v540_v15, %v539_v14  ;;  %v523_v23 = vld [vmem:[%s5187_s1 + $0xa00] sm:$0xff] }
  0x93   :  { %3122 = vmatpush3.bf16.msra.mxu1 %v3121_v24  ;;  %1426 = vmatprep.mubr.f32.mxu1 %v137_v31  ;;  %v572_v18 = vld [vmem:[%s5187_s1 + $0xb88] sm:$0xff]  ;;  %v555_v26 = vld [vmem:[%s5187_s1 + $0xb00] sm:$0xff]  ;;  %v541_v29 = vld [vmem:[%s5187_s1 + $0xa90] sm:$0xff] }
  0x94   :  { %1327 = vmatmul.mubr.f32.gmra.mrb[50].mxu0 %v134_v27  ;;  %3124 = vmatprep.subr.bf16.mxu1 %v3123_v32  ;;  %v524_v24 = vld [vmem:[%s5187_s1 + $0xa08] sm:$0xff]  ;;  %v3171_v25 = vpack.c.bf16 %v572_v18, %v571_v17  ;;  %v30_v28 = vld [vmem:[%s5188_s0 + $0x80] sm:$0xff]  ;;  %v542_v30 = vld [vmem:[%s5187_s1 + $0xa98] sm:$0xff] }
  0x95   :  { %3094 = vmatpush3.bf16.msra.mxu0 %v3093_v35  ;;  %1331 = vmatprep.mubr.f32.mxu0 %v162_v39  ;;  %v556_v27 = vld [vmem:[%s5187_s1 + $0xb08] sm:$0xff]  ;;  %v3141_v31 = vpack.c.bf16 %v524_v24, %v523_v23  ;;  %v32_v32 = vld [vmem:[%s5188_s0 + $0x90] sm:$0xff]  ;;  %v574_v34 = vld [vmem:[%s5187_s1 + $0xb98] sm:$0xff] }
  0x96   :  { %1427 = vmatmul.mubr.f32.gmra.mrb[50].mxu1 %v136_v36  ;;  %3096 = vmatprep.subr.bf16.mxu0 %v3095_v44  ;;  %v573_v33 = vld [vmem:[%s5187_s1 + $0xb90] sm:$0xff]  ;;  %v58_v35 = vld [vmem:[%s5188_s0 + $0x160] sm:$0xff]  ;;  %v3173_v36 = vpack.c.bf16 %v556_v27, %v555_v26  ;;  %v526_v38 = vld [vmem:[%s5187_s1 + $0xa18] sm:$0xff] }
  0x97   :  { %3126 = vmatpush3.bf16.msra.mxu1 %v3125_v40  ;;  %1431 = vmatprep.mubr.f32.mxu1 %v164_v45  ;;  %v525_v37 = vld [vmem:[%s5187_s1 + $0xa10] sm:$0xff]  ;;  %v57_v39 = vld [vmem:[%s5188_s0 + $0x158] sm:$0xff]  ;;  %v3143_v40 = vpack.c.bf16 %v542_v30, %v541_v29  ;;  %v3175_v44 = vpack.c.bf16 %v574_v34, %v573_v33  ;;  %v543_v45 = vld [vmem:[%s5187_s1 + $0xaa0] sm:$0xff] }
  0x98   :  { %1332 = vmatmul.mubr.f32.gmra.mrb[52].mxu0 %v161_v43  ;;  %3128 = vmatprep.subr.bf16.mxu1 %v3127_v49  ;;  %v557_v41 = vld [vmem:[%s5187_s1 + $0xb10] sm:$0xff]  ;;  %v558_v42 = vld [vmem:[%s5187_s1 + $0xb18] sm:$0xff]  ;;  %v544_v46 = vld [vmem:[%s5187_s1 + $0xaa8] sm:$0xff]  ;;  %v3145_v47 = vpack.c.bf16 %v526_v38, %v525_v37 }
  0x99   :  { %3098 = vmatpush3.bf16.msra.mxu0 %v3097_v52  ;;  %1336 = vmatprep.mubr.f32.mxu0 %v189_v53  ;;  %v60_v43 = vld [vmem:[%s5188_s0 + $0x170] sm:$0xff]  ;;  %v575_v49 = vld [vmem:[%s5187_s1 + $0xba0] sm:$0xff]  ;;  %v576_v50 = vld [vmem:[%s5187_s1 + $0xba8] sm:$0xff]  ;;  %v3177_v52 = vpack.c.bf16 %v558_v42, %v557_v41 }
  0x9a   :  { %1432 = vmatmul.mubr.f32.gmra.mrb[52].mxu1 %v163_v48  ;;  %3100 = vmatprep.subr.bf16.mxu0 %v3099_v60  ;;  %v59_v48 = vld [vmem:[%s5188_s0 + $0x168] sm:$0xff]  ;;  %v85_v51 = vld [vmem:[%s5188_s0 + $0x238] sm:$0xff]  ;;  %v527_v53 = vld [vmem:[%s5187_s1 + $0xa20] sm:$0xff]  ;;  %v3179_v60 = vpack.c.bf16 %v576_v50, %v575_v49 }
  0x9b   :  { %3130 = vmatpush3.bf16.msra.mxu1 %v3129_v56  ;;  %1436 = vmatprep.mubr.f32.mxu1 %v191_v0  ;;  %v528_v54 = vld [vmem:[%s5187_s1 + $0xa28] sm:$0xff]  ;;  %v84_v55 = vld [vmem:[%s5188_s0 + $0x230] sm:$0xff]  ;;  %v3147_v56 = vpack.c.bf16 %v544_v46, %v543_v45  ;;  %v559_v57 = vld [vmem:[%s5187_s1 + $0xb20] sm:$0xff] }
  0x9c   :  { %1337 = vmatmul.mubr.f32.gmra.mrb[54].mxu0 %v188_v4  ;;  %3132 = vmatprep.subr.bf16.mxu1 %v3131_v1  ;;  %v560_v58 = vld [vmem:[%s5187_s1 + $0xb28] sm:$0xff]  ;;  %v545_v61 = vld [vmem:[%s5187_s1 + $0xab0] sm:$0xff]  ;;  %v546_v62 = vld [vmem:[%s5187_s1 + $0xab8] sm:$0xff]  ;;  %v3149_v63 = vpack.c.bf16 %v528_v54, %v527_v53 }
  0x9d   :  { %3102 = vmatpush3.bf16.msra.mxu0 %v3101_v5  ;;  %1506 = vmatprep.mubr.f32.mxu0 %v31_v16  ;;  %v87_v59 = vld [vmem:[%s5188_s0 + $0x248] sm:$0xff]  ;;  %v86_v0 = vld [vmem:[%s5188_s0 + $0x240] sm:$0xff]  ;;  %v577_v1 = vld [vmem:[%s5187_s1 + $0xbb0] sm:$0xff]  ;;  %v3181_v4 = vpack.c.bf16 %v560_v58, %v559_v57 }
  0x9e   :  { %1437 = vmatmul.mubr.f32.gmra.mrb[54].mxu1 %v190_v6  ;;  %3104 = vmatprep.subr.bf16.mxu0 %v3103_v8  ;;  %v578_v2 = vld [vmem:[%s5187_s1 + $0xbb8] sm:$0xff]  ;;  %v112_v3 = vld [vmem:[%s5188_s0 + $0x310] sm:$0xff]  ;;  %v3151_v8 = vpack.c.bf16 %v546_v62, %v545_v61  ;;  %v114_v11 = vld [vmem:[%s5188_s0 + $0x320] sm:$0xff] }
  0x9f   :  { %3134 = vmatpush3.bf16.msra.mxu1 %v3133_v7  ;;  %1606 = vmatprep.mubr.f32.mxu1 %v33_v20  ;;  %v529_v5 = vld [vmem:[%s5187_s1 + $0xa30] sm:$0xff]  ;;  %v530_v6 = vld [vmem:[%s5187_s1 + $0xa38] sm:$0xff]  ;;  %v111_v7 = vld [vmem:[%s5188_s0 + $0x308] sm:$0xff] }
  0xa0   :  { %3136 = vmatprep.subr.bf16.mxu1 %v3135_v12  ;;  %v561_v9 = vld [vmem:[%s5187_s1 + $0xb30] sm:$0xff]  ;;  %v562_v10 = vld [vmem:[%s5187_s1 + $0xb38] sm:$0xff]  ;;  %v3183_v12 = vpack.c.bf16 %v578_v2, %v577_v1  ;;  %v547_v13 = vld [vmem:[%s5187_s1 + $0xac0] sm:$0xff]  ;;  %v3153_v15 = vpack.c.bf16 %v530_v6, %v529_v5 }
  0xa1   :  { %3106 = vmatpush3.bf16.msra.mxu0 %v3105_v19  ;;  %v548_v14 = vld [vmem:[%s5187_s1 + $0xac8] sm:$0xff]  ;;  %v113_v16 = vld [vmem:[%s5188_s0 + $0x318] sm:$0xff]  ;;  %v579_v17 = vld [vmem:[%s5187_s1 + $0xbc0] sm:$0xff]  ;;  %v3185_v20 = vpack.c.bf16 %v562_v10, %v561_v9 }
  0xa2   :  { %3140 = vmatprep.subr.bf16.mxu0 %v3139_v22  ;;  %v580_v18 = vld [vmem:[%s5187_s1 + $0xbc8] sm:$0xff]  ;;  %v138_v23 = vld [vmem:[%s5188_s0 + $0x3e0] sm:$0xff]  ;;  %v3155_v24 = vpack.c.bf16 %v548_v14, %v547_v13  ;;  %v141_v27 = vld [vmem:[%s5188_s0 + $0x3f8] sm:$0xff] }
  0xa3   :  { %3138 = vmatpush3.bf16.msra.mxu1 %v3137_v21  ;;  %v139_v19 = vld [vmem:[%s5188_s0 + $0x3e8] sm:$0xff]  ;;  %v531_v21 = vld [vmem:[%s5187_s1 + $0xa40] sm:$0xff]  ;;  %v549_v29 = vld [vmem:[%s5187_s1 + $0xad0] sm:$0xff] }
  0xa4   :  { %3172 = vmatprep.subr.bf16.mxu1 %v3171_v25  ;;  %1507 = vmatmul.mubr.f32.vlgmr.msra.gmra.mrb[56].mxu0 %v30_v28  ;;  %v532_v22 = vld [vmem:[%s5187_s1 + $0xa48] sm:$0xff]  ;;  %v563_v25 = vld [vmem:[%s5187_s1 + $0xb40] sm:$0xff]  ;;  %v3187_v28 = vpack.c.bf16 %v580_v18, %v579_v17  ;;  %v550_v30 = vld [vmem:[%s5187_s1 + $0xad8] sm:$0xff] }
  0xa5   :  { %3142 = vmatpush3.bf16.msra.mxu0 %v3141_v31  ;;  %1511 = vmatprep.mubr.f32.mxu0 %v58_v35  ;;  %v564_v26 = vld [vmem:[%s5187_s1 + $0xb48] sm:$0xff]  ;;  %v3157_v31 = vpack.c.bf16 %v532_v22, %v531_v21  ;;  %v581_v33 = vld [vmem:[%s5187_s1 + $0xbd0] sm:$0xff]  ;;  %v582_v34 = vld [vmem:[%s5187_s1 + $0xbd8] sm:$0xff] }
  0xa6   :  { %1607 = vmatmul.mubr.f32.vlgmr.msra.gmra.mrb[56].mxu1 %v32_v32  ;;  %3144 = vmatprep.subr.bf16.mxu0 %v3143_v40  ;;  %v140_v32 = vld [vmem:[%s5188_s0 + $0x3f0] sm:$0xff]  ;;  %v166_v35 = vld [vmem:[%s5188_s0 + $0x4c0] sm:$0xff]  ;;  %v534_v38 = vld [vmem:[%s5187_s1 + $0xa58] sm:$0xff]  ;;  %v3159_v40 = vpack.c.bf16 %v550_v30, %v549_v29  ;;  %v3191_v45 = vpack.c.bf16 %v582_v34, %v581_v33  ;;  %v3262_v30 = vmov 0.0|0.0  }
  0xa7   :  { %3174 = vmatpush3.bf16.msra.mxu1 %v3173_v36  ;;  %1611 = vmatprep.mubr.f32.mxu1 %v60_v43  ;;  %v3189_v36 = vpack.c.bf16 %v564_v26, %v563_v25  ;;  %v533_v37 = vld [vmem:[%s5187_s1 + $0xa50] sm:$0xff]  ;;  %v566_v43 = vld [vmem:[%s5187_s1 + $0xb58] sm:$0xff]  ;;  %v551_v46 = vld [vmem:[%s5187_s1 + $0xae0] sm:$0xff] }
  0xa8   :  { %1512 = vmatmul.mubr.f32.gmra.mrb[58].mxu0 %v57_v39  ;;  %3176 = vmatprep.subr.bf16.mxu1 %v3175_v44  ;;  %v165_v39 = vld [vmem:[%s5188_s0 + $0x4b8] sm:$0xff]  ;;  %v168_v41 = vld [vmem:[%s5188_s0 + $0x4d0] sm:$0xff]  ;;  %v167_v44 = vld [vmem:[%s5188_s0 + $0x4c8] sm:$0xff] }
  0xa9   :  { %3146 = vmatpush3.bf16.msra.mxu0 %v3145_v47  ;;  %1516 = vmatprep.mubr.f32.mxu0 %v85_v51  ;;  %v565_v42 = vld [vmem:[%s5187_s1 + $0xb50] sm:$0xff]  ;;  %v552_v47 = vld [vmem:[%s5187_s1 + $0xae8] sm:$0xff]  ;;  %v193_v49 = vld [vmem:[%s5188_s0 + $0x598] sm:$0xff] }
  0xaa   :  { %1612 = vmatmul.mubr.f32.gmra.mrb[58].mxu1 %v59_v48  ;;  %3148 = vmatprep.subr.bf16.mxu0 %v3147_v56  ;;  %v3161_v48 = vpack.c.bf16 %v534_v38, %v533_v37  ;;  %v583_v50 = vld [vmem:[%s5187_s1 + $0xbe0] sm:$0xff]  ;;  %v584_v51 = vld [vmem:[%s5187_s1 + $0xbe8] sm:$0xff]  ;;  %v3163_v56 = vpack.c.bf16 %v552_v47, %v551_v46  ;;  %v553_v58 = vld [vmem:[%s5187_s1 + $0xaf0] sm:$0xff] }
  0xab   :  { %3178 = vmatpush3.bf16.msra.mxu1 %v3177_v52  ;;  %1616 = vmatprep.mubr.f32.mxu1 %v87_v59  ;;  %v3193_v52 = vpack.c.bf16 %v566_v43, %v565_v42  ;;  %v535_v53 = vld [vmem:[%s5187_s1 + $0xa60] sm:$0xff]  ;;  %v536_v54 = vld [vmem:[%s5187_s1 + $0xa68] sm:$0xff]  ;;  %v554_v59 = vld [vmem:[%s5187_s1 + $0xaf8] sm:$0xff]  ;;  %v3195_v61 = vpack.c.bf16 %v584_v51, %v583_v50 }
  0xac   :  { %1517 = vmatmul.mubr.f32.gmra.mrb[60].mxu0 %v84_v55  ;;  %3180 = vmatprep.subr.bf16.mxu1 %v3179_v60  ;;  %v567_v55 = vld [vmem:[%s5187_s1 + $0xb60] sm:$0xff]  ;;  %v568_v57 = vld [vmem:[%s5187_s1 + $0xb68] sm:$0xff]  ;;  %v585_v62 = vld [vmem:[%s5187_s1 + $0xbf0] sm:$0xff]  ;;  %v3165_v1 = vpack.c.bf16 %v536_v54, %v535_v53 }
  0xad   :  { %3150 = vmatpush3.bf16.msra.mxu0 %v3149_v63  ;;  %1521 = vmatprep.mubr.f32.mxu0 %v112_v3  ;;  %v195_v60 = vld [vmem:[%s5188_s0 + $0x5a8] sm:$0xff]  ;;  %v586_v63 = vld [vmem:[%s5187_s1 + $0xbf8] sm:$0xff]  ;;  %v194_v2 = vld [vmem:[%s5188_s0 + $0x5a0] sm:$0xff]  ;;  %v3197_v3 = vpack.c.bf16 %v568_v57, %v567_v55 }
  0xae   :  { %1617 = vmatmul.mubr.f32.gmra.mrb[60].mxu1 %v86_v0  ;;  %3152 = vmatprep.subr.bf16.mxu0 %v3151_v8  ;;  %v192_v0 = vld [vmem:[%s5188_s0 + $0x590] sm:$0xff]  ;;  %v538_v6 = vld [vmem:[%s5187_s1 + $0xa78] sm:$0xff]  ;;  %v3199_v8 = vpack.c.bf16 %v586_v63, %v585_v62  ;;  %v603_v10 = vld [vmem:[%s5187_s1 + $0xc80] sm:$0xff] }
  0xaf   :  { %3182 = vmatpush3.bf16.msra.mxu1 %v3181_v4  ;;  %1621 = vmatprep.mubr.f32.mxu1 %v114_v11  ;;  %v3167_v4 = vpack.c.bf16 %v554_v59, %v553_v58  ;;  %v537_v5 = vld [vmem:[%s5187_s1 + $0xa70] sm:$0xff]  ;;  %v570_v9 = vld [vmem:[%s5187_s1 + $0xb78] sm:$0xff]  ;;  %v604_v11 = vld [vmem:[%s5187_s1 + $0xc88] sm:$0xff] }
  0xb0   :  { %1522 = vmatmul.mubr.f32.gmra.mrb[62].mxu0 %v111_v7  ;;  %3184 = vmatprep.subr.bf16.mxu1 %v3183_v12  ;;  %v569_v7 = vld [vmem:[%s5187_s1 + $0xb70] sm:$0xff]  ;;  %v35_v12 = vld [vmem:[%s5188_s0 + $0xa8] sm:$0xff]  ;;  %v3169_v13 = vpack.c.bf16 %v538_v6, %v537_v5  ;;  %v37_v14 = vld [vmem:[%s5188_s0 + $0xb8] sm:$0xff] }
  0xb1   :  { %3154 = vmatpush3.bf16.msra.mxu0 %v3153_v15  ;;  %1526 = vmatprep.mubr.f32.mxu0 %v139_v19  ;;  %v3201_v15 = vpack.c.bf16 %v570_v9, %v569_v7  ;;  %v587_v17 = vld [vmem:[%s5187_s1 + $0xc00] sm:$0xff]  ;;  %v588_v18 = vld [vmem:[%s5187_s1 + $0xc08] sm:$0xff]  ;;  %v605_v19 = vld [vmem:[%s5187_s1 + $0xc90] sm:$0xff] }
  0xb2   :  { %1622 = vmatmul.mubr.f32.gmra.mrb[62].mxu1 %v113_v16  ;;  %3156 = vmatprep.subr.bf16.mxu0 %v3155_v24  ;;  %v3203_v16 = vpack.c.bf16 %v604_v11, %v603_v10  ;;  %v619_v21 = vld [vmem:[%s5187_s1 + $0xd00] sm:$0xff]  ;;  %v620_v22 = vld [vmem:[%s5187_s1 + $0xd08] sm:$0xff]  ;;  %v3205_v24 = vpack.c.bf16 %v588_v18, %v587_v17  ;;  %v36_v25 = vld [vmem:[%s5188_s0 + $0xb0] sm:$0xff] }
  0xb3   :  { %3186 = vmatpush3.bf16.msra.mxu1 %v3185_v20  ;;  %1626 = vmatprep.mubr.f32.mxu1 %v141_v27  ;;  %v606_v20 = vld [vmem:[%s5187_s1 + $0xc98] sm:$0xff]  ;;  %v589_v27 = vld [vmem:[%s5187_s1 + $0xc10] sm:$0xff]  ;;  %v62_v29 = vld [vmem:[%s5188_s0 + $0x180] sm:$0xff] }
  0xb4   :  { %1527 = vmatmul.mubr.f32.gmra.mrb[64].mxu0 %v138_v23  ;;  %3188 = vmatprep.subr.bf16.mxu1 %v3187_v28  ;;  %v34_v23 = vld [vmem:[%s5188_s0 + $0xa0] sm:$0xff]  ;;  %v3207_v26 = vpack.c.bf16 %v606_v20, %v605_v19  ;;  %v590_v28 = vld [vmem:[%s5187_s1 + $0xc18] sm:$0xff]  ;;  %v608_v33 = vld [vmem:[%s5187_s1 + $0xca8] sm:$0xff] }
  0xb5   :  { %3158 = vmatpush3.bf16.msra.mxu0 %v3157_v31  ;;  %1531 = vmatprep.mubr.f32.mxu0 %v166_v35  ;;  %v3236_v31 = vpack.c.bf16 %v620_v22, %v619_v21  ;;  %v64_v34 = vld [vmem:[%s5188_s0 + $0x190] sm:$0xff]  ;;  %v61_v37 = vld [vmem:[%s5188_s0 + $0x178] sm:$0xff]  ;;  %v3209_v38 = vpack.c.bf16 %v590_v28, %v589_v27  ;;  %v592_v42 = vld [vmem:[%s5187_s1 + $0xc28] sm:$0xff] }
  0xb6   :  { %1627 = vmatmul.mubr.f32.gmra.mrb[64].mxu1 %v140_v32  ;;  %3160 = vmatprep.subr.bf16.mxu0 %v3159_v40  ;;  %v607_v32 = vld [vmem:[%s5187_s1 + $0xca0] sm:$0xff]  ;;  %v621_v35 = vld [vmem:[%s5187_s1 + $0xd10] sm:$0xff]  ;;  %v89_v43 = vld [vmem:[%s5188_s0 + $0x258] sm:$0xff] }
  0xb7   :  { %3190 = vmatpush3.bf16.msra.mxu1 %v3189_v36  ;;  %1631 = vmatprep.mubr.f32.mxu1 %v168_v41  ;;  %v622_v36 = vld [vmem:[%s5187_s1 + $0xd18] sm:$0xff]  ;;  %v3211_v40 = vpack.c.bf16 %v608_v33, %v607_v32  ;;  %v591_v41 = vld [vmem:[%s5187_s1 + $0xc20] sm:$0xff]  ;;  %v91_v47 = vld [vmem:[%s5188_s0 + $0x268] sm:$0xff] }
  0xb8   :  { %1532 = vmatmul.mubr.f32.gmra.mrb[66].mxu0 %v165_v39  ;;  %3192 = vmatprep.subr.bf16.mxu1 %v3191_v45  ;;  %v63_v39 = vld [vmem:[%s5188_s0 + $0x188] sm:$0xff]  ;;  %v609_v45 = vld [vmem:[%s5187_s1 + $0xcb0] sm:$0xff]  ;;  %v610_v46 = vld [vmem:[%s5187_s1 + $0xcb8] sm:$0xff]  ;;  %v3213_v51 = vpack.c.bf16 %v592_v42, %v591_v41 }
  0xb9   :  { %3162 = vmatpush3.bf16.msra.mxu0 %v3161_v48  ;;  %1536 = vmatprep.mubr.f32.mxu0 %v193_v49  ;;  %v623_v48 = vld [vmem:[%s5187_s1 + $0xd20] sm:$0xff]  ;;  %v624_v49 = vld [vmem:[%s5187_s1 + $0xd28] sm:$0xff]  ;;  %v88_v50 = vld [vmem:[%s5188_s0 + $0x250] sm:$0xff]  ;;  %v3215_v53 = vpack.c.bf16 %v610_v46, %v609_v45 }
  0xba   :  { %1632 = vmatmul.mubr.f32.gmra.mrb[66].mxu1 %v167_v44  ;;  %3164 = vmatprep.subr.bf16.mxu0 %v3163_v56  ;;  %v3239_v44 = vpack.c.bf16 %v622_v36, %v621_v35  ;;  %v593_v54 = vld [vmem:[%s5187_s1 + $0xc30] sm:$0xff]  ;;  %v594_v55 = vld [vmem:[%s5187_s1 + $0xc38] sm:$0xff]  ;;  %v3242_v57 = vpack.c.bf16 %v624_v49, %v623_v48  ;;  %v611_v58 = vld [vmem:[%s5187_s1 + $0xcc0] sm:$0xff] }
  0xbb   :  { %3194 = vmatpush3.bf16.msra.mxu1 %v3193_v52  ;;  %1636 = vmatprep.mubr.f32.mxu1 %v195_v60  ;;  %v90_v52 = vld [vmem:[%s5188_s0 + $0x260] sm:$0xff]  ;;  %v116_v56 = vld [vmem:[%s5188_s0 + $0x330] sm:$0xff]  ;;  %v612_v59 = vld [vmem:[%s5187_s1 + $0xcc8] sm:$0xff] }
  0xbc   :  { %1537 = vmatmul.mubr.f32.gmra.mrb[68].mxu0 %v192_v0  ;;  %3196 = vmatprep.subr.bf16.mxu1 %v3195_v61  ;;  %v118_v60 = vld [vmem:[%s5188_s0 + $0x340] sm:$0xff]  ;;  %v625_v61 = vld [vmem:[%s5187_s1 + $0xd30] sm:$0xff]  ;;  %v626_v62 = vld [vmem:[%s5187_s1 + $0xd38] sm:$0xff]  ;;  %v3217_v0 = vpack.c.bf16 %v594_v55, %v593_v54 }
  0xbd   :  { %3166 = vmatpush3.bf16.msra.mxu0 %v3165_v1  ;;  %1706 = vmatprep.mubr.f32.mxu0 %v35_v12  ;;  %v115_v63 = vld [vmem:[%s5188_s0 + $0x328] sm:$0xff]  ;;  %v117_v1 = vld [vmem:[%s5188_s0 + $0x338] sm:$0xff]  ;;  %v3245_v6 = vpack.c.bf16 %v626_v62, %v625_v61  ;;  %v613_v7 = vld [vmem:[%s5187_s1 + $0xcd0] sm:$0xff] }
  0xbe   :  { %1637 = vmatmul.mubr.f32.gmra.mrb[68].mxu1 %v194_v2  ;;  %3168 = vmatprep.subr.bf16.mxu0 %v3167_v4  ;;  %v3219_v2 = vpack.c.bf16 %v612_v59, %v611_v58  ;;  %v596_v4 = vld [vmem:[%s5187_s1 + $0xc48] sm:$0xff]  ;;  %v145_v9 = vld [vmem:[%s5188_s0 + $0x418] sm:$0xff]  ;;  %v627_v10 = vld [vmem:[%s5187_s1 + $0xd40] sm:$0xff] }
  0xbf   :  { %3198 = vmatpush3.bf16.msra.mxu1 %v3197_v3  ;;  %1806 = vmatprep.mubr.f32.mxu1 %v37_v14  ;;  %v595_v3 = vld [vmem:[%s5187_s1 + $0xc40] sm:$0xff]  ;;  %v143_v5 = vld [vmem:[%s5188_s0 + $0x408] sm:$0xff]  ;;  %v144_v14 = vld [vmem:[%s5188_s0 + $0x410] sm:$0xff] }
  0xc0   :  { %3200 = vmatprep.subr.bf16.mxu1 %v3199_v8  ;;  %v614_v8 = vld [vmem:[%s5187_s1 + $0xcd8] sm:$0xff]  ;;  %v628_v11 = vld [vmem:[%s5187_s1 + $0xd48] sm:$0xff]  ;;  %v142_v12 = vld [vmem:[%s5188_s0 + $0x400] sm:$0xff] }
  0xc1   :  { %3170 = vmatpush3.bf16.msra.mxu0 %v3169_v13  ;;  %v3221_v13 = vpack.c.bf16 %v596_v4, %v595_v3  ;;  %v598_v17 = vld [vmem:[%s5187_s1 + $0xc58] sm:$0xff]  ;;  %v170_v18 = vld [vmem:[%s5188_s0 + $0x4e0] sm:$0xff]  ;;  %v3248_v19 = vpack.c.bf16 %v628_v11, %v627_v10  ;;  %v616_v21 = vld [vmem:[%s5187_s1 + $0xce8] sm:$0xff] }
  0xc2   :  { %3204 = vmatprep.subr.bf16.mxu0 %v3203_v16  ;;  %v597_v16 = vld [vmem:[%s5187_s1 + $0xc50] sm:$0xff]  ;;  %v615_v20 = vld [vmem:[%s5187_s1 + $0xce0] sm:$0xff]  ;;  %v171_v27 = vld [vmem:[%s5188_s0 + $0x4e8] sm:$0xff] }
  0xc3   :  { %3202 = vmatpush3.bf16.msra.mxu1 %v3201_v15  ;;  %v3223_v15 = vpack.c.bf16 %v614_v8, %v613_v7  ;;  %v172_v22 = vld [vmem:[%s5188_s0 + $0x4f0] sm:$0xff]  ;;  %v3227_v28 = vpack.c.bf16 %v616_v21, %v615_v20  ;;  %v197_v32 = vld [vmem:[%s5188_s0 + $0x5b8] sm:$0xff]  ;;  %v199_v36 = vld [vmem:[%s5188_s0 + $0x5c8] sm:$0xff] }
  0xc4   :  { %3235 = vmatprep.subr.bf16.mxu1 %v3262_v30  ;;  %1707 = vmatmul.mubr.f32.vlgmr.msra.gmra.mrb[70].mxu0 %v34_v23  ;;  %v629_v23 = vld [vmem:[%s5187_s1 + $0xd50] sm:$0xff]  ;;  %v618_v35 = vld [vmem:[%s5187_s1 + $0xcf8] sm:$0xff]  ;;  %v198_v41 = vld [vmem:[%s5188_s0 + $0x5c0] sm:$0xff] }
  0xc5   :  { %3206 = vmatpush3.bf16.msra.mxu0 %v3205_v24  ;;  %1711 = vmatprep.mubr.f32.mxu0 %v62_v29  ;;  %v630_v24 = vld [vmem:[%s5187_s1 + $0xd58] sm:$0xff]  ;;  %v599_v29 = vld [vmem:[%s5187_s1 + $0xc60] sm:$0xff]  ;;  %v39_v46 = vld [vmem:[%s5188_s0 + $0xc8] sm:$0xff] }
  0xc6   :  { %1807 = vmatmul.mubr.f32.vlgmr.msra.gmra.mrb[70].mxu1 %v36_v25  ;;  %3208 = vmatprep.subr.bf16.mxu0 %v3207_v26  ;;  %v169_v25 = vld [vmem:[%s5188_s0 + $0x4d8] sm:$0xff]  ;;  %v3225_v26 = vpack.c.bf16 %v598_v17, %v597_v16  ;;  %v3251_v33 = vpack.c.bf16 %v630_v24, %v629_v23  ;;  %v40_v54 = vld [vmem:[%s5188_s0 + $0xd0] sm:$0xff]  ;;  %v94_v59 = vld [vmem:[%s5188_s0 + $0x280] sm:$0xff] }
  0xc7   :  { %1811 = vmatprep.mubr.f32.mxu1 %v64_v34  ;;  %3237 = vmatpush3.bf16.msra.mxu1 %v3236_v31  ;;  %v600_v31 = vld [vmem:[%s5187_s1 + $0xc68] sm:$0xff]  ;;  %v617_v34 = vld [vmem:[%s5187_s1 + $0xcf0] sm:$0xff]  ;;  %v634_v48 = vld [vmem:[%s5187_s1 + $0xd78] sm:$0xff] }
  0xc8   :  { %1712 = vmatmul.mubr.f32.gmra.mrb[72].mxu0 %v61_v37  ;;  %3238 = vmatprep.subr.bf16.mxu1 %v3262_v30  ;;  %v631_v37 = vld [vmem:[%s5187_s1 + $0xd60] sm:$0xff]  ;;  %v3231_v42 = vpack.c.bf16 %v618_v35, %v617_v34  ;;  %v93_v55 = vld [vmem:[%s5188_s0 + $0x278] sm:$0xff]  ;;  %v120_v58 = vld [vmem:[%s5188_s0 + $0x350] sm:$0xff] }
  0xc9   :  { %3210 = vmatpush3.bf16.msra.mxu0 %v3209_v38  ;;  %1716 = vmatprep.mubr.f32.mxu0 %v89_v43  ;;  %v632_v38 = vld [vmem:[%s5187_s1 + $0xd68] sm:$0xff]  ;;  %v601_v43 = vld [vmem:[%s5187_s1 + $0xc70] sm:$0xff]  ;;  %v121_v62 = vld [vmem:[%s5188_s0 + $0x358] sm:$0xff] }
  0xca   :  { %1812 = vmatmul.mubr.f32.gmra.mrb[72].mxu1 %v63_v39  ;;  %3212 = vmatprep.subr.bf16.mxu0 %v3211_v40  ;;  %v196_v39 = vld [vmem:[%s5188_s0 + $0x5b0] sm:$0xff]  ;;  %v3229_v40 = vpack.c.bf16 %v600_v31, %v599_v29  ;;  %v3254_v45 = vpack.c.bf16 %v632_v38, %v631_v37  ;;  %v147_v61 = vld [vmem:[%s5188_s0 + $0x428] sm:$0xff]  ;;  %v201_v3 = vld [vmem:[%s5188_s0 + $0x5d8] sm:$0xff] }
  0xcb   :  { %1816 = vmatprep.mubr.f32.mxu1 %v91_v47  ;;  %3240 = vmatpush3.bf16.msra.mxu1 %v3239_v44  ;;  %v602_v44 = vld [vmem:[%s5187_s1 + $0xc78] sm:$0xff]  ;;  %v633_v47 = vld [vmem:[%s5187_s1 + $0xd70] sm:$0xff] }
  0xcc   :  { %1717 = vmatmul.mubr.f32.gmra.mrb[74].mxu0 %v88_v50  ;;  %3241 = vmatprep.subr.bf16.mxu1 %v3262_v30  ;;  %v3233_v49 = vpack.c.bf16 %v602_v44, %v601_v43  ;;  %v3257_v50 = vpack.c.bf16 %v634_v48, %v633_v47  ;;  %v200_v11 = vld [vmem:[%s5188_s0 + $0x5d0] sm:$0xff] }
  0xcd   :  { %3214 = vmatpush3.bf16.msra.mxu0 %v3213_v51  ;;  %1721 = vmatprep.mubr.f32.mxu0 %v116_v56  ;;  %v3264_v51 = vmov 0.0   ;;  %v67_v56 = vld [vmem:[%s5188_s0 + $0x1a8] sm:$0xff] }
  0xce   :  { %1817 = vmatmul.mubr.f32.gmra.mrb[74].mxu1 %v90_v52  ;;  %3216 = vmatprep.subr.bf16.mxu0 %v3215_v53  ;;  %v38_v52 = vld [vmem:[%s5188_s0 + $0xc0] sm:$0xff] }
  0xcf   :  { %1821 = vmatprep.mubr.f32.mxu1 %v118_v60  ;;  %3243 = vmatpush3.bf16.msra.mxu1 %v3242_v57  ;;  %v66_v53 = vld [vmem:[%s5188_s0 + $0x1a0] sm:$0xff]  ;;  %v92_v57 = vld [vmem:[%s5188_s0 + $0x270] sm:$0xff]  ;;  %v119_v60 = vld [vmem:[%s5188_s0 + $0x348] sm:$0xff] }
  0xd0   :  { %1722 = vmatmul.mubr.f32.gmra.mrb[76].mxu0 %v115_v63  ;;  %3244 = vmatprep.subr.bf16.mxu1 %v3262_v30  ;;  %v146_v63 = vld [vmem:[%s5188_s0 + $0x420] sm:$0xff] }
  0xd1   :  { %3218 = vmatpush3.bf16.msra.mxu0 %v3217_v0  ;;  %1726 = vmatprep.mubr.f32.mxu0 %v143_v5  ;;  %v174_v0 = vld [vmem:[%s5188_s0 + $0x500] sm:$0xff]  ;;  %v175_v5 = vld [vmem:[%s5188_s0 + $0x508] sm:$0xff] }
  0xd2   :  { %1822 = vmatmul.mubr.f32.gmra.mrb[76].mxu1 %v117_v1  ;;  %3220 = vmatprep.subr.bf16.mxu0 %v3219_v2  ;;  %v148_v1 = vld [vmem:[%s5188_s0 + $0x430] sm:$0xff]  ;;  %v173_v2 = vld [vmem:[%s5188_s0 + $0x4f8] sm:$0xff] }
  0xd3   :  { %1826 = vmatprep.mubr.f32.mxu1 %v145_v9  ;;  %3246 = vmatpush3.bf16.msra.mxu1 %v3245_v6  ;;  %v2053_v6 = vld [vmem:[%s5189_s2] ss:$0 sm:$0xff] }
  0xd4   :  { %1727 = vmatmul.mubr.f32.gmra.mrb[78].mxu0 %v142_v12  ;;  %3247 = vmatprep.subr.bf16.mxu1 %v3262_v30 }
  0xd5   :  { %3222 = vmatpush3.bf16.msra.mxu0 %v3221_v13  ;;  %1731 = vmatprep.mubr.f32.mxu0 %v170_v18 }
  0xd6   :  { %1827 = vmatmul.mubr.f32.gmra.mrb[78].mxu1 %v144_v14  ;;  %3224 = vmatprep.subr.bf16.mxu0 %v3223_v15  ;;  %v202_v15 = vld [vmem:[%s5188_s0 + $0x5e0] sm:$0xff] }
  0xd7   :  { %1831 = vmatprep.mubr.f32.mxu1 %v172_v22  ;;  %3249 = vmatpush3.bf16.msra.mxu1 %v3248_v19 }
  0xd8   :  { %1732 = vmatmul.mubr.f32.gmra.mrb[80].mxu0 %v169_v25  ;;  %3250 = vmatprep.subr.bf16.mxu1 %v3262_v30 }
  0xd9   :  { %3226 = vmatpush3.bf16.msra.mxu0 %v3225_v26  ;;  %1736 = vmatprep.mubr.f32.mxu0 %v197_v32 }
  0xda   :  { %1832 = vmatmul.mubr.f32.gmra.mrb[80].mxu1 %v171_v27  ;;  %3228 = vmatprep.subr.bf16.mxu0 %v3227_v28 }
  0xdb   :  { %1836 = vmatprep.mubr.f32.mxu1 %v199_v36  ;;  %3252 = vmatpush3.bf16.msra.mxu1 %v3251_v33 }
  0xdc   :  { %1737 = vmatmul.mubr.f32.gmra.mrb[82].mxu0 %v196_v39  ;;  %3253 = vmatprep.subr.bf16.mxu1 %v3262_v30 }
  0xdd   :  { %3230 = vmatpush3.bf16.msra.mxu0 %v3229_v40  ;;  %1906 = vmatprep.mubr.f32.mxu0 %v39_v46 }
  0xde   :  { %1837 = vmatmul.mubr.f32.gmra.mrb[82].mxu1 %v198_v41  ;;  %3232 = vmatprep.subr.bf16.mxu0 %v3231_v42 }
  0xdf   :  { %3255 = vmatpush3.bf16.msra.mxu1 %v3254_v45  ;;  %2798 = vmatprep.mubr.msk.f32.mxu1 %vm3263_vm0, %v3264_v51 }
  0xe0   :  { %3256 = vmatprep.subr.bf16.mxu1 %v3262_v30  ;;  %v65_v30 = vld [vmem:[%s5188_s0 + $0x198] sm:$0xff] }
  0xe1   :  { %3234 = vmatpush3.bf16.msra.mxu0 %v3233_v49 }
  0xe3   :  { %3258 = vmatpush3.bf16.msra.mxu1 %v3257_v50 }
  0xe4   :  { %1907 = vmatmul.mubr.f32.vlgmr.msra.gmra.mrb[84].mxu0 %v38_v52 }
  0xe5   :  { %1911 = vmatprep.mubr.f32.mxu0 %v66_v53 }
  0xe6   :  { %2799 = vmatmul.mubr.f32.vlgmr.msra.gmra.mrb[84].mxu1 %v40_v54 }
  0xe7   :  { %2801 = vmatprep.mubr.msk.f32.mxu1 %vm3263_vm0, %v3264_v51 }
  0xe8   :  { %1912 = vmatmul.mubr.f32.gmra.mrb[86].mxu0 %v65_v30 }
  0xe9   :  { %1916 = vmatprep.mubr.f32.mxu0 %v93_v55 }
  0xea   :  { %2802 = vmatmul.mubr.f32.gmra.mrb[86].mxu1 %v67_v56 }
  0xeb   :  { %2804 = vmatprep.mubr.msk.f32.mxu1 %vm3263_vm0, %v3264_v51 }
  0xec   :  { %1917 = vmatmul.mubr.f32.gmra.mrb[88].mxu0 %v92_v57 }
  0xed   :  { %1921 = vmatprep.mubr.f32.mxu0 %v120_v58 }
  0xee   :  { %2805 = vmatmul.mubr.f32.gmra.mrb[88].mxu1 %v94_v59 }
  0xef   :  { %2807 = vmatprep.mubr.msk.f32.mxu1 %vm3263_vm0, %v3264_v51 }
  0xf0   :  { %1922 = vmatmul.mubr.f32.gmra.mrb[90].mxu0 %v119_v60 }
  0xf1   :  { %1926 = vmatprep.mubr.f32.mxu0 %v147_v61 }
  0xf2   :  { %2808 = vmatmul.mubr.f32.gmra.mrb[90].mxu1 %v121_v62 }
  0xf3   :  { %2810 = vmatprep.mubr.msk.f32.mxu1 %vm3263_vm0, %v3264_v51 }
  0xf4   :  { %1927 = vmatmul.mubr.f32.gmra.mrb[92].mxu0 %v146_v63 }
  0xf5   :  { %1931 = vmatprep.mubr.f32.mxu0 %v174_v0 }
  0xf6   :  { %2811 = vmatmul.mubr.f32.gmra.mrb[92].mxu1 %v148_v1 }
  0xf7   :  { %v2086_v4 = vpop.f32.mrb[0].mxu0  ;;  %2813 = vmatprep.mubr.msk.f32.mxu1 %vm3263_vm0, %v3264_v51 }
  0xf8   :  { %v2087_v7 = vpop.f32.mrb[1].mxu0  ;;  %1932 = vmatmul.mubr.f32.gmra.mrb[94].mxu0 %v173_v2 }
  0xf9   :  { %v2139_v8 = vpop.f32.mrb[0].mxu1  ;;  %v2088_v9 = vadd.f32 %v2087_v7, %v2086_v4  ;;  %1936 = vmatprep.mubr.f32.mxu0 %v201_v3 }
  0xfa   :  { %v2140_v10 = vpop.f32.mrb[1].mxu1  ;;  %2814 = vmatmul.mubr.f32.gmra.mrb[94].mxu1 %v175_v5 }
  0xfb   :  { %v2141_v12 = vadd.f32 %v2140_v10, %v2139_v8  ;;  %v709_v13 = vadd.f32 %v2088_v9, %v2053_v6  ;;  %v2089_v14 = vpop.f32.mrb[2].mxu0  ;;  %2816 = vmatprep.mubr.msk.f32.mxu1 %vm3263_vm0, %v3264_v51 }
  0xfc   :  { %1937 = vmatmul.mubr.f32.gmra.mrb[96].mxu0 %v200_v11  ;;  %v2090_v16 = vpop.f32.mrb[3].mxu0 }
  0xfd   :  { %v2142_v17 = vpop.f32.mrb[2].mxu1  ;;  %v809_v18 = vadd.f32 %v2141_v12, %v709_v13  ;;  %v2091_v19 = vadd.f32 %v2090_v16, %v2089_v14 }
  0xfe   :  { %v2143_v20 = vpop.f32.mrb[3].mxu1  ;;  %2817 = vmatmul.mubr.f32.gmra.mrb[96].mxu1 %v202_v15 }
  0xff   :  { %v2144_v21 = vadd.f32 %v2143_v20, %v2142_v17  ;;  %v714_v22 = vadd.f32 %v2091_v19, %v2053_v6  ;;  %v2092_v23 = vpop.f32.mrb[4].mxu0 }
 0x100   :  { %v2093_v24 = vpop.f32.mrb[5].mxu0 }
 0x101   :  { %v2145_v25 = vpop.f32.mrb[4].mxu1  ;;  %v814_v26 = vadd.f32 %v2144_v21, %v714_v22  ;;  %v2094_v27 = vadd.f32 %v2093_v24, %v2092_v23 }
 0x102   :  { %v2146_v28 = vpop.f32.mrb[5].mxu1 }
 0x103   :  { %v2147_v29 = vadd.f32 %v2146_v28, %v2145_v25  ;;  %v719_v31 = vadd.f32 %v2094_v27, %v2053_v6  ;;  %v2095_v32 = vpop.f32.mrb[6].mxu0 }
 0x104   :  { %v2096_v33 = vpop.f32.mrb[7].mxu0 }
 0x105   :  { %v2148_v34 = vpop.f32.mrb[6].mxu1  ;;  %v819_v35 = vadd.f32 %v2147_v29, %v719_v31  ;;  %v2097_v36 = vadd.f32 %v2096_v33, %v2095_v32 }
 0x106   :  { %v2149_v37 = vpop.f32.mrb[7].mxu1 }
 0x107   :  { %v2150_v38 = vadd.f32 %v2149_v37, %v2148_v34  ;;  %v724_v39 = vadd.f32 %v2097_v36, %v2053_v6  ;;  %v2098_v40 = vpop.f32.mrb[8].mxu0 }
 0x108   :  { %v2099_v41 = vpop.f32.mrb[9].mxu0 }
 0x109   :  { %v2151_v42 = vpop.f32.mrb[8].mxu1  ;;  %v824_v43 = vadd.f32 %v2150_v38, %v724_v39  ;;  %v2100_v44 = vadd.f32 %v2099_v41, %v2098_v40 }
 0x10a   :  { %v2152_v45 = vpop.f32.mrb[9].mxu1 }
 0x10b   :  { %v2153_v46 = vadd.f32 %v2152_v45, %v2151_v42  ;;  %v729_v47 = vadd.f32 %v2100_v44, %v2053_v6  ;;  %v2101_v48 = vpop.f32.mrb[10].mxu0 }
 0x10c   :  { %v2102_v49 = vpop.f32.mrb[11].mxu0 }
 0x10d   :  { %v2154_v50 = vpop.f32.mrb[10].mxu1  ;;  %v829_v51 = vadd.f32 %v2153_v46, %v729_v47  ;;  %v2103_v52 = vadd.f32 %v2102_v49, %v2101_v48 }
 0x10e   :  { %v2155_v53 = vpop.f32.mrb[11].mxu1 }
 0x10f   :  { %v2156_v54 = vadd.f32 %v2155_v53, %v2154_v50  ;;  %v734_v30 = vadd.f32 %v2103_v52, %v2053_v6  ;;  %v2104_v55 = vpop.f32.mrb[12].mxu0 }
 0x110   :  { %v2105_v56 = vpop.f32.mrb[13].mxu0 }
 0x111   :  { %v2157_v57 = vpop.f32.mrb[12].mxu1  ;;  %v834_v58 = vadd.f32 %v2156_v54, %v734_v30  ;;  %v2106_v59 = vadd.f32 %v2105_v56, %v2104_v55 }
 0x112   :  { %v2158_v60 = vpop.f32.mrb[13].mxu1 }
 0x113   :  { %v2159_v61 = vadd.f32 %v2158_v60, %v2157_v57  ;;  %v739_v62 = vadd.f32 %v2106_v59, %v2053_v6 }
 0x115   :  { %v839_v63 = vadd.f32 %v2159_v61, %v739_v62 }
 0x117   :  { %v2192_v0 = vpop.f32.mrb[14].mxu0 }
 0x118   :  { %v2193_v1 = vpop.f32.mrb[15].mxu0 }
 0x119   :  { %v2245_v2 = vpop.f32.mrb[14].mxu1  ;;  %v2194_v3 = vadd.f32 %v2193_v1, %v2192_v0 }
 0x11a   :  { %v2246_v4 = vpop.f32.mrb[15].mxu1 }
 0x11b   :  { %v2247_v5 = vadd.f32 %v2246_v4, %v2245_v2  ;;  %v909_v7 = vadd.f32 %v2194_v3, %v809_v18  ;;  %v2195_v8 = vpop.f32.mrb[16].mxu0 }
 0x11c   :  { %v2196_v9 = vpop.f32.mrb[17].mxu0 }
 0x11d   :  { %v2248_v10 = vpop.f32.mrb[16].mxu1  ;;  %v1009_v11 = vadd.f32 %v2247_v5, %v909_v7  ;;  %v2197_v12 = vadd.f32 %v2196_v9, %v2195_v8 }
 0x11e   :  { %v2249_v13 = vpop.f32.mrb[17].mxu1 }
 0x11f   :  { %v2250_v14 = vadd.f32 %v2249_v13, %v2248_v10  ;;  %v914_v15 = vadd.f32 %v2197_v12, %v814_v26  ;;  %v2198_v16 = vpop.f32.mrb[18].mxu0 }
 0x120   :  { %v2199_v17 = vpop.f32.mrb[19].mxu0 }
 0x121   :  { %v2251_v19 = vpop.f32.mrb[18].mxu1  ;;  %v1014_v6 = vadd.f32 %v2250_v14, %v914_v15  ;;  %v2200_v20 = vadd.f32 %v2199_v17, %v2198_v16 }
 0x122   :  { %v2252_v21 = vpop.f32.mrb[19].mxu1 }
 0x123   :  { %v2253_v22 = vadd.f32 %v2252_v21, %v2251_v19  ;;  %v919_v23 = vadd.f32 %v2200_v20, %v819_v35  ;;  %v2201_v24 = vpop.f32.mrb[20].mxu0 }
 0x124   :  { %v2202_v25 = vpop.f32.mrb[21].mxu0 }
 0x125   :  { %v2254_v27 = vpop.f32.mrb[20].mxu1  ;;  %v1019_v18 = vadd.f32 %v2253_v22, %v919_v23  ;;  %v2203_v28 = vadd.f32 %v2202_v25, %v2201_v24 }
 0x126   :  { %v2255_v29 = vpop.f32.mrb[21].mxu1 }
 0x127   :  { %v2256_v31 = vadd.f32 %v2255_v29, %v2254_v27  ;;  %v924_v32 = vadd.f32 %v2203_v28, %v824_v43  ;;  %v2204_v33 = vpop.f32.mrb[22].mxu0 }
 0x128   :  { %v2205_v34 = vpop.f32.mrb[23].mxu0 }
 0x129   :  { %v2257_v36 = vpop.f32.mrb[22].mxu1  ;;  %v1024_v26 = vadd.f32 %v2256_v31, %v924_v32  ;;  %v2206_v37 = vadd.f32 %v2205_v34, %v2204_v33 }
 0x12a   :  { %v2258_v38 = vpop.f32.mrb[23].mxu1 }
 0x12b   :  { %v2259_v39 = vadd.f32 %v2258_v38, %v2257_v36  ;;  %v929_v40 = vadd.f32 %v2206_v37, %v829_v51  ;;  %v2207_v41 = vpop.f32.mrb[24].mxu0 }
 0x12c   :  { %v2208_v42 = vpop.f32.mrb[25].mxu0 }
 0x12d   :  { %v2260_v44 = vpop.f32.mrb[24].mxu1  ;;  %v1029_v35 = vadd.f32 %v2259_v39, %v929_v40  ;;  %v2209_v45 = vadd.f32 %v2208_v42, %v2207_v41 }
 0x12e   :  { %v2261_v46 = vpop.f32.mrb[25].mxu1 }
 0x12f   :  { %v2262_v47 = vadd.f32 %v2261_v46, %v2260_v44  ;;  %v934_v48 = vadd.f32 %v2209_v45, %v834_v58  ;;  %v2210_v49 = vpop.f32.mrb[26].mxu0 }
 0x130   :  { %v2211_v50 = vpop.f32.mrb[27].mxu0 }
 0x131   :  { %v2263_v52 = vpop.f32.mrb[26].mxu1  ;;  %v1034_v43 = vadd.f32 %v2262_v47, %v934_v48  ;;  %v2212_v53 = vadd.f32 %v2211_v50, %v2210_v49 }
 0x132   :  { %v2264_v54 = vpop.f32.mrb[27].mxu1 }
 0x133   :  { %v2265_v30 = vadd.f32 %v2264_v54, %v2263_v52  ;;  %v939_v55 = vadd.f32 %v2212_v53, %v839_v63 }
 0x135   :  { %v1039_v56 = vadd.f32 %v2265_v30, %v939_v55 }
 0x137   :  { %v2298_v57 = vpop.f32.mrb[28].mxu0 }
 0x138   :  { %v2299_v59 = vpop.f32.mrb[29].mxu0 }
 0x139   :  { %v2351_v51 = vpop.f32.mrb[28].mxu1  ;;  %v2300_v60 = vadd.f32 %v2299_v59, %v2298_v57 }
 0x13a   :  { %v2352_v61 = vpop.f32.mrb[29].mxu1 }
 0x13b   :  { %v2353_v62 = vadd.f32 %v2352_v61, %v2351_v51  ;;  %v1109_v0 = vadd.f32 %v2300_v60, %v1009_v11  ;;  %v2301_v1 = vpop.f32.mrb[30].mxu0 }
 0x13c   :  { %v2302_v2 = vpop.f32.mrb[31].mxu0 }
 0x13d   :  { %v2354_v3 = vpop.f32.mrb[30].mxu1  ;;  %v1209_v58 = vadd.f32 %v2353_v62, %v1109_v0  ;;  %v2303_v4 = vadd.f32 %v2302_v2, %v2301_v1 }
 0x13e   :  { %v2355_v5 = vpop.f32.mrb[31].mxu1 }
 0x13f   :  { %v2356_v7 = vadd.f32 %v2355_v5, %v2354_v3  ;;  %v1114_v8 = vadd.f32 %v2303_v4, %v1014_v6  ;;  %v2304_v9 = vpop.f32.mrb[32].mxu0 }
 0x140   :  { %v2305_v10 = vpop.f32.mrb[33].mxu0 }
 0x141   :  { %v2357_v12 = vpop.f32.mrb[32].mxu1  ;;  %v1214_v63 = vadd.f32 %v2356_v7, %v1114_v8  ;;  %v2306_v13 = vadd.f32 %v2305_v10, %v2304_v9 }
 0x142   :  { %v2358_v14 = vpop.f32.mrb[33].mxu1 }
 0x143   :  { %v2359_v15 = vadd.f32 %v2358_v14, %v2357_v12  ;;  %v1119_v16 = vadd.f32 %v2306_v13, %v1019_v18  ;;  %v2307_v17 = vpop.f32.mrb[34].mxu0 }
 0x144   :  { %v2308_v19 = vpop.f32.mrb[35].mxu0 }
 0x145   :  { %v2360_v20 = vpop.f32.mrb[34].mxu1  ;;  %v1219_v11 = vadd.f32 %v2359_v15, %v1119_v16  ;;  %v2309_v21 = vadd.f32 %v2308_v19, %v2307_v17 }
 0x146   :  { %v2361_v22 = vpop.f32.mrb[35].mxu1 }
 0x147   :  { %v2362_v23 = vadd.f32 %v2361_v22, %v2360_v20  ;;  %v1124_v24 = vadd.f32 %v2309_v21, %v1024_v26  ;;  %v2310_v25 = vpop.f32.mrb[36].mxu0 }
 0x148   :  { %v2311_v27 = vpop.f32.mrb[37].mxu0 }
 0x149   :  { %v2363_v28 = vpop.f32.mrb[36].mxu1  ;;  %v1224_v6 = vadd.f32 %v2362_v23, %v1124_v24  ;;  %v2312_v29 = vadd.f32 %v2311_v27, %v2310_v25 }
 0x14a   :  { %v2364_v31 = vpop.f32.mrb[37].mxu1 }
 0x14b   :  { %v2365_v32 = vadd.f32 %v2364_v31, %v2363_v28  ;;  %v1129_v33 = vadd.f32 %v2312_v29, %v1029_v35  ;;  %v2313_v34 = vpop.f32.mrb[38].mxu0 }
 0x14c   :  { %v2314_v36 = vpop.f32.mrb[39].mxu0 }
 0x14d   :  { %v2366_v37 = vpop.f32.mrb[38].mxu1  ;;  %v1229_v18 = vadd.f32 %v2365_v32, %v1129_v33  ;;  %v2315_v38 = vadd.f32 %v2314_v36, %v2313_v34 }
 0x14e   :  { %v2367_v39 = vpop.f32.mrb[39].mxu1 }
 0x14f   :  { %v2368_v40 = vadd.f32 %v2367_v39, %v2366_v37  ;;  %v1134_v41 = vadd.f32 %v2315_v38, %v1034_v43  ;;  %v2316_v42 = vpop.f32.mrb[40].mxu0 }
 0x150   :  { %v2317_v44 = vpop.f32.mrb[41].mxu0 }
 0x151   :  { %v2369_v45 = vpop.f32.mrb[40].mxu1  ;;  %v1234_v26 = vadd.f32 %v2368_v40, %v1134_v41  ;;  %v2318_v46 = vadd.f32 %v2317_v44, %v2316_v42 }
 0x152   :  { %v2370_v47 = vpop.f32.mrb[41].mxu1 }
 0x153   :  { %v2371_v48 = vadd.f32 %v2370_v47, %v2369_v45  ;;  %v1139_v49 = vadd.f32 %v2318_v46, %v1039_v56 }
 0x155   :  { %v1239_v50 = vadd.f32 %v2371_v48, %v1139_v49 }
 0x157   :  { %v2404_v52 = vpop.f32.mrb[42].mxu0 }
 0x158   :  { %v2405_v53 = vpop.f32.mrb[43].mxu0 }
 0x159   :  { %v2457_v35 = vpop.f32.mrb[42].mxu1  ;;  %v2406_v54 = vadd.f32 %v2405_v53, %v2404_v52 }
 0x15a   :  { %v2458_v30 = vpop.f32.mrb[43].mxu1 }
 0x15b   :  { %v2459_v55 = vadd.f32 %v2458_v30, %v2457_v35  ;;  %v1309_v57 = vadd.f32 %v2406_v54, %v1209_v58  ;;  %v2407_v59 = vpop.f32.mrb[44].mxu0 }
 0x15c   :  { %v2408_v51 = vpop.f32.mrb[45].mxu0 }
 0x15d   :  { %v2460_v60 = vpop.f32.mrb[44].mxu1  ;;  %v1409_v43 = vadd.f32 %v2459_v55, %v1309_v57  ;;  %v2409_v61 = vadd.f32 %v2408_v51, %v2407_v59 }
 0x15e   :  { %v2461_v62 = vpop.f32.mrb[45].mxu1 }
 0x15f   :  { %v2462_v0 = vadd.f32 %v2461_v62, %v2460_v60  ;;  %v1314_v1 = vadd.f32 %v2409_v61, %v1214_v63  ;;  %v2410_v2 = vpop.f32.mrb[46].mxu0 }
 0x160   :  { %v2411_v3 = vpop.f32.mrb[47].mxu0 }
 0x161   :  { %v2463_v4 = vpop.f32.mrb[46].mxu1  ;;  %v1414_v56 = vadd.f32 %v2462_v0, %v1314_v1  ;;  %v2412_v5 = vadd.f32 %v2411_v3, %v2410_v2 }
 0x162   :  { %v2464_v7 = vpop.f32.mrb[47].mxu1 }
 0x163   :  { %v2465_v8 = vadd.f32 %v2464_v7, %v2463_v4  ;;  %v1319_v9 = vadd.f32 %v2412_v5, %v1219_v11  ;;  %v2413_v10 = vpop.f32.mrb[48].mxu0 }
 0x164   :  { %v2414_v12 = vpop.f32.mrb[49].mxu0 }
 0x165   :  { %v2466_v13 = vpop.f32.mrb[48].mxu1  ;;  %v1419_v58 = vadd.f32 %v2465_v8, %v1319_v9  ;;  %v2415_v14 = vadd.f32 %v2414_v12, %v2413_v10 }
 0x166   :  { %v2467_v15 = vpop.f32.mrb[49].mxu1 }
 0x167   :  { %v2468_v16 = vadd.f32 %v2467_v15, %v2466_v13  ;;  %v1324_v17 = vadd.f32 %v2415_v14, %v1224_v6  ;;  %v2416_v19 = vpop.f32.mrb[50].mxu0 }
 0x168   :  { %v2417_v20 = vpop.f32.mrb[51].mxu0 }
 0x169   :  { %v2469_v21 = vpop.f32.mrb[50].mxu1  ;;  %v1424_v63 = vadd.f32 %v2468_v16, %v1324_v17  ;;  %v2418_v22 = vadd.f32 %v2417_v20, %v2416_v19 }
 0x16a   :  { %v2470_v23 = vpop.f32.mrb[51].mxu1 }
 0x16b   :  { %v2471_v24 = vadd.f32 %v2470_v23, %v2469_v21  ;;  %v1329_v25 = vadd.f32 %v2418_v22, %v1229_v18  ;;  %v2419_v27 = vpop.f32.mrb[52].mxu0 }
 0x16c   :  { %v2420_v28 = vpop.f32.mrb[53].mxu0 }
 0x16d   :  { %v2472_v29 = vpop.f32.mrb[52].mxu1  ;;  %v1429_v11 = vadd.f32 %v2471_v24, %v1329_v25  ;;  %v2421_v31 = vadd.f32 %v2420_v28, %v2419_v27 }
 0x16e   :  { %v2473_v32 = vpop.f32.mrb[53].mxu1 }
 0x16f   :  { %v2474_v33 = vadd.f32 %v2473_v32, %v2472_v29  ;;  %v1334_v34 = vadd.f32 %v2421_v31, %v1234_v26  ;;  %v2422_v36 = vpop.f32.mrb[54].mxu0 }
 0x170   :  { %v2423_v37 = vpop.f32.mrb[55].mxu0 }
 0x171   :  { %v2475_v38 = vpop.f32.mrb[54].mxu1  ;;  %v1434_v6 = vadd.f32 %v2474_v33, %v1334_v34  ;;  %v2424_v39 = vadd.f32 %v2423_v37, %v2422_v36 }
 0x172   :  { %v2476_v40 = vpop.f32.mrb[55].mxu1 }
 0x173   :  { %v2477_v41 = vadd.f32 %v2476_v40, %v2475_v38  ;;  %v1339_v42 = vadd.f32 %v2424_v39, %v1239_v50 }
 0x175   :  { %v1439_v44 = vadd.f32 %v2477_v41, %v1339_v42 }
 0x177   :  { %v2510_v45 = vpop.f32.mrb[56].mxu0 }
 0x178   :  { %v2511_v46 = vpop.f32.mrb[57].mxu0 }
 0x179   :  { %v2563_v18 = vpop.f32.mrb[56].mxu1  ;;  %v2512_v47 = vadd.f32 %v2511_v46, %v2510_v45 }
 0x17a   :  { %v2564_v48 = vpop.f32.mrb[57].mxu1 }
 0x17b   :  { %v2565_v49 = vadd.f32 %v2564_v48, %v2563_v18  ;;  %v1509_v52 = vadd.f32 %v2512_v47, %v1409_v43  ;;  %v2513_v53 = vpop.f32.mrb[58].mxu0 }
 0x17c   :  { %v2514_v35 = vpop.f32.mrb[59].mxu0 }
 0x17d   :  { %v2566_v54 = vpop.f32.mrb[58].mxu1  ;;  %v1609_v26 = vadd.f32 %v2565_v49, %v1509_v52  ;;  %v2515_v30 = vadd.f32 %v2514_v35, %v2513_v53 }
 0x17e   :  { %v2567_v55 = vpop.f32.mrb[59].mxu1 }
 0x17f   :  { %v2568_v57 = vadd.f32 %v2567_v55, %v2566_v54  ;;  %v1514_v59 = vadd.f32 %v2515_v30, %v1414_v56  ;;  %v2516_v51 = vpop.f32.mrb[60].mxu0 }
 0x180   :  { %v2517_v60 = vpop.f32.mrb[61].mxu0 }
 0x181   :  { %v2569_v61 = vpop.f32.mrb[60].mxu1  ;;  %v1614_v50 = vadd.f32 %v2568_v57, %v1514_v59  ;;  %v2518_v62 = vadd.f32 %v2517_v60, %v2516_v51 }
 0x182   :  { %v2570_v0 = vpop.f32.mrb[61].mxu1 }
 0x183   :  { %v2571_v1 = vadd.f32 %v2570_v0, %v2569_v61  ;;  %v1519_v2 = vadd.f32 %v2518_v62, %v1419_v58  ;;  %v2519_v3 = vpop.f32.mrb[62].mxu0 }
 0x184   :  { %v2520_v4 = vpop.f32.mrb[63].mxu0 }
 0x185   :  { %v2572_v5 = vpop.f32.mrb[62].mxu1  ;;  %v1619_v43 = vadd.f32 %v2571_v1, %v1519_v2  ;;  %v2521_v7 = vadd.f32 %v2520_v4, %v2519_v3 }
 0x186   :  { %v2573_v8 = vpop.f32.mrb[63].mxu1 }
 0x187   :  { %v2574_v9 = vadd.f32 %v2573_v8, %v2572_v5  ;;  %v1524_v10 = vadd.f32 %v2521_v7, %v1424_v63  ;;  %v2522_v12 = vpop.f32.mrb[64].mxu0 }
 0x188   :  { %v2523_v13 = vpop.f32.mrb[65].mxu0 }
 0x189   :  { %v2575_v14 = vpop.f32.mrb[64].mxu1  ;;  %v1624_v56 = vadd.f32 %v2574_v9, %v1524_v10  ;;  %v2524_v15 = vadd.f32 %v2523_v13, %v2522_v12 }
 0x18a   :  { %v2576_v16 = vpop.f32.mrb[65].mxu1 }
 0x18b   :  { %v2577_v17 = vadd.f32 %v2576_v16, %v2575_v14  ;;  %v1529_v19 = vadd.f32 %v2524_v15, %v1429_v11  ;;  %v2525_v20 = vpop.f32.mrb[66].mxu0 }
 0x18c   :  { %v2526_v21 = vpop.f32.mrb[67].mxu0 }
 0x18d   :  { %v2578_v22 = vpop.f32.mrb[66].mxu1  ;;  %v1629_v58 = vadd.f32 %v2577_v17, %v1529_v19  ;;  %v2527_v23 = vadd.f32 %v2526_v21, %v2525_v20 }
 0x18e   :  { %v2579_v24 = vpop.f32.mrb[67].mxu1 }
 0x18f   :  { %v2580_v25 = vadd.f32 %v2579_v24, %v2578_v22  ;;  %v1534_v27 = vadd.f32 %v2527_v23, %v1434_v6  ;;  %v2528_v28 = vpop.f32.mrb[68].mxu0 }
 0x190   :  { %v2529_v29 = vpop.f32.mrb[69].mxu0 }
 0x191   :  { %v2581_v31 = vpop.f32.mrb[68].mxu1  ;;  %v1634_v63 = vadd.f32 %v2580_v25, %v1534_v27  ;;  %v2530_v32 = vadd.f32 %v2529_v29, %v2528_v28 }
 0x192   :  { %v2582_v33 = vpop.f32.mrb[69].mxu1 }
 0x193   :  { %v2583_v34 = vadd.f32 %v2582_v33, %v2581_v31  ;;  %v1539_v36 = vadd.f32 %v2530_v32, %v1439_v44 }
 0x195   :  { %v1639_v37 = vadd.f32 %v2583_v34, %v1539_v36 }
 0x197   :  { %v2616_v38 = vpop.f32.mrb[70].mxu0 }
 0x198   :  { %v2617_v39 = vpop.f32.mrb[71].mxu0 }
 0x199   :  { %v2669_v11 = vpop.f32.mrb[70].mxu1  ;;  %v2618_v40 = vadd.f32 %v2617_v39, %v2616_v38 }
 0x19a   :  { %v2670_v41 = vpop.f32.mrb[71].mxu1 }
 0x19b   :  { %v2671_v42 = vadd.f32 %v2670_v41, %v2669_v11  ;;  %v1709_v45 = vadd.f32 %v2618_v40, %v1609_v26  ;;  %v2619_v46 = vpop.f32.mrb[72].mxu0 }
 0x19c   :  { %v2620_v18 = vpop.f32.mrb[73].mxu0 }
 0x19d   :  { %v2672_v47 = vpop.f32.mrb[72].mxu1  ;;  %v1809_v6 = vadd.f32 %v2671_v42, %v1709_v45  ;;  %v2621_v48 = vadd.f32 %v2620_v18, %v2619_v46 }
 0x19e   :  { %v2673_v49 = vpop.f32.mrb[73].mxu1 }
 0x19f   :  { %v2674_v52 = vadd.f32 %v2673_v49, %v2672_v47  ;;  %v1714_v53 = vadd.f32 %v2621_v48, %v1614_v50  ;;  %v2622_v35 = vpop.f32.mrb[74].mxu0 }
 0x1a0   :  { %v2623_v54 = vpop.f32.mrb[75].mxu0 }
 0x1a1   :  { %v2675_v30 = vpop.f32.mrb[74].mxu1  ;;  %v1814_v44 = vadd.f32 %v2674_v52, %v1714_v53  ;;  %v2624_v55 = vadd.f32 %v2623_v54, %v2622_v35 }
 0x1a2   :  { %v2676_v57 = vpop.f32.mrb[75].mxu1 }
 0x1a3   :  { %v2677_v59 = vadd.f32 %v2676_v57, %v2675_v30  ;;  %v1719_v51 = vadd.f32 %v2624_v55, %v1619_v43  ;;  %v2625_v60 = vpop.f32.mrb[76].mxu0 }
 0x1a4   :  { %v2626_v61 = vpop.f32.mrb[77].mxu0 }
 0x1a5   :  { %v2678_v62 = vpop.f32.mrb[76].mxu1  ;;  %v1819_v26 = vadd.f32 %v2677_v59, %v1719_v51  ;;  %v2627_v0 = vadd.f32 %v2626_v61, %v2625_v60 }
 0x1a6   :  { %v2679_v1 = vpop.f32.mrb[77].mxu1 }
 0x1a7   :  { %v2680_v2 = vadd.f32 %v2679_v1, %v2678_v62  ;;  %v1724_v3 = vadd.f32 %v2627_v0, %v1624_v56  ;;  %v2628_v4 = vpop.f32.mrb[78].mxu0 }
 0x1a8   :  { %v2629_v5 = vpop.f32.mrb[79].mxu0 }
 0x1a9   :  { %v2681_v7 = vpop.f32.mrb[78].mxu1  ;;  %v1824_v50 = vadd.f32 %v2680_v2, %v1724_v3  ;;  %v2630_v8 = vadd.f32 %v2629_v5, %v2628_v4 }
 0x1aa   :  { %v2682_v9 = vpop.f32.mrb[79].mxu1 }
 0x1ab   :  { %v2683_v10 = vadd.f32 %v2682_v9, %v2681_v7  ;;  %v1729_v12 = vadd.f32 %v2630_v8, %v1629_v58  ;;  %v2631_v13 = vpop.f32.mrb[80].mxu0 }
 0x1ac   :  { %v2632_v14 = vpop.f32.mrb[81].mxu0 }
 0x1ad   :  { %v2684_v15 = vpop.f32.mrb[80].mxu1  ;;  %v1829_v43 = vadd.f32 %v2683_v10, %v1729_v12  ;;  %v2633_v16 = vadd.f32 %v2632_v14, %v2631_v13 }
 0x1ae   :  { %v2685_v17 = vpop.f32.mrb[81].mxu1 }
 0x1af   :  { %v2686_v19 = vadd.f32 %v2685_v17, %v2684_v15  ;;  %v1734_v20 = vadd.f32 %v2633_v16, %v1634_v63  ;;  %v2634_v21 = vpop.f32.mrb[82].mxu0 }
 0x1b0   :  { %v2635_v22 = vpop.f32.mrb[83].mxu0 }
 0x1b1   :  { %v2687_v23 = vpop.f32.mrb[82].mxu1  ;;  %v1834_v56 = vadd.f32 %v2686_v19, %v1734_v20  ;;  %v2636_v24 = vadd.f32 %v2635_v22, %v2634_v21 }
 0x1b2   :  { %v2688_v25 = vpop.f32.mrb[83].mxu1 }
 0x1b3   :  { %v2689_v27 = vadd.f32 %v2688_v25, %v2687_v23  ;;  %v1739_v28 = vadd.f32 %v2636_v24, %v1639_v37 }
 0x1b5   :  { %v1839_v29 = vadd.f32 %v2689_v27, %v1739_v28 }
 0x1b7   :  { %v2722_v31 = vpop.f32.mrb[84].mxu0 }
 0x1b8   :  { %v2723_v32 = vpop.f32.mrb[85].mxu0 }
 0x1b9   :  { %v2724_v58 = vadd.f32 %v2723_v32, %v2722_v31  ;;  %v2008_v33 = vpop.f32.mrb[84].mxu1 }
 0x1ba   :  { %v2800_v34 = vpop.f32.mrb[85].mxu1 }
 0x1bb   :  { %v2725_v36 = vpop.f32.mrb[86].mxu0  ;;  %v1909_v38 = vadd.f32 %v2724_v58, %v1809_v6 }
 0x1bc   :  { %v2726_v39 = vpop.f32.mrb[87].mxu0 }
 0x1bd   :  { %v2009_v11 = vadd.f32 %v2008_v33, %v1909_v38  ;;  %v2727_v40 = vadd.f32 %v2726_v39, %v2725_v36  ;;  %v2013_v63 = vpop.f32.mrb[86].mxu1 }
 0x1be   :  { %v2803_v41 = vpop.f32.mrb[87].mxu1 }
 0x1bf   :  { %2042 = vst [vmem:[%s5190_s3] sm:$0xff] %v2009_v11  ;;  %v2728_v42 = vpop.f32.mrb[88].mxu0  ;;  %v1914_v45 = vadd.f32 %v2727_v40, %v1814_v44 }
 0x1c0   :  { %v2729_v37 = vpop.f32.mrb[89].mxu0 }
 0x1c1   :  { %v2014_v46 = vadd.f32 %v2013_v63, %v1914_v45  ;;  %v2730_v18 = vadd.f32 %v2729_v37, %v2728_v42  ;;  %v2018_v47 = vpop.f32.mrb[88].mxu1 }
 0x1c2   :  { %v2806_v48 = vpop.f32.mrb[89].mxu1 }
 0x1c3   :  { %2043 = vst [vmem:[%s5190_s3 + $0x8] sm:$0xff] %v2014_v46  ;;  %v2731_v6 = vpop.f32.mrb[90].mxu0  ;;  %v1919_v49 = vadd.f32 %v2730_v18, %v1819_v26 }
 0x1c4   :  { %v2732_v52 = vpop.f32.mrb[91].mxu0 }
 0x1c5   :  { %v2019_v53 = vadd.f32 %v2018_v47, %v1919_v49  ;;  %v2733_v35 = vadd.f32 %v2732_v52, %v2731_v6  ;;  %v2023_v54 = vpop.f32.mrb[90].mxu1 }
 0x1c6   :  { %v2809_v30 = vpop.f32.mrb[91].mxu1 }
 0x1c7   :  { %2044 = vst [vmem:[%s5190_s3 + $0x10] sm:$0xff] %v2019_v53  ;;  %v2734_v44 = vpop.f32.mrb[92].mxu0  ;;  %v1924_v55 = vadd.f32 %v2733_v35, %v1824_v50 }
 0x1c8   :  { %v2735_v57 = vpop.f32.mrb[93].mxu0 }
 0x1c9   :  { %v2024_v59 = vadd.f32 %v2023_v54, %v1924_v55  ;;  %v2736_v51 = vadd.f32 %v2735_v57, %v2734_v44  ;;  %v2028_v60 = vpop.f32.mrb[92].mxu1 }
 0x1ca   :  { %v2812_v61 = vpop.f32.mrb[93].mxu1 }
 0x1cb   :  { %2045 = vst [vmem:[%s5190_s3 + $0x18] sm:$0xff] %v2024_v59  ;;  %v2737_v62 = vpop.f32.mrb[94].mxu0  ;;  %v1929_v26 = vadd.f32 %v2736_v51, %v1829_v43 }
 0x1cc   :  { %v2738_v0 = vpop.f32.mrb[95].mxu0 }
 0x1cd   :  { %v2029_v1 = vadd.f32 %v2028_v60, %v1929_v26  ;;  %v2739_v2 = vadd.f32 %v2738_v0, %v2737_v62  ;;  %v2033_v3 = vpop.f32.mrb[94].mxu1 }
 0x1ce   :  { %v2815_v4 = vpop.f32.mrb[95].mxu1 }
 0x1cf   :  { %2046 = vst [vmem:[%s5190_s3 + $0x20] sm:$0xff] %v2029_v1  ;;  %v2740_v5 = vpop.f32.mrb[96].mxu0  ;;  %v1934_v7 = vadd.f32 %v2739_v2, %v1834_v56 }
 0x1d0   :  { %v2741_v50 = vpop.f32.mrb[97].mxu0 }
 0x1d1   :  { %v2034_v8 = vadd.f32 %v2033_v3, %v1934_v7  ;;  %v2742_v9 = vadd.f32 %v2741_v50, %v2740_v5  ;;  %v2038_v10 = vpop.f32.mrb[96].mxu1 }
 0x1d2   :  { %v2818_v12 = vpop.f32.mrb[97].mxu1 }
 0x1d3   :  { %2047 = vst [vmem:[%s5190_s3 + $0x28] sm:$0xff] %v2034_v8  ;;  %v1939_v13 = vadd.f32 %v2742_v9, %v1839_v29 }
 0x1d5   :  { %v2039_v14 = vadd.f32 %v2038_v10, %v1939_v13 }
 0x1d7   :  { %2048 = vst [vmem:[%s5190_s3 + $0x30] sm:$0xff] %v2039_v14 }

// kernel: _lambda_.5
= control target key start
LH: loop header
LB: loop body
LE: loop exit
PB: predicated region body
PF: predicated region fallthrough
CT: control target
= control target key end

     0   :  { %v3702_v7 = vmov 0.0   ;;  %s5333_s0 = inlined_call_operand.vmem [shape: f32[12,400], index: 0, kind: input, shape index: {}]   ;;  %s5334_s1 = inlined_call_operand.vmem [shape: f32[2,384], index: 1, kind: input, shape index: {}]   ;;  %s5335_s2 = inlined_call_operand.vmem [shape: f32[400,256], index: 2, kind: input, shape index: {}]   ;;  %s5336_s3 = inlined_call_operand.vmem [shape: f32[64,256], index: 3, kind: input, shape index: {}]   ;;  %s5337_s4 = inlined_call_operand.vmem [shape: f32[1,256], index: 4, kind: input, shape index: {}]   ;;  %s5338_s5 = inlined_call_operand.vmem [shape: f32[64,256], index: 5, kind: input, shape index: {}]   ;;  %s5339_s6 = inlined_call_operand.vmem [shape: f32[64,256], index: 6, kind: input, shape index: {}]   ;;  %s5340_s7 = inlined_call_operand.vmem [shape: f32[1,256], index: 7, kind: input, shape index: {}]   ;;  %s5341_s8 = inlined_call_operand.vmem [shape: f32[384,400], index: 8, kind: input, shape index: {}]   ;;  %s5342_s9 = inlined_call_operand.vmem [shape: f32[64,400], index: 9, kind: input, shape index: {}]   ;;  %s5343_s10 = inlined_call_operand.vmem [shape: f32[1,400], index: 10, kind: input, shape index: {}]   ;;  %s5344_s11 = inlined_call_operand.hbm [shape: f32[2,400], index: 11, kind: output, shape index: {}]  }
   0x1   :  { %v48_v0 = vld [vmem:[%s5335_s2 + $0x8] sm:$0xff]  ;;  %v50_v1 = vld [vmem:[%s5335_s2 + $0x18] sm:$0xff]  ;;  %v47_v2 = vld [vmem:[%s5335_s2] sm:$0xff]  ;;  %1106 = vmatprep.mubr.f32.mxu0 %v3702_v7 }
   0x2   :  { %v2873_v3 = vpack.c.bf16 %v50_v1, %v48_v0  ;;  %v49_v4 = vld [vmem:[%s5335_s2 + $0x10] sm:$0xff]  ;;  %v52_v5 = vld [vmem:[%s5335_s2 + $0x28] sm:$0xff]  ;;  %v54_v6 = vld [vmem:[%s5335_s2 + $0x38] sm:$0xff] }
   0x3   :  { %v2875_v8 = vpack.c.bf16 %v49_v4, %v47_v2  ;;  %v2877_v9 = vpack.c.bf16 %v54_v6, %v52_v5  ;;  %v51_v10 = vld [vmem:[%s5335_s2 + $0x20] sm:$0xff]  ;;  %v53_v11 = vld [vmem:[%s5335_s2 + $0x30] sm:$0xff]  ;;  %v56_v12 = vld [vmem:[%s5335_s2 + $0x48] sm:$0xff] }
   0x4   :  { %2874 = vmatprep.subr.bf16.mxu1 %v2873_v3  ;;  %v58_v13 = vld [vmem:[%s5335_s2 + $0x58] sm:$0xff]  ;;  %v2879_v14 = vpack.c.bf16 %v53_v11, %v51_v10  ;;  %v55_v16 = vld [vmem:[%s5335_s2 + $0x40] sm:$0xff]  ;;  %v57_v17 = vld [vmem:[%s5335_s2 + $0x50] sm:$0xff] }
   0x5   :  { %2876 = vmatpush1.bf16.msra.mxu1 %v2875_v8  ;;  %v2881_v15 = vpack.c.bf16 %v58_v13, %v56_v12  ;;  %v60_v18 = vld [vmem:[%s5335_s2 + $0x68] sm:$0xff]  ;;  %v62_v19 = vld [vmem:[%s5335_s2 + $0x78] sm:$0xff]  ;;  %v2883_v20 = vpack.c.bf16 %v57_v17, %v55_v16  ;;  %v59_v22 = vld [vmem:[%s5335_s2 + $0x60] sm:$0xff] }
   0x6   :  { %2878 = vmatprep.subr.bf16.mxu1 %v2877_v9  ;;  %v2885_v21 = vpack.c.bf16 %v62_v19, %v60_v18  ;;  %v61_v23 = vld [vmem:[%s5335_s2 + $0x70] sm:$0xff]  ;;  %v64_v24 = vld [vmem:[%s5335_s2 + $0x88] sm:$0xff]  ;;  %v66_v25 = vld [vmem:[%s5335_s2 + $0x98] sm:$0xff] }
   0x7   :  { %v2887_v26 = vpack.c.bf16 %v61_v23, %v59_v22  ;;  %v2889_v27 = vpack.c.bf16 %v66_v25, %v64_v24  ;;  %v63_v28 = vld [vmem:[%s5335_s2 + $0x80] sm:$0xff]  ;;  %v65_v29 = vld [vmem:[%s5335_s2 + $0x90] sm:$0xff]  ;;  %v68_v30 = vld [vmem:[%s5335_s2 + $0xa8] sm:$0xff] }
   0x8   :  { %v70_v31 = vld [vmem:[%s5335_s2 + $0xb8] sm:$0xff]  ;;  %v2891_v32 = vpack.c.bf16 %v65_v29, %v63_v28  ;;  %v67_v34 = vld [vmem:[%s5335_s2 + $0xa0] sm:$0xff]  ;;  %v69_v35 = vld [vmem:[%s5335_s2 + $0xb0] sm:$0xff] }
   0x9   :  { %2880 = vmatpush1.bf16.msra.mxu1 %v2879_v14  ;;  %v2893_v33 = vpack.c.bf16 %v70_v31, %v68_v30  ;;  %v72_v36 = vld [vmem:[%s5335_s2 + $0xc8] sm:$0xff]  ;;  %v74_v37 = vld [vmem:[%s5335_s2 + $0xd8] sm:$0xff]  ;;  %v2895_v38 = vpack.c.bf16 %v69_v35, %v67_v34  ;;  %v71_v40 = vld [vmem:[%s5335_s2 + $0xc0] sm:$0xff] }
   0xa   :  { %2882 = vmatprep.subr.bf16.mxu1 %v2881_v15  ;;  %v2897_v39 = vpack.c.bf16 %v74_v37, %v72_v36  ;;  %v73_v41 = vld [vmem:[%s5335_s2 + $0xd0] sm:$0xff]  ;;  %v40_v42 = vld [vmem:[%s5333_s0 + $0x8] sm:$0xff]  ;;  %v78_v44 = vld [vmem:[%s5335_s2 + $0xf8] sm:$0xff] }
   0xb   :  { %v76_v43 = vld [vmem:[%s5335_s2 + $0xe8] sm:$0xff]  ;;  %230 = vmatprep.mubr.f32.mxu1 %v40_v42  ;;  %v2899_v45 = vpack.c.bf16 %v73_v41, %v71_v40  ;;  %v75_v47 = vld [vmem:[%s5335_s2 + $0xe0] sm:$0xff]  ;;  %v77_v48 = vld [vmem:[%s5335_s2 + $0xf0] sm:$0xff] }
   0xc   :  { %v2901_v46 = vpack.c.bf16 %v78_v44, %v76_v43  ;;  %v80_v49 = vld [vmem:[%s5335_s2 + $0x108] sm:$0xff]  ;;  %v82_v50 = vld [vmem:[%s5335_s2 + $0x118] sm:$0xff]  ;;  %v2903_v51 = vpack.c.bf16 %v77_v48, %v75_v47  ;;  %v79_v53 = vld [vmem:[%s5335_s2 + $0x100] sm:$0xff] }
   0xd   :  { %2884 = vmatpush1.bf16.msra.mxu1 %v2883_v20  ;;  %v2905_v52 = vpack.c.bf16 %v82_v50, %v80_v49  ;;  %v81_v54 = vld [vmem:[%s5335_s2 + $0x110] sm:$0xff]  ;;  %v84_v55 = vld [vmem:[%s5335_s2 + $0x128] sm:$0xff]  ;;  %v86_v56 = vld [vmem:[%s5335_s2 + $0x138] sm:$0xff] }
   0xe   :  { %2886 = vmatprep.subr.bf16.mxu1 %v2885_v21  ;;  %v2907_v57 = vpack.c.bf16 %v81_v54, %v79_v53  ;;  %v2909_v58 = vpack.c.bf16 %v86_v56, %v84_v55  ;;  %v83_v59 = vld [vmem:[%s5335_s2 + $0x120] sm:$0xff]  ;;  %v85_v60 = vld [vmem:[%s5335_s2 + $0x130] sm:$0xff]  ;;  %v88_v61 = vld [vmem:[%s5335_s2 + $0x148] sm:$0xff] }
   0xf   :  { %v90_v62 = vld [vmem:[%s5335_s2 + $0x158] sm:$0xff]  ;;  %v2911_v63 = vpack.c.bf16 %v85_v60, %v83_v59  ;;  %v87_v1 = vld [vmem:[%s5335_s2 + $0x140] sm:$0xff]  ;;  %v89_v2 = vld [vmem:[%s5335_s2 + $0x150] sm:$0xff] }
  0x10   :  { %v2913_v0 = vpack.c.bf16 %v90_v62, %v88_v61  ;;  %v92_v3 = vld [vmem:[%s5335_s2 + $0x168] sm:$0xff]  ;;  %v94_v4 = vld [vmem:[%s5335_s2 + $0x178] sm:$0xff]  ;;  %v2915_v5 = vpack.c.bf16 %v89_v2, %v87_v1  ;;  %v91_v8 = vld [vmem:[%s5335_s2 + $0x160] sm:$0xff] }
  0x11   :  { %2888 = vmatpush1.bf16.msra.mxu1 %v2887_v26  ;;  %v2917_v6 = vpack.c.bf16 %v94_v4, %v92_v3  ;;  %v93_v9 = vld [vmem:[%s5335_s2 + $0x170] sm:$0xff] }
  0x12   :  { %2890 = vmatprep.subr.bf16.mxu1 %v2889_v27 }
  0x15   :  { %2892 = vmatpush1.bf16.msra.mxu1 %v2891_v32 }
  0x16   :  { %2894 = vmatprep.subr.bf16.mxu1 %v2893_v33 }
  0x19   :  { %2896 = vmatpush1.bf16.msra.mxu1 %v2895_v38 }
  0x1a   :  { %2898 = vmatprep.subr.bf16.mxu1 %v2897_v39 }
  0x1d   :  { %2900 = vmatpush1.bf16.msra.mxu1 %v2899_v45 }
  0x1e   :  { %2902 = vmatprep.subr.bf16.mxu1 %v2901_v46 }
  0x21   :  { %2904 = vmatpush1.bf16.msra.mxu1 %v2903_v51 }
  0x22   :  { %2906 = vmatprep.subr.bf16.mxu1 %v2905_v52 }
  0x25   :  { %2908 = vmatpush1.bf16.msra.mxu1 %v2907_v57 }
  0x26   :  { %2910 = vmatprep.subr.bf16.mxu1 %v2909_v58 }
  0x29   :  { %2912 = vmatpush1.bf16.msra.mxu1 %v2911_v63 }
  0x2a   :  { %2914 = vmatprep.subr.bf16.mxu1 %v2913_v0 }
  0x2b   :  { %16 = vsyncpa [#allocation3], 0  ;;  %v96_v10 = vld [vmem:[%s5335_s2 + $0x188] sm:$0xff]  ;;  %v98_v11 = vld [vmem:[%s5335_s2 + $0x198] sm:$0xff]  ;;  %v2919_v12 = vpack.c.bf16 %v93_v9, %v91_v8  ;;  %vm159_vm0 = vcmask 130048   ;;  %vm369_vm1 = vcmask 523264  }
  0x2c   :  { %v2921_v13 = vpack.c.bf16 %v98_v11, %v96_v10  ;;  %v95_v14 = vld [vmem:[%s5335_s2 + $0x180] sm:$0xff]  ;;  %v97_v15 = vld [vmem:[%s5335_s2 + $0x190] sm:$0xff]  ;;  %v100_v16 = vld [vmem:[%s5335_s2 + $0x1a8] sm:$0xff]  ;;  %vm2803_vm2 = vcmask 1041408   ;;  %vm2804_vm3 = vcmask 1043458   ;;  %vm2806_vm5 = vcmask 1045508  }
  0x2d   :  { %2916 = vmatpush1.bf16.msra.mxu1 %v2915_v5  ;;  %v102_v17 = vld [vmem:[%s5335_s2 + $0x1b8] sm:$0xff]  ;;  %v2923_v18 = vpack.c.bf16 %v97_v15, %v95_v14  ;;  %v99_v20 = vld [vmem:[%s5335_s2 + $0x1a0] sm:$0xff]  ;;  %v101_v21 = vld [vmem:[%s5335_s2 + $0x1b0] sm:$0xff]  ;;  %vm2808_vm7 = vcmask 130054  }
  0x2e   :  { %2918 = vmatprep.subr.bf16.mxu1 %v2917_v6  ;;  %v2925_v19 = vpack.c.bf16 %v102_v17, %v100_v16  ;;  %v104_v22 = vld [vmem:[%s5335_s2 + $0x1c8] sm:$0xff]  ;;  %v106_v23 = vld [vmem:[%s5335_s2 + $0x1d8] sm:$0xff]  ;;  %v2927_v24 = vpack.c.bf16 %v101_v21, %v99_v20  ;;  %v103_v26 = vld [vmem:[%s5335_s2 + $0x1c0] sm:$0xff] }
  0x2f   :  { %v2929_v25 = vpack.c.bf16 %v106_v23, %v104_v22  ;;  %v105_v27 = vld [vmem:[%s5335_s2 + $0x1d0] sm:$0xff]  ;;  %v108_v28 = vld [vmem:[%s5335_s2 + $0x1e8] sm:$0xff]  ;;  %v110_v29 = vld [vmem:[%s5335_s2 + $0x1f8] sm:$0xff] }
  0x30   :  { %v2931_v30 = vpack.c.bf16 %v105_v27, %v103_v26  ;;  %v2933_v31 = vpack.c.bf16 %v110_v29, %v108_v28  ;;  %v107_v32 = vld [vmem:[%s5335_s2 + $0x1e0] sm:$0xff]  ;;  %v109_v33 = vld [vmem:[%s5335_s2 + $0x1f0] sm:$0xff]  ;;  %v112_v34 = vld [vmem:[%s5335_s2 + $0x208] sm:$0xff] }
  0x31   :  { %2920 = vmatpush1.bf16.msra.mxu1 %v2919_v12  ;;  %v114_v35 = vld [vmem:[%s5335_s2 + $0x218] sm:$0xff]  ;;  %v2935_v36 = vpack.c.bf16 %v109_v33, %v107_v32  ;;  %v111_v38 = vld [vmem:[%s5335_s2 + $0x200] sm:$0xff]  ;;  %v113_v39 = vld [vmem:[%s5335_s2 + $0x210] sm:$0xff] }
  0x32   :  { %2922 = vmatprep.subr.bf16.mxu1 %v2921_v13  ;;  %v2937_v37 = vpack.c.bf16 %v114_v35, %v112_v34  ;;  %v116_v40 = vld [vmem:[%s5335_s2 + $0x228] sm:$0xff]  ;;  %v118_v41 = vld [vmem:[%s5335_s2 + $0x238] sm:$0xff]  ;;  %v39_v42 = vld [vmem:[%s5333_s0] sm:$0xff]  ;;  %v2939_v43 = vpack.c.bf16 %v113_v39, %v111_v38 }
  0x33   :  { %v2941_v44 = vpack.c.bf16 %v118_v41, %v116_v40  ;;  %v115_v45 = vld [vmem:[%s5335_s2 + $0x220] sm:$0xff]  ;;  %v117_v46 = vld [vmem:[%s5335_s2 + $0x230] sm:$0xff]  ;;  %v44_v47 = vld [vmem:[%s5333_s0 + $0x28] sm:$0xf] }
  0x34   :  { %v120_v48 = vld [vmem:[%s5335_s2 + $0x248] sm:$0xff]  ;;  %v122_v49 = vld [vmem:[%s5335_s2 + $0x258] sm:$0xff]  ;;  %v2943_v50 = vpack.c.bf16 %v117_v46, %v115_v45  ;;  %v43_v51 = vld [vmem:[%s5333_s0 + $0x20] sm:$0xf] }
  0x35   :  { %2924 = vmatpush1.bf16.msra.mxu1 %v2923_v18  ;;  %v2945_v52 = vpack.c.bf16 %v122_v49, %v120_v48  ;;  %v119_v53 = vld [vmem:[%s5335_s2 + $0x240] sm:$0xff]  ;;  %v121_v54 = vld [vmem:[%s5335_s2 + $0x250] sm:$0xff]  ;;  %v42_v55 = vld [vmem:[%s5333_s0 + $0x18] sm:$0xff] }
  0x36   :  { %2926 = vmatprep.subr.bf16.mxu1 %v2925_v19  ;;  %v124_v56 = vld [vmem:[%s5335_s2 + $0x268] sm:$0xff]  ;;  %v126_v57 = vld [vmem:[%s5335_s2 + $0x278] sm:$0xff]  ;;  %v2947_v58 = vpack.c.bf16 %v121_v54, %v119_v53  ;;  %v123_v60 = vld [vmem:[%s5335_s2 + $0x260] sm:$0xff] }
  0x37   :  { %v2949_v59 = vpack.c.bf16 %v126_v57, %v124_v56  ;;  %v125_v61 = vld [vmem:[%s5335_s2 + $0x270] sm:$0xff]  ;;  %v128_v62 = vld [vmem:[%s5335_s2 + $0x288] sm:$0xff]  ;;  %v130_v63 = vld [vmem:[%s5335_s2 + $0x298] sm:$0xff]  ;;  %v149_v57 = vlaneseq }
  0x38   :  { %v2951_v0 = vpack.c.bf16 %v125_v61, %v123_v60  ;;  %v2953_v1 = vpack.c.bf16 %v130_v63, %v128_v62  ;;  %v127_v2 = vld [vmem:[%s5335_s2 + $0x280] sm:$0xff]  ;;  %v129_v3 = vld [vmem:[%s5335_s2 + $0x290] sm:$0xff]  ;;  %v132_v4 = vld [vmem:[%s5335_s2 + $0x2a8] sm:$0xff] }
  0x39   :  { %2928 = vmatpush1.bf16.msra.mxu1 %v2927_v24  ;;  %v134_v5 = vld [vmem:[%s5335_s2 + $0x2b8] sm:$0xff]  ;;  %v2955_v6 = vpack.c.bf16 %v129_v3, %v127_v2  ;;  %v131_v9 = vld [vmem:[%s5335_s2 + $0x2a0] sm:$0xff]  ;;  %v133_v10 = vld [vmem:[%s5335_s2 + $0x2b0] sm:$0xff] }
  0x3a   :  { %2930 = vmatprep.subr.bf16.mxu1 %v2929_v25  ;;  %v2957_v8 = vpack.c.bf16 %v134_v5, %v132_v4  ;;  %v136_v11 = vld [vmem:[%s5335_s2 + $0x2c8] sm:$0xff]  ;;  %v138_v12 = vld [vmem:[%s5335_s2 + $0x2d8] sm:$0xff]  ;;  %v2959_v13 = vpack.c.bf16 %v133_v10, %v131_v9  ;;  %v135_v15 = vld [vmem:[%s5335_s2 + $0x2c0] sm:$0xff] }
  0x3b   :  { %v2961_v14 = vpack.c.bf16 %v138_v12, %v136_v11  ;;  %v137_v16 = vld [vmem:[%s5335_s2 + $0x2d0] sm:$0xff]  ;;  %v140_v17 = vld [vmem:[%s5335_s2 + $0x2e8] sm:$0xff]  ;;  %v142_v18 = vld [vmem:[%s5335_s2 + $0x2f8] sm:$0xff] }
  0x3c   :  { %v2963_v19 = vpack.c.bf16 %v137_v16, %v135_v15  ;;  %v2965_v20 = vpack.c.bf16 %v142_v18, %v140_v17  ;;  %v139_v21 = vld [vmem:[%s5335_s2 + $0x2e0] sm:$0xff]  ;;  %v141_v22 = vld [vmem:[%s5335_s2 + $0x2f0] sm:$0xff]  ;;  %v144_v23 = vld [vmem:[%s5335_s2 + $0x308] sm:$0xff] }
  0x3d   :  { %2932 = vmatpush1.bf16.msra.mxu1 %v2931_v30  ;;  %v146_v24 = vld [vmem:[%s5335_s2 + $0x318] sm:$0xff]  ;;  %v2967_v25 = vpack.c.bf16 %v141_v22, %v139_v21  ;;  %v143_v27 = vld [vmem:[%s5335_s2 + $0x300] sm:$0xff]  ;;  %v145_v28 = vld [vmem:[%s5335_s2 + $0x310] sm:$0xff] }
  0x3e   :  { %2934 = vmatprep.subr.bf16.mxu1 %v2933_v31  ;;  %v2969_v26 = vpack.c.bf16 %v146_v24, %v144_v23  ;;  %v321_v29 = vld [vmem:[%s5336_s3 + $0x8] sm:$0xff]  ;;  %v323_v30 = vld [vmem:[%s5336_s3 + $0x18] sm:$0xff]  ;;  %v2971_v31 = vpack.c.bf16 %v145_v28, %v143_v27  ;;  %v320_v33 = vld [vmem:[%s5336_s3] sm:$0xff] }
  0x3f   :  { %v4089_v32 = vpack.c.bf16 %v323_v30, %v321_v29  ;;  %v322_v34 = vld [vmem:[%s5336_s3 + $0x10] sm:$0xff]  ;;  %v325_v35 = vld [vmem:[%s5336_s3 + $0x28] sm:$0xff]  ;;  %v46_v39 = vld [vmem:[%s5333_s0 + $0x38] sm:$0xf] }
  0x40   :  { %v4106_v38 = vpack.c.bf16 %v322_v34, %v320_v33  ;;  %v324_v41 = vld [vmem:[%s5336_s3 + $0x20] sm:$0xff]  ;;  %v45_v45 = vld [vmem:[%s5333_s0 + $0x30] sm:$0xf]  ;;  %v357_v24 = vld [vmem:[%s5339_s6 + $0x28] sm:$0xff] }
  0x41   :  { %2936 = vmatpush1.bf16.msra.mxu1 %v2935_v36  ;;  %v327_v36 = vld [vmem:[%s5336_s3 + $0x38] sm:$0xff]  ;;  %v328_v48 = vld [vmem:[%s5336_s3 + $0x40] sm:$0xff]  ;;  %v330_v49 = vld [vmem:[%s5336_s3 + $0x50] sm:$0xff] }
  0x42   :  { %2938 = vmatprep.subr.bf16.mxu1 %v2937_v37  ;;  %v41_v37 = vld [vmem:[%s5333_s0 + $0x10] sm:$0xff]  ;;  %v4112_v40 = vpack.c.bf16 %v327_v36, %v325_v35  ;;  %v332_v54 = vld [vmem:[%s5336_s3 + $0x60] sm:$0xff]  ;;  %v361_v30 = vld [vmem:[%s5339_s6 + $0x48] sm:$0xff] }
  0x43   :  { %v147_v60 = vld [vmem:[%s5337_s4] sm:$0x3]  ;;  %s3703_s4 = smov 64   ;;  %v354_v23 = vld [vmem:[%s5339_s6 + $0x10] sm:$0xff]  ;;  %vm2805_vm4 = vmor %vm2804_vm3, %vm2803_vm2 }
  0x44   :  { %231 = vmatmul.mubr.f32.vlgmr.msra.gmra.mrb[0].mxu1 %v39_v42  ;;  %v326_v42 = vld [vmem:[%s5336_s3 + $0x30] sm:$0xff]  ;;  %v352_v21 = vld [vmem:[%s5339_s6] sm:$0xff]  ;;  %vm2807_vm6 = vmor %vm2806_vm5, %vm2805_vm4 }
  0x45   :  { %2940 = vmatpush1.bf16.msra.mxu1 %v2939_v43  ;;  %236 = vmatprep.mubr.f32.mxu1 %v44_v47  ;;  %v329_v43 = vld [vmem:[%s5336_s3 + $0x48] sm:$0xff]  ;;  %v4131_v46 = vpack.c.bf16 %v326_v42, %v324_v41  ;;  %v356_v28 = vld [vmem:[%s5339_s6 + $0x20] sm:$0xff]  ;;  %v358_v29 = vld [vmem:[%s5339_s6 + $0x30] sm:$0xff] }
  0x46   :  { %2942 = vmatprep.subr.bf16.mxu1 %v2941_v44  ;;  %v331_v44 = vld [vmem:[%s5336_s3 + $0x58] sm:$0xff]  ;;  %v4237_v33 = vpack.c.bf16 %v358_v29, %v356_v28  ;;  %v360_v35 = vld [vmem:[%s5339_s6 + $0x40] sm:$0xff]  ;;  %v362_v36 = vld [vmem:[%s5339_s6 + $0x50] sm:$0xff] }
  0x47   :  { %v4134_v47 = vpack.c.bf16 %v331_v44, %v329_v43  ;;  %v4257_v41 = vpack.c.bf16 %v362_v36, %v360_v35  ;;  %v364_v43 = vld [vmem:[%s5339_s6 + $0x60] sm:$0xff]  ;;  %v366_v44 = vld [vmem:[%s5339_s6 + $0x70] sm:$0xff]  ;;  %vm2809_vm8 = vmor %vm2808_vm7, %vm2807_vm6 }
  0x48   :  { %237 = vmatmul.mubr.f32.gmra.mrb[2].mxu1 %v43_v51  ;;  %v335_v51 = vld [vmem:[%s5336_s3 + $0x78] sm:$0xff] }
  0x49   :  { %2944 = vmatpush1.bf16.msra.mxu1 %v2943_v50  ;;  %2825 = vmatprep.mubr.msk.f32.mxu1 %vm159_vm0, %v42_v55  ;;  %v333_v50 = vld [vmem:[%s5336_s3 + $0x68] sm:$0xff]  ;;  %v334_v55 = vld [vmem:[%s5336_s3 + $0x70] sm:$0xff] }
  0x4a   :  { %2946 = vmatprep.subr.bf16.mxu1 %v2945_v52  ;;  %v4149_v52 = vpack.c.bf16 %v330_v49, %v328_v48  ;;  %v4153_v53 = vpack.c.bf16 %v335_v51, %v333_v50  ;;  %v4162_v56 = vpack.c.bf16 %v334_v55, %v332_v54  ;;  %v339_v48 = vld [vmem:[%s5338_s5 + $0x18] sm:$0xff]  ;;  %v4277_v49 = vpack.c.bf16 %v366_v44, %v364_v43  ;;  %v336_v51 = vld [vmem:[%s5338_s5] sm:$0xff]  ;;  %v338_v54 = vld [vmem:[%s5338_s5 + $0x10] sm:$0xff] }
  0x4b   :  { %v341_v55 = vld [vmem:[%s5338_s5 + $0x28] sm:$0xff] }
  0x4d   :  { %2948 = vmatpush1.bf16.msra.mxu1 %v2947_v58  ;;  %v4168_v58 = vshrl.u32 %v149_v57, 7  ;;  %v343_v57 = vld [vmem:[%s5338_s5 + $0x38] sm:$0xff] }
  0x4e   :  { %2950 = vmatprep.subr.bf16.mxu1 %v2949_v59 }
  0x4f   :  { %v4171_v59 = vsub.s32 0, %v4168_v58  ;;  %v4177_v62 = vsub.s32 1, %v4168_v58 }
  0x51   :  { %2952 = vmatpush1.bf16.msra.mxu1 %v2951_v0  ;;  %v152_v0 = vrot.slane %v147_v60, %v4171_v59 }
  0x52   :  { %2954 = vmatprep.subr.bf16.mxu1 %v2953_v1  ;;  %v156_v1 = vrot.slane %v147_v60, %v4177_v62  ;;  %v4297_v60 = vpack.c.bf16 %v338_v54, %v336_v51 }
  0x55   :  { %2956 = vmatpush1.bf16.msra.mxu1 %v2955_v6 }
  0x56   :  { %2958 = vmatprep.subr.bf16.mxu1 %v2957_v8 }
  0x59   :  { %2960 = vmatpush1.bf16.msra.mxu1 %v2959_v13 }
  0x5a   :  { %2962 = vmatprep.subr.bf16.mxu1 %v2961_v14 }
  0x5d   :  { %2964 = vmatpush1.bf16.msra.mxu1 %v2963_v19  ;;  %v353_v19 = vld [vmem:[%s5339_s6 + $0x8] sm:$0xff] }
  0x5e   :  { %2966 = vmatprep.subr.bf16.mxu1 %v2965_v20  ;;  %v355_v20 = vld [vmem:[%s5339_s6 + $0x18] sm:$0xff] }
  0x5f   :  { %v4207_v22 = vpack.c.bf16 %v355_v20, %v353_v19  ;;  %v350_v19 = vld [vmem:[%s5338_s5 + $0x70] sm:$0xff] }
  0x61   :  { %2968 = vmatpush1.bf16.msra.mxu1 %v2967_v25  ;;  %v359_v25 = vld [vmem:[%s5339_s6 + $0x38] sm:$0xff]  ;;  %3086 = vmatprep.subr.bf16.mxu0 %v4207_v22 }
  0x62   :  { %2970 = vmatprep.subr.bf16.mxu1 %v2969_v26  ;;  %v4218_v26 = vpack.c.bf16 %v354_v23, %v352_v21  ;;  %v4220_v27 = vpack.c.bf16 %v359_v25, %v357_v24 }
  0x64   :  { %3088 = vmatpush1.bf16.msra.mxu0 %v4218_v26 }
  0x65   :  { %2972 = vmatpush1.bf16.msra.mxu1 %v2971_v31  ;;  %v363_v31 = vld [vmem:[%s5339_s6 + $0x58] sm:$0xff]  ;;  %3090 = vmatprep.subr.bf16.mxu0 %v4220_v27 }
  0x66   :  { %2974 = vmatprep.subr.bf16.mxu1 %v4089_v32  ;;  %v4241_v34 = vpack.c.bf16 %v363_v31, %v361_v30 }
  0x68   :  { %308 = vmatmul.mubr.f32.vlgmr.msra.gmra.mrb[0].mxu1 %v41_v37  ;;  %v365_v37 = vld [vmem:[%s5339_s6 + $0x68] sm:$0xff]  ;;  %3092 = vmatpush1.bf16.msra.mxu0 %v4237_v33 }
  0x69   :  { %2976 = vmatpush1.bf16.msra.mxu1 %v4106_v38  ;;  %2826 = vmatprep.mubr.msk.f32.mxu1 %vm159_vm0, %v46_v39  ;;  %v367_v39 = vld [vmem:[%s5339_s6 + $0x78] sm:$0xff] }
  0x6a   :  { %2978 = vmatprep.subr.bf16.mxu1 %v4112_v40  ;;  %v4261_v42 = vpack.c.bf16 %v367_v39, %v365_v37  ;;  %3094 = vmatprep.subr.bf16.mxu0 %v4241_v34 }
  0x6c   :  { %314 = vmatmul.mubr.f32.gmra.mrb[2].mxu1 %v45_v45  ;;  %v337_v45 = vld [vmem:[%s5338_s5 + $0x8] sm:$0xff]  ;;  %3096 = vmatpush1.bf16.msra.mxu0 %v4257_v41 }
  0x6d   :  { %2980 = vmatpush1.bf16.msra.mxu1 %v4131_v46  ;;  %437 = vmatprep.mubr.f32.mxu1 %v3702_v7  ;;  %v4281_v50 = vpack.c.bf16 %v339_v48, %v337_v45 }
  0x6e   :  { %2982 = vmatprep.subr.bf16.mxu1 %v4134_v47  ;;  %3098 = vmatprep.subr.bf16.mxu0 %v4261_v42 }
  0x70   :  { %3100 = vmatpush1.bf16.msra.mxu0 %v4277_v49 }
  0x71   :  { %2984 = vmatpush1.bf16.msra.mxu1 %v4149_v52  ;;  %3102 = vmatprep.subr.bf16.mxu0 %v4281_v50 }
  0x72   :  { %2986 = vmatprep.subr.bf16.mxu1 %v4153_v53 }
  0x75   :  { %2988 = vmatpush1.bf16.msra.mxu1 %v4162_v56 }
  0x76   :  { %2990 = vmatprep.subr.bf16.mxu1 %v4207_v22 }
  0x78   :  { %438 = vmatmul.mubr.f32.vlgmr.msra.gmra.mrb[4].mxu1 %v3702_v7 }
  0x79   :  { %532 = vmatprep.mubr.f32.mxu1 %v3702_v7  ;;  %2992 = vmatpush1.bf16.msra.mxu1 %v4218_v26 }
  0x7a   :  { %2994 = vmatprep.subr.bf16.mxu1 %v4220_v27 }
  0x7d   :  { %2996 = vmatpush1.bf16.msra.mxu1 %v4237_v33 }
  0x7e   :  { %2998 = vmatprep.subr.bf16.mxu1 %v4241_v34 }
  0x81   :  { %3000 = vmatpush1.bf16.msra.mxu1 %v4257_v41 }
  0x82   :  { %3002 = vmatprep.subr.bf16.mxu1 %v4261_v42 }
  0x85   :  { %3004 = vmatpush1.bf16.msra.mxu1 %v4277_v49 }
  0x86   :  { %3006 = vmatprep.subr.bf16.mxu1 %v4281_v50 }
  0x88   :  { %533 = vmatmul.mubr.f32.vlgmr.msra.gmra.mrb[6].mxu1 %v3702_v7 }
  0x89   :  { %3008 = vmatpush1.bf16.msra.mxu1 %v4297_v60  ;;  %608 = vmatprep.mubr.f32.mxu1 %v3702_v7 }
 0x13b   :  { %v309_v61 = vpop.f32.mrb[0].mxu1 }
 0x13c   :  { %v311_v63 = vpop.f32.mrb[1].mxu1  ;;  %v4185_v6 = vadd.f32 %v309_v61, %v152_v0  ;;  %v4301_v61 = vpack.c.bf16 %v343_v57, %v341_v55 }
 0x13d   :  { %v4188_v12 = vadd.f32 %v311_v63, %v156_v1  ;;  %v340_v63 = vld [vmem:[%s5338_s5 + $0x20] sm:$0xff] }
 0x13e   :  { %3010 = vmatprep.subr.bf16.mxu1 %v4301_v61 }
 0x13f   :  { %v315_v2 = vpop.f32.mrb[2].mxu1 }
 0x140   :  { %v4181_v3 = vadd.f32 %v315_v2, %v152_v0  ;;  %v317_v4 = vpop.f32.mrb[3].mxu1  ;;  %v342_v0 = vld [vmem:[%s5338_s5 + $0x30] sm:$0xff]  ;;  %v347_v2 = vld [vmem:[%s5338_s5 + $0x58] sm:$0xff] }
 0x141   :  { %v4183_v5 = vadd.f32 %v317_v4, %v156_v1  ;;  %v345_v1 = vld [vmem:[%s5338_s5 + $0x48] sm:$0xff]  ;;  %v4318_v4 = vpack.c.bf16 %v342_v0, %v340_v63 }
 0x143   :  { %3012 = vmatpush1.bf16.msra.mxu1 %v4318_v4 }
 0x14b   :  { %v439_v8 = vpop.f32.mrb[4].mxu1 }
 0x14c   :  { %v444_v9 = vadd.f32 %v4185_v6, %v439_v8  ;;  %v441_v10 = vpop.f32.mrb[5].mxu1  ;;  %v4322_v8 = vpack.c.bf16 %v347_v2, %v345_v1 }
 0x14d   :  { %v4191_v13 = vadd.f32 %v4188_v12, %v441_v10  ;;  %v346_v10 = vld [vmem:[%s5338_s5 + $0x50] sm:$0xff] }
 0x14e   :  { %v2827_v11 = vmul.f32 -1.442695, %v444_v9  ;;  %v344_v9 = vld [vmem:[%s5338_s5 + $0x40] sm:$0xff]  ;;  %3014 = vmatprep.subr.bf16.mxu1 %v4322_v8 }
 0x14f   :  { %v2828_v21 = vmul.f32 -1.442695, %v4191_v13 }
 0x150   :  { %3518 = vpow2.f32 %v2827_v11  ;;  %v349_v11 = vld [vmem:[%s5338_s5 + $0x68] sm:$0xff] }
 0x151   :  { %3520 = vtanh.f32 %v4191_v13  ;;  %v368_v13 = vld [vmem:[%s5340_s7] sm:$0x3] }
 0x152   :  { %v4388_v45 = vrot.slane %v368_v13, %v4177_v62 }
 0x15a   :  { %v3519_v14 = vpop.eup %3518 }
 0x15b   :  { %v449_v15 = vadd.f32 1.0, %v3519_v14  ;;  %v3521_v16 = vpop.eup %3520  ;;  %v351_v14 = vld [vmem:[%s5338_s5 + $0x78] sm:$0xff] }
 0x15d   :  { %3522 = vrcp.f32 %v449_v15  ;;  %v4337_v15 = vpack.c.bf16 %v346_v10, %v344_v9 }
 0x15e   :  { %3524 = vpow2.f32 %v2828_v21 }
 0x15f   :  { %3016 = vmatpush1.bf16.msra.mxu1 %v4337_v15 }
 0x167   :  { %v4194_v17 = vpop.eup %3522 }
 0x168   :  { %v460_v18 = vmul.f32 %v4194_v17, %v3521_v16  ;;  %v4340_v16 = vpack.c.bf16 %v351_v14, %v349_v11  ;;  %v3525_v23 = vpop.eup %3524  ;;  %v459_v25 = vmul.f32 0.0, %v4194_v17  ;;  %v4384_v17 = vrot.slane %v368_v13, %v4171_v59 }
 0x169   :  { %v456_v24 = vadd.f32 1.0, %v3525_v23 }
 0x16a   :  { %462 = vrot.lane.b32.xlu0 %v460_v18, %s3703_s4  ;;  %v348_v18 = vld [vmem:[%s5338_s5 + $0x60] sm:$0xff]  ;;  %3018 = vmatprep.subr.bf16.mxu1 %v4340_v16 }
 0x16b   :  { %v4349_v20 = vpack.c.bf16 %v350_v19, %v348_v18  ;;  %3526 = vrcp.f32 %v456_v24 }
 0x16d   :  { %3020 = vmatpush1.bf16.msra.mxu1 %v4349_v20 }
 0x16e   :  { %3022 = vmatprep.subr.bf16.mxu1 %v4089_v32 }
 0x175   :  { %v3527_v30 = vpop.eup %3526 }
 0x1dc   :  { %v463_v28 = vpop.permute.xlu0 %462 }
 0x1dd   :  { %v4356_v29 = vadd.f32 %v463_v28, %v459_v25 }
 0x1df   :  { %3528 = vtanh.f32 %v4356_v29  ;;  %v744_v23 = vrot.slane %v4356_v29, 6 }
 0x1e9   :  { %v3529_v31 = vpop.eup %3528 }
 0x1ea   :  { %v467_v35 = vmul.f32 %v3529_v31, %v3527_v30 }
 0x1ec   :  { %540 = vrot.lane.b32.xlu0 %v467_v35, %s3703_s4 }
 0x25e   :  { %v541_v36 = vpop.permute.xlu0 %540 }
 0x25f   :  { %2829 = vmatmul.mubr.msk.f32.vlgmr.msra.gmra.mrb[6].mxu1 %vm369_vm1, %v541_v36 }
 0x260   :  { %3024 = vmatpush1.bf16.msra.mxu1 %v4106_v38  ;;  %715 = vmatprep.mubr.f32.mxu1 %v3702_v7 }
 0x261   :  { %3026 = vmatprep.subr.bf16.mxu1 %v4112_v40 }
 0x264   :  { %3028 = vmatpush1.bf16.msra.mxu1 %v4131_v46 }
 0x265   :  { %3030 = vmatprep.subr.bf16.mxu1 %v4134_v47 }
 0x268   :  { %3032 = vmatpush1.bf16.msra.mxu1 %v4149_v52 }
 0x269   :  { %3034 = vmatprep.subr.bf16.mxu1 %v4153_v53 }
 0x26c   :  { %3036 = vmatpush1.bf16.msra.mxu1 %v4162_v56 }
 0x26d   :  { %3038 = vmatprep.subr.bf16.mxu1 %v4207_v22 }
 0x26f   :  { %2832 = vmatmul.mubr.msk.f32.vlgmr.msra.gmra.mrb[8].mxu1 %vm369_vm1, %v541_v36 }
 0x270   :  { %3040 = vmatpush1.bf16.msra.mxu1 %v4218_v26  ;;  %824 = vmatprep.mubr.f32.mxu1 %v3702_v7 }
 0x271   :  { %3042 = vmatprep.subr.bf16.mxu1 %v4220_v27 }
 0x274   :  { %3044 = vmatpush1.bf16.msra.mxu1 %v4237_v33 }
 0x275   :  { %3046 = vmatprep.subr.bf16.mxu1 %v4241_v34 }
 0x278   :  { %3048 = vmatpush1.bf16.msra.mxu1 %v4257_v41 }
 0x279   :  { %3050 = vmatprep.subr.bf16.mxu1 %v4261_v42 }
 0x27c   :  { %3052 = vmatpush1.bf16.msra.mxu1 %v4277_v49 }
 0x27d   :  { %3054 = vmatprep.subr.bf16.mxu1 %v4281_v50 }
 0x332   :  { %v610_v37 = vpop.f32.mrb[6].mxu1 }
 0x333   :  { %v626_v39 = vadd.f32 %v4384_v17, %v610_v37  ;;  %v612_v43 = vpop.f32.mrb[7].mxu1 }
 0x334   :  { %v627_v48 = vadd.f32 %v4388_v45, %v612_v43 }
 0x335   :  { %v2830_v44 = vmul.f32 -1.442695, %v626_v39 }
 0x336   :  { %v2831_v30 = vmul.f32 -1.442695, %v627_v48 }
 0x337   :  { %3530 = vpow2.f32 %v2830_v44 }
 0x338   :  { %3532 = vtanh.f32 %v627_v48 }
 0x341   :  { %v3531_v51 = vpop.eup %3530 }
 0x342   :  { %v631_v54 = vadd.f32 1.0, %v3531_v51  ;;  %v717_v55 = vpop.f32.mrb[8].mxu1  ;;  %v3533_v2 = vpop.eup %3532 }
 0x343   :  { %v724_v57 = vrot.slane %v717_v55, 6  ;;  %v719_v63 = vpop.f32.mrb[9].mxu1 }
 0x344   :  { %3534 = vrcp.f32 %v631_v54  ;;  %v725_v9 = vrot.slane %v719_v63, 6 }
 0x345   :  { %v728_v0 = vadd.f32 %v4185_v6, %v724_v57 }
 0x346   :  { %v729_v14 = vadd.f32 %v4188_v12, %v725_v9 }
 0x347   :  { %v2833_v1 = vmul.f32 -1.442695, %v728_v0 }
 0x348   :  { %v2834_v36 = vmul.f32 -1.442695, %v729_v14 }
 0x349   :  { %3536 = vpow2.f32 %v2833_v1 }
 0x34a   :  { %3538 = vtanh.f32 %v729_v14 }
 0x34e   :  { %v3535_v10 = vpop.eup %3534 }
 0x34f   :  { %v642_v11 = vmul.f32 %v3535_v10, %v3533_v2  ;;  %v641_v13 = vmul.f32 0.0, %v3535_v10 }
 0x351   :  { %644 = vrot.lane.b32.xlu1 %v642_v11, %s3703_s4 }
 0x353   :  { %v3537_v18 = vpop.eup %3536 }
 0x354   :  { %v733_v19 = vadd.f32 1.0, %v3537_v18  ;;  %v3539_v21 = vpop.eup %3538 }
 0x356   :  { %3540 = vrcp.f32 %v733_v19 }
 0x357   :  { %3542 = vpow2.f32 %v2831_v30 }
 0x360   :  { %v3541_v24 = vpop.eup %3540 }
 0x361   :  { %v747_v25 = vmul.f32 %v3541_v24, %v3539_v21  ;;  %v746_v28 = vmul.f32 %v3541_v24, %v744_v23  ;;  %v3543_v31 = vpop.eup %3542 }
 0x362   :  { %v638_v35 = vadd.f32 1.0, %v3543_v31 }
 0x363   :  { %749 = vrot.lane.b32.xlu1 %v747_v25, %s3703_s4 }
 0x364   :  { %3544 = vrcp.f32 %v638_v35 }
 0x365   :  { %3546 = vpow2.f32 %v2834_v36 }
 0x36e   :  { %v3545_v43 = vpop.eup %3544 }
 0x36f   :  { %v3547_v29 = vpop.eup %3546 }
 0x370   :  { %v740_v54 = vadd.f32 1.0, %v3547_v29 }
 0x3c3   :  { %v645_v37 = vpop.permute.xlu1 %644 }
 0x3c4   :  { %v4396_v39 = vadd.f32 %v645_v37, %v641_v13 }
 0x3c6   :  { %3548 = vtanh.f32 %v4396_v39 }
 0x3c7   :  { %3550 = vrcp.f32 %v740_v54 }
 0x3d0   :  { %v3549_v44 = vpop.eup %3548 }
 0x3d1   :  { %v4399_v51 = vmul.f32 %v3549_v44, %v3545_v43  ;;  %v3551_v57 = vpop.eup %3550 }
 0x3d3   :  { %756 = vrot.lane.b32.xlu0 %v4399_v51, %s3703_s4 }
 0x3d5   :  { %v750_v48 = vpop.permute.xlu1 %749 }
 0x3d6   :  { %v4403_v55 = vadd.f32 %v750_v48, %v746_v28 }
 0x3d8   :  { %3552 = vtanh.f32 %v4403_v55  ;;  %v1026_v48 = vrot.slane %v4403_v55, 6 }
 0x3e2   :  { %v3553_v63 = vpop.eup %3552 }
 0x3e3   :  { %v754_v0 = vmul.f32 %v3553_v63, %v3551_v57 }
 0x3e5   :  { %v832_v1 = vrot.slane %v754_v0, 2 }
 0x3e7   :  { %833 = vrot.lane.b32.xlu1 %v832_v1, %s3703_s4 }
 0x445   :  { %v757_v2 = vpop.permute.xlu0 %756 }
 0x446   :  { %2835 = vmatmul.mubr.msk.f32.vlgmr.msra.gmra.mrb[10].mxu1 %vm369_vm1, %v757_v2 }
 0x447   :  { %3056 = vmatpush1.bf16.msra.mxu1 %v4297_v60  ;;  %901 = vmatprep.mubr.f32.mxu1 %v3702_v7 }
 0x448   :  { %3058 = vmatprep.subr.bf16.mxu1 %v4301_v61 }
 0x44b   :  { %3060 = vmatpush1.bf16.msra.mxu1 %v4318_v4 }
 0x44c   :  { %3062 = vmatprep.subr.bf16.mxu1 %v4322_v8 }
 0x44f   :  { %3064 = vmatpush1.bf16.msra.mxu1 %v4337_v15 }
 0x450   :  { %3066 = vmatprep.subr.bf16.mxu1 %v4340_v16 }
 0x453   :  { %3068 = vmatpush1.bf16.msra.mxu1 %v4349_v20 }
 0x454   :  { %3070 = vmatprep.subr.bf16.mxu1 %v4089_v32 }
 0x459   :  { %v834_v9 = vpop.permute.xlu1 %833 }
 0x45a   :  { %2836 = vmatmul.mubr.msk.f32.vlgmr.msra.gmra.mrb[10].mxu1 %vm369_vm1, %v834_v9 }
 0x45b   :  { %3072 = vmatpush1.bf16.msra.mxu1 %v4106_v38  ;;  %997 = vmatprep.mubr.f32.mxu1 %v3702_v7 }
 0x45c   :  { %3074 = vmatprep.subr.bf16.mxu1 %v4112_v40 }
 0x45f   :  { %3076 = vmatpush1.bf16.msra.mxu1 %v4131_v46 }
 0x460   :  { %3078 = vmatprep.subr.bf16.mxu1 %v4134_v47 }
 0x463   :  { %3080 = vmatpush1.bf16.msra.mxu1 %v4149_v52 }
 0x464   :  { %3082 = vmatprep.subr.bf16.mxu1 %v4153_v53 }
 0x467   :  { %3084 = vmatpush1.bf16.msra.mxu1 %v4162_v56 }
 0x468   :  { %3118 = vmatprep.subr.bf16.mxu1 %v4089_v32 }
 0x46a   :  { %2839 = vmatmul.mubr.msk.f32.vlgmr.msra.gmra.mrb[12].mxu1 %vm369_vm1, %v834_v9 }
 0x46b   :  { %3120 = vmatpush1.bf16.msra.mxu1 %v4106_v38  ;;  %1279 = vmatprep.mubr.f32.mxu1 %v3702_v7 }
 0x46c   :  { %3122 = vmatprep.subr.bf16.mxu1 %v4112_v40 }
 0x46f   :  { %3124 = vmatpush1.bf16.msra.mxu1 %v4131_v46 }
 0x470   :  { %3126 = vmatprep.subr.bf16.mxu1 %v4134_v47 }
 0x473   :  { %3128 = vmatpush1.bf16.msra.mxu1 %v4149_v52 }
 0x474   :  { %3130 = vmatprep.subr.bf16.mxu1 %v4153_v53 }
 0x477   :  { %3132 = vmatpush1.bf16.msra.mxu1 %v4162_v56 }
 0x478   :  { %3134 = vmatprep.subr.bf16.mxu1 %v4207_v22 }
 0x52d   :  { %v903_v10 = vpop.f32.mrb[10].mxu1 }
 0x52e   :  { %v908_v11 = vadd.f32 %v903_v10, %v4384_v17  ;;  %v905_v14 = vpop.f32.mrb[11].mxu1 }
 0x52f   :  { %v909_v19 = vadd.f32 %v905_v14, %v4388_v45 }
 0x530   :  { %v2837_v18 = vmul.f32 -1.442695, %v908_v11 }
 0x531   :  { %v2838_v1 = vmul.f32 -1.442695, %v909_v19 }
 0x532   :  { %3554 = vpow2.f32 %v2837_v18 }
 0x533   :  { %3556 = vtanh.f32 %v909_v19 }
 0x53c   :  { %v3555_v21 = vpop.eup %3554 }
 0x53d   :  { %v913_v23 = vadd.f32 1.0, %v3555_v21  ;;  %v999_v24 = vpop.f32.mrb[12].mxu1  ;;  %v3557_v35 = vpop.eup %3556 }
 0x53e   :  { %v1006_v25 = vrot.slane %v999_v24, 4  ;;  %v1001_v28 = vpop.f32.mrb[13].mxu1 }
 0x53f   :  { %3558 = vrcp.f32 %v913_v23  ;;  %v1007_v36 = vrot.slane %v1001_v28, 4 }
 0x540   :  { %v1010_v30 = vadd.f32 %v4185_v6, %v1006_v25 }
 0x541   :  { %v1011_v43 = vadd.f32 %v4188_v12, %v1007_v36 }
 0x542   :  { %v2840_v31 = vmul.f32 -1.442695, %v1010_v30 }
 0x543   :  { %v2841_v10 = vmul.f32 -1.442695, %v1011_v43 }
 0x544   :  { %3560 = vpow2.f32 %v2840_v31 }
 0x545   :  { %3562 = vtanh.f32 %v1011_v43 }
 0x549   :  { %v3559_v13 = vpop.eup %3558 }
 0x54a   :  { %v924_v37 = vmul.f32 %v3559_v13, %v3557_v35  ;;  %v923_v11 = vmul.f32 %v3559_v13, %v4396_v39 }
 0x54c   :  { %926 = vrot.lane.b32.xlu0 %v924_v37, %s3703_s4 }
 0x54e   :  { %v3561_v29 = vpop.eup %3560 }
 0x54f   :  { %v1015_v44 = vadd.f32 1.0, %v3561_v29  ;;  %v3563_v54 = vpop.eup %3562 }
 0x551   :  { %3564 = vrcp.f32 %v1015_v44 }
 0x552   :  { %3566 = vpow2.f32 %v2838_v1 }
 0x55b   :  { %v3565_v57 = vpop.eup %3564 }
 0x55c   :  { %v1029_v63 = vmul.f32 %v3565_v57, %v3563_v54  ;;  %v1028_v0 = vmul.f32 %v3565_v57, %v1026_v48  ;;  %v3567_v2 = vpop.eup %3566 }
 0x55d   :  { %v920_v9 = vadd.f32 1.0, %v3567_v2 }
 0x55e   :  { %1031 = vrot.lane.b32.xlu1 %v1029_v63, %s3703_s4 }
 0x55f   :  { %3568 = vrcp.f32 %v920_v9 }
 0x560   :  { %3570 = vpow2.f32 %v2841_v10 }
 0x569   :  { %v3569_v55 = vpop.eup %3568 }
 0x56a   :  { %v3571_v21 = vpop.eup %3570 }
 0x56b   :  { %v1022_v25 = vadd.f32 1.0, %v3571_v21 }
 0x5be   :  { %v927_v14 = vpop.permute.xlu0 %926 }
 0x5bf   :  { %v4445_v18 = vadd.f32 %v927_v14, %v923_v11 }
 0x5c1   :  { %3572 = vtanh.f32 %v4445_v18 }
 0x5c2   :  { %3574 = vrcp.f32 %v1022_v25 }
 0x5cb   :  { %v3573_v23 = vpop.eup %3572 }
 0x5cc   :  { %v4448_v24 = vmul.f32 %v3573_v23, %v3569_v55  ;;  %v3575_v39 = vpop.eup %3574 }
 0x5ce   :  { %1038 = vrot.lane.b32.xlu0 %v4448_v24, %s3703_s4 }
 0x5d0   :  { %v1032_v19 = vpop.permute.xlu1 %1031 }
 0x5d1   :  { %v4452_v28 = vadd.f32 %v1032_v19, %v1028_v0 }
 0x5d3   :  { %3576 = vtanh.f32 %v4452_v28 }
 0x5dd   :  { %v3577_v30 = vpop.eup %3576 }
 0x5de   :  { %v1036_v31 = vmul.f32 %v3577_v30, %v3575_v39 }
 0x5e0   :  { %v1114_v35 = vrot.slane %v1036_v31, 4 }
 0x5e2   :  { %1115 = vrot.lane.b32.xlu1 %v1114_v35, %s3703_s4 }
 0x640   :  { %v1039_v36 = vpop.permute.xlu0 %1038 }
 0x641   :  { %2842 = vmatmul.mubr.msk.f32.vlgmr.msra.gmra.mrb[0].mxu0 %vm369_vm1, %v1039_v36 }
 0x642   :  { %3104 = vmatpush1.bf16.msra.mxu0 %v4297_v60  ;;  %1183 = vmatprep.mubr.f32.mxu0 %v3702_v7 }
 0x643   :  { %3106 = vmatprep.subr.bf16.mxu0 %v4301_v61 }
 0x646   :  { %3108 = vmatpush1.bf16.msra.mxu0 %v4318_v4 }
 0x647   :  { %3110 = vmatprep.subr.bf16.mxu0 %v4322_v8 }
 0x64a   :  { %3112 = vmatpush1.bf16.msra.mxu0 %v4337_v15 }
 0x64b   :  { %3114 = vmatprep.subr.bf16.mxu0 %v4340_v16 }
 0x64e   :  { %3116 = vmatpush1.bf16.msra.mxu0 %v4349_v20 }
 0x64f   :  { %3166 = vmatprep.subr.bf16.mxu0 %v4089_v32 }
 0x654   :  { %v1116_v13 = vpop.permute.xlu1 %1115 }
 0x655   :  { %2843 = vmatmul.mubr.msk.f32.vlgmr.msra.gmra.mrb[0].mxu0 %vm369_vm1, %v1116_v13  ;;  %2846 = vmatmul.mubr.msk.f32.vlgmr.msra.gmra.mrb[14].mxu1 %vm369_vm1, %v1116_v13 }
 0x656   :  { %3136 = vmatpush1.bf16.msra.mxu1 %v4218_v26  ;;  %3168 = vmatpush1.bf16.msra.mxu0 %v4106_v38 }
 0x657   :  { %3138 = vmatprep.subr.bf16.mxu1 %v4220_v27  ;;  %3170 = vmatprep.subr.bf16.mxu0 %v4112_v40 }
 0x658   :  { %1388 = vmatprep.mubr.f32.mxu1 %v3702_v7  ;;  %1561 = vmatprep.mubr.f32.mxu0 %v3702_v7 }
 0x65a   :  { %3140 = vmatpush1.bf16.msra.mxu1 %v4237_v33  ;;  %3172 = vmatpush1.bf16.msra.mxu0 %v4131_v46 }
 0x65b   :  { %3142 = vmatprep.subr.bf16.mxu1 %v4241_v34  ;;  %3174 = vmatprep.subr.bf16.mxu0 %v4134_v47 }
 0x65e   :  { %3144 = vmatpush1.bf16.msra.mxu1 %v4257_v41  ;;  %3176 = vmatpush1.bf16.msra.mxu0 %v4149_v52 }
 0x65f   :  { %3146 = vmatprep.subr.bf16.mxu1 %v4261_v42  ;;  %3178 = vmatprep.subr.bf16.mxu0 %v4153_v53 }
 0x662   :  { %3148 = vmatpush1.bf16.msra.mxu1 %v4277_v49  ;;  %3180 = vmatpush1.bf16.msra.mxu0 %v4162_v56 }
 0x663   :  { %3150 = vmatprep.subr.bf16.mxu1 %v4281_v50  ;;  %3182 = vmatprep.subr.bf16.mxu0 %v4207_v22 }
 0x728   :  { %v1185_v37 = vpop.f32.mrb[0].mxu0  ;;  %v1281_v43 = vpop.f32.mrb[14].mxu1 }
 0x729   :  { %v1190_v29 = vadd.f32 %v1185_v37, %v4384_v17  ;;  %v1288_v44 = vrot.slane %v1281_v43, 2  ;;  %v1187_v54 = vpop.f32.mrb[1].mxu0  ;;  %v1283_v48 = vpop.f32.mrb[15].mxu1 }
 0x72a   :  { %v1289_v1 = vrot.slane %v1283_v48, 2  ;;  %v1191_v2 = vadd.f32 %v1187_v54, %v4388_v45 }
 0x72b   :  { %v2844_v57 = vmul.f32 -1.442695, %v1190_v29  ;;  %v1292_v63 = vadd.f32 %v4185_v6, %v1288_v44  ;;  %v1308_v6 = vrot.slane %v4452_v28, 6 }
 0x72c   :  { %v1293_v10 = vadd.f32 %v4188_v12, %v1289_v1  ;;  %v2845_v12 = vmul.f32 -1.442695, %v1191_v2  ;;  %v932_v1 = vadd.f32 %v4448_v24, %v4399_v51 }
 0x72d   :  { %3578 = vpow2.f32 %v2844_v57  ;;  %v2847_v0 = vmul.f32 -1.442695, %v1292_v63 }
 0x72e   :  { %v2848_v35 = vmul.f32 -1.442695, %v1293_v10 }
 0x72f   :  { %3580 = vpow2.f32 %v2847_v0 }
 0x730   :  { %3582 = vtanh.f32 %v1191_v2 }
 0x737   :  { %v3579_v9 = vpop.eup %3578 }
 0x738   :  { %v1195_v11 = vadd.f32 1.0, %v3579_v9 }
 0x739   :  { %v3581_v14 = vpop.eup %3580 }
 0x73a   :  { %3584 = vrcp.f32 %v1195_v11  ;;  %v1297_v55 = vadd.f32 1.0, %v3581_v14  ;;  %v3583_v21 = vpop.eup %3582 }
 0x73b   :  { %3586 = vtanh.f32 %v1293_v10 }
 0x73c   :  { %3588 = vrcp.f32 %v1297_v55 }
 0x73d   :  { %3590 = vpow2.f32 %v2845_v12 }
 0x73e   :  { %3592 = vpow2.f32 %v2848_v35 }
 0x744   :  { %v3585_v23 = vpop.eup %3584 }
 0x745   :  { %v3587_v25 = vpop.eup %3586  ;;  %v1206_v19 = vmul.f32 %v3585_v23, %v3583_v21  ;;  %v1205_v43 = vmul.f32 %v3585_v23, %v4445_v18 }
 0x746   :  { %v3589_v39 = vpop.eup %3588 }
 0x747   :  { %1208 = vrot.lane.b32.xlu0 %v1206_v19, %s3703_s4  ;;  %v1311_v30 = vmul.f32 %v3589_v39, %v3587_v25  ;;  %v1310_v31 = vmul.f32 %v3589_v39, %v1308_v6  ;;  %v3591_v36 = vpop.eup %3590 }
 0x748   :  { %v3593_v13 = vpop.eup %3592  ;;  %v1202_v37 = vadd.f32 1.0, %v3591_v36 }
 0x749   :  { %1313 = vrot.lane.b32.xlu1 %v1311_v30, %s3703_s4  ;;  %v1304_v29 = vadd.f32 1.0, %v3593_v13 }
 0x74a   :  { %3594 = vrcp.f32 %v1202_v37 }
 0x754   :  { %v3595_v57 = vpop.eup %3594 }
 0x7b9   :  { %v1209_v44 = vpop.permute.xlu0 %1208 }
 0x7ba   :  { %v4494_v28 = vadd.f32 %v1209_v44, %v1205_v43 }
 0x7bb   :  { %v1314_v54 = vpop.permute.xlu1 %1313 }
 0x7bc   :  { %3596 = vtanh.f32 %v4494_v28  ;;  %v4497_v48 = vadd.f32 %v1314_v54, %v1310_v31 }
 0x7bd   :  { %3598 = vrcp.f32 %v1304_v29 }
 0x7be   :  { %3600 = vtanh.f32 %v4497_v48  ;;  %v1584_v6 = vrot.slane %v4497_v48, 6 }
 0x7c6   :  { %v3597_v63 = vpop.eup %3596 }
 0x7c7   :  { %v3599_v0 = vpop.eup %3598  ;;  %v1213_v18 = vmul.f32 %v3597_v63, %v3595_v57 }
 0x7c8   :  { %v3601_v2 = vpop.eup %3600 }
 0x7c9   :  { %1320 = vrot.lane.b32.xlu0 %v1213_v18, %s3703_s4  ;;  %v4503_v9 = vadd.f32 %v1213_v18, %v932_v1  ;;  %v1318_v10 = vmul.f32 %v3601_v2, %v3599_v0 }
 0x7cb   :  { %v1396_v11 = vrot.slane %v1318_v10, 6 }
 0x7cd   :  { %1397 = vrot.lane.b32.xlu1 %v1396_v11, %s3703_s4 }
 0x83b   :  { %v1321_v14 = vpop.permute.xlu0 %1320 }
 0x83c   :  { %2849 = vmatmul.mubr.msk.f32.vlgmr.msra.gmra.mrb[16].mxu1 %vm369_vm1, %v1321_v14 }
 0x83d   :  { %3152 = vmatpush1.bf16.msra.mxu1 %v4297_v60  ;;  %1465 = vmatprep.mubr.f32.mxu1 %v3702_v7 }
 0x83e   :  { %3154 = vmatprep.subr.bf16.mxu1 %v4301_v61 }
 0x83f   :  { %v1398_v51 = vpop.permute.xlu1 %1397 }
 0x840   :  { %2853 = vmatmul.mubr.msk.f32.vlgmr.msra.gmra.mrb[2].mxu0 %vm369_vm1, %v1398_v51 }
 0x841   :  { %3156 = vmatpush1.bf16.msra.mxu1 %v4318_v4  ;;  %3184 = vmatpush1.bf16.msra.mxu0 %v4218_v26 }
 0x842   :  { %3158 = vmatprep.subr.bf16.mxu1 %v4322_v8  ;;  %3186 = vmatprep.subr.bf16.mxu0 %v4220_v27 }
 0x843   :  { %1664 = vmatprep.mubr.f32.mxu0 %v3702_v7 }
 0x845   :  { %3160 = vmatpush1.bf16.msra.mxu1 %v4337_v15  ;;  %3188 = vmatpush1.bf16.msra.mxu0 %v4237_v33 }
 0x846   :  { %3162 = vmatprep.subr.bf16.mxu1 %v4340_v16  ;;  %3190 = vmatprep.subr.bf16.mxu0 %v4241_v34 }
 0x849   :  { %3164 = vmatpush1.bf16.msra.mxu1 %v4349_v20  ;;  %3192 = vmatpush1.bf16.msra.mxu0 %v4257_v41 }
 0x84a   :  { %3214 = vmatprep.subr.bf16.mxu1 %v4089_v32  ;;  %3194 = vmatprep.subr.bf16.mxu0 %v4261_v42 }
 0x84c   :  { %2850 = vmatmul.mubr.msk.f32.vlgmr.msra.gmra.mrb[16].mxu1 %vm369_vm1, %v1398_v51 }
 0x84d   :  { %3216 = vmatpush1.bf16.msra.mxu1 %v4106_v38  ;;  %1836 = vmatprep.mubr.f32.mxu1 %v3702_v7 }
 0x84e   :  { %3218 = vmatprep.subr.bf16.mxu1 %v4112_v40  ;;  %3196 = vmatpush1.bf16.msra.mxu0 %v4277_v49 }
 0x84f   :  { %3198 = vmatprep.subr.bf16.mxu0 %v4281_v50 }
 0x851   :  { %3220 = vmatpush1.bf16.msra.mxu1 %v4131_v46 }
 0x852   :  { %3222 = vmatprep.subr.bf16.mxu1 %v4134_v47 }
 0x855   :  { %3224 = vmatpush1.bf16.msra.mxu1 %v4149_v52 }
 0x856   :  { %3226 = vmatprep.subr.bf16.mxu1 %v4153_v53 }
 0x859   :  { %3228 = vmatpush1.bf16.msra.mxu1 %v4162_v56 }
 0x85a   :  { %3230 = vmatprep.subr.bf16.mxu1 %v4207_v22 }
 0x913   :  { %v1563_v32 = vpop.f32.mrb[2].mxu0 }
 0x914   :  { %v1568_v38 = vadd.f32 %v4181_v3, %v1563_v32  ;;  %v1565_v40 = vpop.f32.mrb[3].mxu0 }
 0x915   :  { %v1569_v55 = vadd.f32 %v4183_v5, %v1565_v40 }
 0x916   :  { %v2854_v24 = vmul.f32 -1.442695, %v1568_v38 }
 0x917   :  { %v2855_v13 = vmul.f32 -1.442695, %v1569_v55 }
 0x918   :  { %3602 = vpow2.f32 %v2854_v24 }
 0x919   :  { %3604 = vtanh.f32 %v1569_v55 }
 0x91f   :  { %v1467_v21 = vpop.f32.mrb[16].mxu1 }
 0x920   :  { %v1472_v46 = vadd.f32 %v1467_v21, %v4384_v17  ;;  %v1469_v47 = vpop.f32.mrb[17].mxu1 }
 0x921   :  { %v1473_v53 = vadd.f32 %v1469_v47, %v4388_v45 }
 0x922   :  { %v3603_v23 = vpop.eup %3602  ;;  %v2851_v52 = vmul.f32 -1.442695, %v1472_v46 }
 0x923   :  { %v1573_v25 = vadd.f32 1.0, %v3603_v23  ;;  %v3605_v56 = vpop.eup %3604  ;;  %v2852_v37 = vmul.f32 -1.442695, %v1473_v53 }
 0x924   :  { %3606 = vpow2.f32 %v2851_v52 }
 0x925   :  { %3608 = vrcp.f32 %v1573_v25 }
 0x926   :  { %3610 = vtanh.f32 %v1473_v53 }
 0x92e   :  { %v3607_v22 = vpop.eup %3606 }
 0x92f   :  { %v3609_v19 = vpop.eup %3608  ;;  %v1477_v39 = vadd.f32 1.0, %v3607_v22 }
 0x930   :  { %v1587_v30 = vmul.f32 %v3609_v19, %v3605_v56  ;;  %v1586_v31 = vmul.f32 %v3609_v19, %v1584_v6  ;;  %v3611_v12 = vpop.eup %3610 }
 0x931   :  { %3612 = vrcp.f32 %v1477_v39 }
 0x932   :  { %1589 = vrot.lane.b32.xlu1 %v1587_v30, %s3703_s4  ;;  %3614 = vpow2.f32 %v2855_v13 }
 0x933   :  { %3616 = vpow2.f32 %v2852_v37 }
 0x93b   :  { %v3613_v35 = vpop.eup %3612 }
 0x93c   :  { %v1488_v36 = vmul.f32 %v3613_v35, %v3611_v12  ;;  %v3615_v43 = vpop.eup %3614  ;;  %v1487_v63 = vmul.f32 %v3613_v35, %v4494_v28 }
 0x93d   :  { %v1580_v29 = vadd.f32 1.0, %v3615_v43  ;;  %v3617_v48 = vpop.eup %3616 }
 0x93e   :  { %1490 = vrot.lane.b32.xlu0 %v1488_v36, %s3703_s4  ;;  %v1484_v57 = vadd.f32 1.0, %v3617_v48 }
 0x93f   :  { %3618 = vrcp.f32 %v1580_v29 }
 0x949   :  { %v3619_v0 = vpop.eup %3618 }
 0x9a4   :  { %v1590_v44 = vpop.permute.xlu1 %1589 }
 0x9a5   :  { %v4543_v54 = vadd.f32 %v1590_v44, %v1586_v31 }
 0x9a7   :  { %3620 = vtanh.f32 %v4543_v54  ;;  %v1865_v55 = vrot.slane %v4543_v54, 6 }
 0x9a8   :  { %3622 = vrcp.f32 %v1484_v57 }
 0x9b0   :  { %v1491_v1 = vpop.permute.xlu0 %1490 }
 0x9b1   :  { %v3621_v18 = vpop.eup %3620  ;;  %v4547_v2 = vadd.f32 %v1491_v1, %v1487_v63 }
 0x9b2   :  { %v1594_v10 = vmul.f32 %v3621_v18, %v3619_v0  ;;  %v3623_v11 = vpop.eup %3622 }
 0x9b3   :  { %3624 = vtanh.f32 %v4547_v2 }
 0x9b4   :  { %1672 = vrot.lane.b32.xlu1 %v1594_v10, %s3703_s4 }
 0x9bd   :  { %v3625_v14 = vpop.eup %3624 }
 0x9be   :  { %v1495_v51 = vmul.f32 %v3625_v14, %v3623_v11 }
 0x9c0   :  { %1596 = vrot.lane.b32.xlu0 %v1495_v51, %s3703_s4  ;;  %v4553_v32 = vadd.f32 %v1495_v51, %v4503_v9 }
 0xa26   :  { %v1673_v28 = vpop.permute.xlu1 %1672 }
 0xa27   :  { %2860 = vmatmul.mubr.msk.f32.vlgmr.msra.gmra.mrb[18].mxu1 %vm369_vm1, %v1673_v28 }
 0xa28   :  { %3232 = vmatpush1.bf16.msra.mxu1 %v4218_v26  ;;  %1945 = vmatprep.mubr.f32.mxu1 %v3702_v7 }
 0xa29   :  { %3234 = vmatprep.subr.bf16.mxu1 %v4220_v27 }
 0xa2c   :  { %3236 = vmatpush1.bf16.msra.mxu1 %v4237_v33 }
 0xa2d   :  { %3238 = vmatprep.subr.bf16.mxu1 %v4241_v34 }
 0xa30   :  { %3240 = vmatpush1.bf16.msra.mxu1 %v4257_v41 }
 0xa31   :  { %3242 = vmatprep.subr.bf16.mxu1 %v4261_v42 }
 0xa32   :  { %v1597_v38 = vpop.permute.xlu0 %1596 }
 0xa33   :  { %2856 = vmatmul.mubr.msk.f32.vlgmr.msra.gmra.mrb[4].mxu0 %vm369_vm1, %v1597_v38  ;;  %v2252_v38 = vld [vmem:[%s5342_s9 + $0x20] sm:$0xff] }
 0xa34   :  { %3200 = vmatpush1.bf16.msra.mxu0 %v4297_v60  ;;  %1740 = vmatprep.mubr.f32.mxu0 %v3702_v7 }
 0xa35   :  { %3202 = vmatprep.subr.bf16.mxu0 %v4301_v61  ;;  %3244 = vmatpush1.bf16.msra.mxu1 %v4277_v49 }
 0xa36   :  { %3246 = vmatprep.subr.bf16.mxu1 %v4281_v50 }
 0xa38   :  { %3204 = vmatpush1.bf16.msra.mxu0 %v4318_v4 }
 0xa39   :  { %3206 = vmatprep.subr.bf16.mxu0 %v4322_v8 }
 0xa3c   :  { %3208 = vmatpush1.bf16.msra.mxu0 %v4337_v15 }
 0xa3d   :  { %3210 = vmatprep.subr.bf16.mxu0 %v4340_v16 }
 0xa40   :  { %3212 = vmatpush1.bf16.msra.mxu0 %v4349_v20 }
 0xa43   :  { %2857 = vmatmul.mubr.msk.f32.vlgmr.msra.gmra.mrb[4].mxu0 %vm369_vm1, %v1673_v28 }
 0xa44   :  { %2349 = vmatprep.mubr.f32.mxu0 %v3702_v7 }
 0xafa   :  { %v1838_v26 = vpop.f32.mrb[18].mxu1 }
 0xafb   :  { %v1845_v27 = vrot.slane %v1838_v26, 6  ;;  %v1840_v33 = vpop.f32.mrb[19].mxu1  ;;  %v2257_v26 = vld [vmem:[%s5342_s9 + $0x48] sm:$0xff] }
 0xafc   :  { %v1846_v42 = vrot.slane %v1840_v33, 6 }
 0xafd   :  { %v1849_v34 = vadd.f32 %v4181_v3, %v1845_v27  ;;  %v2261_v27 = vld [vmem:[%s5342_s9 + $0x68] sm:$0xff] }
 0xafe   :  { %v1850_v49 = vadd.f32 %v4183_v5, %v1846_v42  ;;  %v2260_v42 = vld [vmem:[%s5342_s9 + $0x60] sm:$0xff] }
 0xaff   :  { %v2861_v41 = vmul.f32 -1.442695, %v1849_v34  ;;  %v3265_v34 = vpack.c.bf16 %v2261_v27, %v2257_v26  ;;  %v2061_v26 = vld [vmem:[%s5341_s8 + $0x28] sm:$0xff] }
 0xb00   :  { %v2862_v19 = vmul.f32 -1.442695, %v1850_v49 }
 0xb01   :  { %3626 = vpow2.f32 %v2861_v41  ;;  %v2256_v41 = vld [vmem:[%s5342_s9 + $0x40] sm:$0xff] }
 0xb02   :  { %3628 = vtanh.f32 %v1850_v49  ;;  %v2265_v49 = vld [vmem:[%s5342_s9 + $0x88] sm:$0xff] }
 0xb0b   :  { %v3627_v50 = vpop.eup %3626 }
 0xb0c   :  { %v1854_v9 = vadd.f32 1.0, %v3627_v50  ;;  %v3629_v24 = vpop.eup %3628  ;;  %v2269_v50 = vld [vmem:[%s5342_s9 + $0xa8] sm:$0xff] }
 0xb0e   :  { %3630 = vrcp.f32 %v1854_v9  ;;  %v3267_v9 = vpack.c.bf16 %v2260_v42, %v2256_v41  ;;  %v2056_v41 = vld [vmem:[%s5341_s8] sm:$0xff] }
 0xb0f   :  { %v2060_v42 = vld [vmem:[%s5341_s8 + $0x20] sm:$0xff] }
 0xb16   :  { %v1742_v40 = vpop.f32.mrb[4].mxu0 }
 0xb17   :  { %v1747_v21 = vadd.f32 %v1742_v40, %v4384_v17  ;;  %v1744_v46 = vpop.f32.mrb[5].mxu0  ;;  %v3269_v40 = vpack.c.bf16 %v2269_v50, %v2265_v49  ;;  %v2065_v49 = vld [vmem:[%s5341_s8 + $0x48] sm:$0xff] }
 0xb18   :  { %v3631_v47 = vpop.eup %3630  ;;  %v1748_v5 = vadd.f32 %v1744_v46, %v4388_v45  ;;  %v2277_v46 = vld [vmem:[%s5342_s9 + $0xe8] sm:$0xff] }
 0xb19   :  { %v2858_v23 = vmul.f32 -1.442695, %v1747_v21  ;;  %v1868_v52 = vmul.f32 %v3631_v47, %v3629_v24  ;;  %v1867_v3 = vmul.f32 %v3631_v47, %v1865_v55  ;;  %v2264_v24 = vld [vmem:[%s5342_s9 + $0x80] sm:$0xff]  ;;  %v2273_v21 = vld [vmem:[%s5342_s9 + $0xc8] sm:$0xff] }
 0xb1a   :  { %v2859_v35 = vmul.f32 -1.442695, %v1748_v5  ;;  %v2268_v55 = vld [vmem:[%s5342_s9 + $0xa0] sm:$0xff]  ;;  %v2069_v50 = vld [vmem:[%s5341_s8 + $0x68] sm:$0xff] }
 0xb1b   :  { %3632 = vpow2.f32 %v2858_v23  ;;  %1870 = vrot.lane.b32.xlu1 %v1868_v52, %s3703_s4  ;;  %v3271_v47 = vpack.c.bf16 %v2268_v55, %v2264_v24  ;;  %v3273_v23 = vpack.c.bf16 %v2277_v46, %v2273_v21  ;;  %v2272_v52 = vld [vmem:[%s5342_s9 + $0xc0] sm:$0xff]  ;;  %v3297_v24 = vpack.c.bf16 %v2069_v50, %v2065_v49  ;;  %v2073_v46 = vld [vmem:[%s5341_s8 + $0x88] sm:$0xff] }
 0xb1c   :  { %3634 = vtanh.f32 %v1748_v5  ;;  %v2251_v5 = vld [vmem:[%s5342_s9 + $0x18] sm:$0xff]  ;;  %v2064_v55 = vld [vmem:[%s5341_s8 + $0x40] sm:$0xff] }
 0xb1d   :  { %v2068_v21 = vld [vmem:[%s5341_s8 + $0x60] sm:$0xff] }
 0xb25   :  { %v3633_v25 = vpop.eup %3632 }
 0xb26   :  { %v1752_v53 = vadd.f32 1.0, %v3633_v25  ;;  %v3635_v56 = vpop.eup %3634  ;;  %v2255_v25 = vld [vmem:[%s5342_s9 + $0x38] sm:$0xff] }
 0xb28   :  { %3636 = vrcp.f32 %v1752_v53 }
 0xb29   :  { %3638 = vpow2.f32 %v2862_v19 }
 0xb32   :  { %v3637_v22 = vpop.eup %3636 }
 0xb33   :  { %v1763_v6 = vmul.f32 %v3637_v22, %v3635_v56  ;;  %v3639_v39 = vpop.eup %3638  ;;  %v1762_v54 = vmul.f32 %v3637_v22, %v4547_v2  ;;  %v3277_v56 = vpack.c.bf16 %v2255_v25, %v2251_v5  ;;  %v2076_v5 = vld [vmem:[%s5341_s8 + $0xa0] sm:$0xff]  ;;  %v2081_v25 = vld [vmem:[%s5341_s8 + $0xc8] sm:$0xff] }
 0xb34   :  { %v1861_v30 = vadd.f32 1.0, %v3639_v39 }
 0xb35   :  { %1765 = vrot.lane.b32.xlu0 %v1763_v6, %s3703_s4 }
 0xb36   :  { %3640 = vrcp.f32 %v1861_v30 }
 0xb40   :  { %v3641_v36 = vpop.eup %3640 }
 0xb8d   :  { %v1871_v31 = vpop.permute.xlu1 %1870 }
 0xb8e   :  { %v1873_v12 = vadd.f32 %v1871_v31, %v1867_v3  ;;  %v2276_v3 = vld [vmem:[%s5342_s9 + $0xe0] sm:$0xff] }
 0xb8f   :  { %v3275_v53 = vpack.c.bf16 %v2276_v3, %v2272_v52  ;;  %v2072_v3 = vld [vmem:[%s5341_s8 + $0x80] sm:$0xff] }
 0xb90   :  { %3642 = vtanh.f32 %v1873_v12 }
 0xb91   :  { %3644 = vpow2.f32 %v2859_v35 }
 0xb9a   :  { %v3643_v13 = vpop.eup %3642 }
 0xb9b   :  { %v1875_v37 = vmul.f32 %v3643_v13, %v3641_v36  ;;  %v3645_v29 = vpop.eup %3644 }
 0xb9c   :  { %v1759_v44 = vadd.f32 1.0, %v3645_v29  ;;  %v2254_v29 = vld [vmem:[%s5342_s9 + $0x30] sm:$0xff] }
 0xb9d   :  { %v1953_v43 = vrot.slane %v1875_v37, 2 }
 0xb9e   :  { %3646 = vrcp.f32 %v1759_v44  ;;  %v2259_v44 = vld [vmem:[%s5342_s9 + $0x58] sm:$0xff] }
 0xb9f   :  { %1954 = vrot.lane.b32.xlu1 %v1953_v43, %s3703_s4  ;;  %v2250_v43 = vld [vmem:[%s5342_s9 + $0x10] sm:$0xff] }
 0xba7   :  { %v1766_v48 = vpop.permute.xlu0 %1765 }
 0xba8   :  { %v4585_v57 = vadd.f32 %v1766_v48, %v1762_v54  ;;  %v3647_v63 = vpop.eup %3646  ;;  %v2263_v54 = vld [vmem:[%s5342_s9 + $0x78] sm:$0xff]  ;;  %v3279_v48 = vpack.c.bf16 %v2254_v29, %v2250_v43 }
 0xbaa   :  { %3648 = vtanh.f32 %v4585_v57 }
 0xbb4   :  { %v3649_v0 = vpop.eup %3648 }
 0xbb5   :  { %v1770_v1 = vmul.f32 %v3649_v0, %v3647_v63  ;;  %v3281_v0 = vpack.c.bf16 %v2263_v54, %v2259_v44  ;;  %v2096_v44 = vld [vmem:[%s5341_s8 + $0x140] sm:$0xff] }
 0xbb6   :  { %v2100_v54 = vld [vmem:[%s5341_s8 + $0x160] sm:$0xff] }
 0xbb7   :  { %1877 = vrot.lane.b32.xlu0 %v1770_v1, %s3703_s4  ;;  %v4590_v18 = vadd.f32 %v1770_v1, %v4553_v32  ;;  %v2258_v1 = vld [vmem:[%s5342_s9 + $0x50] sm:$0xff] }
 0xc11   :  { %v1955_v2 = vpop.permute.xlu1 %1954 }
 0xc29   :  { %v1878_v10 = vpop.permute.xlu0 %1877 }
 0xc2a   :  { %2863 = vmatmul.mubr.msk.f32.vlgmr.msra.gmra.mrb[20].mxu1 %vm369_vm1, %v1878_v10 }
 0xc2b   :  { %3248 = vmatpush1.bf16.msra.mxu1 %v4297_v60  ;;  %2022 = vmatprep.mubr.f32.mxu1 %v3702_v7 }
 0xc2c   :  { %3250 = vmatprep.subr.bf16.mxu1 %v4301_v61 }
 0xc2f   :  { %3252 = vmatpush1.bf16.msra.mxu1 %v4318_v4 }
 0xc30   :  { %3254 = vmatprep.subr.bf16.mxu1 %v4322_v8 }
 0xc33   :  { %3256 = vmatpush1.bf16.msra.mxu1 %v4337_v15 }
 0xc34   :  { %3258 = vmatprep.subr.bf16.mxu1 %v4340_v16 }
 0xc37   :  { %3260 = vmatpush1.bf16.msra.mxu1 %v4349_v20  ;;  %v2249_v20 = vld [vmem:[%s5342_s9 + $0x8] sm:$0xff] }
 0xc3a   :  { %2864 = vmatmul.mubr.msk.f32.vlgmr.msra.gmra.mrb[20].mxu1 %vm369_vm1, %v1955_v2  ;;  %v2267_v2 = vld [vmem:[%s5342_s9 + $0x98] sm:$0xff] }
 0xd0d   :  { %v2024_v11 = vpop.f32.mrb[20].mxu1 }
 0xd0e   :  { %v2029_v60 = vadd.f32 %v2024_v11, %v4384_v17  ;;  %v2026_v14 = vpop.f32.mrb[21].mxu1  ;;  %v2253_v17 = vld [vmem:[%s5342_s9 + $0x28] sm:$0xff]  ;;  %v2271_v11 = vld [vmem:[%s5342_s9 + $0xb8] sm:$0xff] }
 0xd0f   :  { %v2030_v61 = vadd.f32 %v2026_v14, %v4388_v45  ;;  %v2248_v45 = vld [vmem:[%s5342_s9] sm:$0xff]  ;;  %v3261_v28 = vpack.c.bf16 %v2253_v17, %v2249_v20  ;;  %v2274_v17 = vld [vmem:[%s5342_s9 + $0xd0] sm:$0xff] }
 0xd10   :  { %v2865_v51 = vmul.f32 -1.442695, %v2029_v60  ;;  %v3263_v33 = vpack.c.bf16 %v2252_v38, %v2248_v45  ;;  %v2278_v45 = vld [vmem:[%s5342_s9 + $0xf0] sm:$0xff]  ;;  %v2057_v38 = vld [vmem:[%s5341_s8 + $0x8] sm:$0xff] }
 0xd11   :  { %3262 = vmatprep.subr.bf16.mxu0 %v3261_v28  ;;  %v2866_v22 = vmul.f32 -1.442695, %v2030_v61  ;;  %v4712_v28 = vld [vmem:[%s5334_s1] sm:$0x3f]  ;;  %v3291_v27 = vpack.c.bf16 %v2278_v45, %v2274_v17  ;;  %v2129_v17 = vld [vmem:[%s5341_s8 + $0x248] sm:$0xff] }
 0xd12   :  { %3650 = vpow2.f32 %v2865_v51  ;;  %3264 = vmatpush1.bf16.msra.mxu0 %v3263_v33  ;;  %v3285_v51 = vpack.c.bf16 %v2271_v11, %v2267_v2  ;;  %v2117_v2 = vld [vmem:[%s5341_s8 + $0x1e8] sm:$0xff] }
 0xd13   :  { %3652 = vtanh.f32 %v2030_v61  ;;  %3266 = vmatprep.subr.bf16.mxu0 %v3265_v34  ;;  %v2266_v61 = vld [vmem:[%s5342_s9 + $0x90] sm:$0xff]  ;;  %v3293_v34 = vpack.c.bf16 %v2061_v26, %v2057_v38  ;;  %v2133_v45 = vld [vmem:[%s5341_s8 + $0x268] sm:$0xff] }
 0xd14   :  { %v3329_v26 = vpack.c.bf16 %v2133_v45, %v2129_v17 }
 0xd16   :  { %3268 = vmatpush1.bf16.msra.mxu0 %v3267_v9  ;;  %v3295_v9 = vpack.c.bf16 %v2060_v42, %v2056_v41  ;;  %v2137_v41 = vld [vmem:[%s5341_s8 + $0x288] sm:$0xff] }
 0xd17   :  { %3270 = vmatprep.subr.bf16.mxu0 %v3269_v40  ;;  %v2141_v42 = vld [vmem:[%s5341_s8 + $0x2a8] sm:$0xff] }
 0xd18   :  { %v3333_v50 = vpack.c.bf16 %v2141_v42, %v2137_v41 }
 0xd1a   :  { %3272 = vmatpush1.bf16.msra.mxu0 %v3271_v47  ;;  %v2077_v47 = vld [vmem:[%s5341_s8 + $0xa8] sm:$0xff] }
 0xd1b   :  { %3274 = vmatprep.subr.bf16.mxu0 %v3273_v23  ;;  %v3299_v23 = vpack.c.bf16 %v2068_v21, %v2064_v55  ;;  %v3301_v52 = vpack.c.bf16 %v2077_v47, %v2073_v46  ;;  %v2145_v55 = vld [vmem:[%s5341_s8 + $0x2c8] sm:$0xff] }
 0xd1c   :  { %v3651_v4 = vpop.eup %3650  ;;  %v2149_v21 = vld [vmem:[%s5341_s8 + $0x2e8] sm:$0xff] }
 0xd1d   :  { %v2034_v32 = vadd.f32 1.0, %v3651_v4  ;;  %v3653_v8 = vpop.eup %3652  ;;  %v2270_v4 = vld [vmem:[%s5342_s9 + $0xb0] sm:$0xff]  ;;  %v3337_v47 = vpack.c.bf16 %v2149_v21, %v2145_v55 }
 0xd1e   :  { %3276 = vmatpush1.bf16.msra.mxu0 %v3275_v53  ;;  %v2085_v53 = vld [vmem:[%s5341_s8 + $0xe8] sm:$0xff] }
 0xd1f   :  { %3654 = vrcp.f32 %v2034_v32  ;;  %3278 = vmatprep.subr.bf16.mxu0 %v3277_v56  ;;  %v2275_v32 = vld [vmem:[%s5342_s9 + $0xd8] sm:$0xff]  ;;  %v3303_v56 = vpack.c.bf16 %v2076_v5, %v2072_v3  ;;  %v2153_v3 = vld [vmem:[%s5341_s8 + $0x308] sm:$0xff] }
 0xd20   :  { %3656 = vpow2.f32 %v2866_v22  ;;  %v3305_v22 = vpack.c.bf16 %v2085_v53, %v2081_v25  ;;  %v2157_v5 = vld [vmem:[%s5341_s8 + $0x328] sm:$0xff] }
 0xd21   :  { %v3341_v53 = vpack.c.bf16 %v2157_v5, %v2153_v3 }
 0xd29   :  { %v3655_v15 = vpop.eup %3654 }
 0xd2a   :  { %v2045_v16 = vmul.f32 %v3655_v15, %v3653_v8  ;;  %v3657_v6 = vpop.eup %3656  ;;  %v2044_v39 = vmul.f32 %v3655_v15, %v4585_v57  ;;  %v3704_v57 = vmov 1983009808   ;;  %v2279_v8 = vld [vmem:[%s5342_s9 + $0xf8] sm:$0xff]  ;;  %v3287_v15 = vpack.c.bf16 %v2270_v4, %v2266_v61  ;;  %v2121_v61 = vld [vmem:[%s5341_s8 + $0x208] sm:$0xff] }
 0xd2b   :  { %v2041_v19 = vadd.f32 1.0, %v3657_v6  ;;  %v2430_v63 = vunpack.c.l.s4 %v3704_v57  ;;  %v3289_v20 = vpack.c.bf16 %v2279_v8, %v2275_v32  ;;  %v2080_v6 = vld [vmem:[%s5341_s8 + $0xc0] sm:$0xff]  ;;  %v2109_v57 = vld [vmem:[%s5341_s8 + $0x1a8] sm:$0xff] }
 0xd2c   :  { %2047 = vrot.lane.b32.xlu0 %v2045_v16, %s3703_s4  ;;  %v2125_v4 = vld [vmem:[%s5341_s8 + $0x228] sm:$0xff] }
 0xd2d   :  { %3658 = vrcp.f32 %v2041_v19  ;;  %v2431_v14 = vunpack.c.0.s8 %v2430_v63  ;;  %v2084_v19 = vld [vmem:[%s5341_s8 + $0xe0] sm:$0xff]  ;;  %v3315_v63 = vpack.c.bf16 %v2100_v54, %v2096_v44  ;;  %v3325_v8 = vpack.c.bf16 %v2125_v4, %v2121_v61  ;;  %v2177_v44 = vld [vmem:[%s5341_s8 + $0x3c8] sm:$0xff] }
 0xd2e   :  { %v2181_v54 = vld [vmem:[%s5341_s8 + $0x3e8] sm:$0xff] }
 0xd2f   :  { %v4701_v16 = vsub.s32 %v2431_v14, %v4168_v58  ;;  %v2112_v14 = vld [vmem:[%s5341_s8 + $0x1c0] sm:$0xff] }
 0xd31   :  { %v4722_v33 = vrot.slane %v4712_v28, %v4701_v16 }
 0xd33   :  { %v4738_v40 = vcombine.high %v4722_v33, %v4722_v33 }
 0xd37   :  { %v3659_v12 = vpop.eup %3658 }
 0xd9e   :  { %v2048_v30 = vpop.permute.xlu0 %2047 }
 0xd9f   :  { %v2050_v31 = vadd.f32 %v2048_v30, %v2044_v39  ;;  %v2089_v39 = vld [vmem:[%s5341_s8 + $0x108] sm:$0xff] }
 0xda0   :  { %v2093_v30 = vld [vmem:[%s5341_s8 + $0x128] sm:$0xff] }
 0xda1   :  { %3660 = vtanh.f32 %v2050_v31  ;;  %v3307_v31 = vpack.c.bf16 %v2084_v19, %v2080_v6  ;;  %v2161_v6 = vld [vmem:[%s5341_s8 + $0x348] sm:$0xff] }
 0xda2   :  { %v2165_v19 = vld [vmem:[%s5341_s8 + $0x368] sm:$0xff] }
 0xdab   :  { %v3661_v35 = vpop.eup %3660 }
 0xdac   :  { %v2052_v36 = vmul.f32 %v3661_v35, %v3659_v12  ;;  %v3309_v12 = vpack.c.bf16 %v2093_v30, %v2089_v39  ;;  %v2088_v35 = vld [vmem:[%s5341_s8 + $0x100] sm:$0xff]  ;;  %v3345_v30 = vpack.c.bf16 %v2165_v19, %v2161_v6 }
 0xdae   :  { %v2053_v13 = vadd.f32 %v2052_v36, %v4590_v18  ;;  %v2262_v18 = vld [vmem:[%s5342_s9 + $0x70] sm:$0xff]  ;;  %v2092_v36 = vld [vmem:[%s5341_s8 + $0x120] sm:$0xff] }
 0xdaf   :  { %v3283_v60 = vpack.c.bf16 %v2262_v18, %v2258_v1  ;;  %v3311_v43 = vpack.c.bf16 %v2092_v36, %v2088_v35  ;;  %v2104_v1 = vld [vmem:[%s5341_s8 + $0x180] sm:$0xff]  ;;  %v2169_v35 = vld [vmem:[%s5341_s8 + $0x388] sm:$0xff] }
 0xdb0   :  { %v2054_v37 = vmul.f32 0.16666667, %v2053_v13  ;;  %v2097_v13 = vld [vmem:[%s5341_s8 + $0x148] sm:$0xff]  ;;  %v2108_v18 = vld [vmem:[%s5341_s8 + $0x1a0] sm:$0xff] }
 0xdb1   :  { %v3319_v11 = vpack.c.bf16 %v2108_v18, %v2104_v1  ;;  %v2173_v36 = vld [vmem:[%s5341_s8 + $0x3a8] sm:$0xff] }
 0xdb2   :  { %2281 = vrot.lane.b32.xlu1 %v2054_v37, %s3703_s4  ;;  %v2101_v37 = vld [vmem:[%s5341_s8 + $0x168] sm:$0xff] }
 0xdb3   :  { %v3313_v29 = vpack.c.bf16 %v2101_v37, %v2097_v13  ;;  %v3349_v37 = vpack.c.bf16 %v2173_v36, %v2169_v35  ;;  %v2185_v1 = vld [vmem:[%s5341_s8 + $0x408] sm:$0xff] }
 0xdb4   :  { %v2189_v18 = vld [vmem:[%s5341_s8 + $0x428] sm:$0xff] }
 0xe24   :  { %v2282_v10 = vpop.permute.xlu1 %2281 }
 0xe25   :  { %2867 = vmatmul.mubr.msk.f32.vlgmr.msra.gmra.mrb[6].mxu0 %vm369_vm1, %v2282_v10 }
 0xe26   :  { %3280 = vmatpush1.bf16.msra.mxu0 %v3279_v48  ;;  %2420 = vmatprep.mubr.f32.mxu0 %v3702_v7  ;;  %v2105_v48 = vld [vmem:[%s5341_s8 + $0x188] sm:$0xff] }
 0xe27   :  { %3282 = vmatprep.subr.bf16.mxu0 %v3281_v0  ;;  %v3317_v0 = vpack.c.bf16 %v2109_v57, %v2105_v48  ;;  %v3353_v57 = vpack.c.bf16 %v2181_v54, %v2177_v44  ;;  %v2428_v44 = vcombine.high %v4712_v28, %v4712_v28  ;;  %v2071_v28 = vld [vmem:[%s5341_s8 + $0x78] sm:$0xff] }
 0xe2a   :  { %3284 = vmatpush1.bf16.msra.mxu0 %v3283_v60 }
 0xe2b   :  { %3286 = vmatprep.subr.bf16.mxu0 %v3285_v51  ;;  %v2116_v51 = vld [vmem:[%s5341_s8 + $0x1e0] sm:$0xff] }
 0xe2c   :  { %v3323_v32 = vpack.c.bf16 %v2116_v51, %v2112_v14  ;;  %v2193_v14 = vld [vmem:[%s5341_s8 + $0x448] sm:$0xff] }
 0xe2d   :  { %v2197_v51 = vld [vmem:[%s5341_s8 + $0x468] sm:$0xff] }
 0xe2e   :  { %3288 = vmatpush1.bf16.msra.mxu0 %v3287_v15  ;;  %v2120_v15 = vld [vmem:[%s5341_s8 + $0x200] sm:$0xff]  ;;  %v3361_v4 = vpack.c.bf16 %v2197_v51, %v2193_v14  ;;  %v2079_v14 = vld [vmem:[%s5341_s8 + $0xb8] sm:$0xff] }
 0xe2f   :  { %3290 = vmatprep.subr.bf16.mxu0 %v3289_v20  ;;  %v2124_v20 = vld [vmem:[%s5341_s8 + $0x220] sm:$0xff] }
 0xe30   :  { %v3327_v38 = vpack.c.bf16 %v2124_v20, %v2120_v15  ;;  %v2201_v15 = vld [vmem:[%s5341_s8 + $0x488] sm:$0xff] }
 0xe31   :  { %v2205_v20 = vld [vmem:[%s5341_s8 + $0x4a8] sm:$0xff] }
 0xe32   :  { %3292 = vmatpush1.bf16.msra.mxu0 %v3291_v27  ;;  %v2128_v27 = vld [vmem:[%s5341_s8 + $0x240] sm:$0xff]  ;;  %v3365_v45 = vpack.c.bf16 %v2205_v20, %v2201_v15  ;;  %v2087_v15 = vld [vmem:[%s5341_s8 + $0xf8] sm:$0xff] }
 0xe33   :  { %3294 = vmatprep.subr.bf16.mxu0 %v3293_v34  ;;  %v2132_v34 = vld [vmem:[%s5341_s8 + $0x260] sm:$0xff] }
 0xe34   :  { %v3331_v49 = vpack.c.bf16 %v2132_v34, %v2128_v27  ;;  %v2209_v27 = vld [vmem:[%s5341_s8 + $0x4c8] sm:$0xff] }
 0xe35   :  { %2868 = vmatmul.mubr.msk.f32.vlgmr.msra.gmra.mrb[8].mxu0 %vm369_vm1, %v2282_v10  ;;  %v2113_v10 = vld [vmem:[%s5341_s8 + $0x1c8] sm:$0xff] }
 0xe36   :  { %3296 = vmatpush1.bf16.msra.mxu0 %v3295_v9  ;;  %2511 = vmatprep.mubr.f32.mxu0 %v4738_v40  ;;  %v3321_v60 = vpack.c.bf16 %v2117_v2, %v2113_v10  ;;  %v2136_v9 = vld [vmem:[%s5341_s8 + $0x280] sm:$0xff]  ;;  %v3357_v2 = vpack.c.bf16 %v2189_v18, %v2185_v1  ;;  %v2213_v34 = vld [vmem:[%s5341_s8 + $0x4e8] sm:$0xff]  ;;  %v5035_v1 = vrot.slane %v2428_v44, %v4701_v16  ;;  %v2130_v44 = vld [vmem:[%s5341_s8 + $0x250] sm:$0xff] }
 0xe37   :  { %3298 = vmatprep.subr.bf16.mxu0 %v3297_v24  ;;  %v2140_v24 = vld [vmem:[%s5341_s8 + $0x2a0] sm:$0xff]  ;;  %v3369_v42 = vpack.c.bf16 %v2213_v34, %v2209_v27 }
 0xe38   :  { %v3335_v46 = vpack.c.bf16 %v2140_v24, %v2136_v9  ;;  %v2217_v9 = vld [vmem:[%s5341_s8 + $0x508] sm:$0xff] }
 0xe39   :  { %v2221_v24 = vld [vmem:[%s5341_s8 + $0x528] sm:$0xff] }
 0xe3a   :  { %3300 = vmatpush1.bf16.msra.mxu0 %v3299_v23  ;;  %v2144_v23 = vld [vmem:[%s5341_s8 + $0x2c0] sm:$0xff]  ;;  %v3373_v21 = vpack.c.bf16 %v2221_v24, %v2217_v9 }
 0xe3b   :  { %3302 = vmatprep.subr.bf16.mxu0 %v3301_v52  ;;  %v2148_v52 = vld [vmem:[%s5341_s8 + $0x2e0] sm:$0xff] }
 0xe3c   :  { %v3339_v25 = vpack.c.bf16 %v2148_v52, %v2144_v23  ;;  %v2225_v23 = vld [vmem:[%s5341_s8 + $0x548] sm:$0xff] }
 0xe3d   :  { %v2229_v52 = vld [vmem:[%s5341_s8 + $0x568] sm:$0xff] }
 0xe3e   :  { %3304 = vmatpush1.bf16.msra.mxu0 %v3303_v56  ;;  %v2152_v56 = vld [vmem:[%s5341_s8 + $0x300] sm:$0xff]  ;;  %v3377_v5 = vpack.c.bf16 %v2229_v52, %v2225_v23 }
 0xe3f   :  { %3306 = vmatprep.subr.bf16.mxu0 %v3305_v22  ;;  %v2156_v22 = vld [vmem:[%s5341_s8 + $0x320] sm:$0xff] }
 0xe40   :  { %v3343_v39 = vpack.c.bf16 %v2156_v22, %v2152_v56  ;;  %v2233_v56 = vld [vmem:[%s5341_s8 + $0x588] sm:$0xff] }
 0xe41   :  { %v2237_v22 = vld [vmem:[%s5341_s8 + $0x5a8] sm:$0xff] }
 0xe42   :  { %3308 = vmatpush1.bf16.msra.mxu0 %v3307_v31  ;;  %v2160_v31 = vld [vmem:[%s5341_s8 + $0x340] sm:$0xff]  ;;  %v3381_v19 = vpack.c.bf16 %v2237_v22, %v2233_v56 }
 0xe43   :  { %3310 = vmatprep.subr.bf16.mxu0 %v3309_v12  ;;  %v2164_v12 = vld [vmem:[%s5341_s8 + $0x360] sm:$0xff] }
 0xe44   :  { %v3347_v13 = vpack.c.bf16 %v2164_v12, %v2160_v31  ;;  %v2241_v31 = vld [vmem:[%s5341_s8 + $0x5c8] sm:$0xff] }
 0xe45   :  { %v2245_v12 = vld [vmem:[%s5341_s8 + $0x5e8] sm:$0xff] }
 0xe46   :  { %3312 = vmatpush1.bf16.msra.mxu0 %v3311_v43  ;;  %v2168_v43 = vld [vmem:[%s5341_s8 + $0x380] sm:$0xff]  ;;  %v3385_v36 = vpack.c.bf16 %v2245_v12, %v2241_v31 }
 0xe47   :  { %3314 = vmatprep.subr.bf16.mxu0 %v3313_v29  ;;  %v2172_v29 = vld [vmem:[%s5341_s8 + $0x3a0] sm:$0xff] }
 0xe48   :  { %v3351_v48 = vpack.c.bf16 %v2172_v29, %v2168_v43  ;;  %v2059_v43 = vld [vmem:[%s5341_s8 + $0x18] sm:$0xff] }
 0xe49   :  { %v2063_v29 = vld [vmem:[%s5341_s8 + $0x38] sm:$0xff] }
 0xe4a   :  { %3316 = vmatpush1.bf16.msra.mxu0 %v3315_v63  ;;  %v2176_v63 = vld [vmem:[%s5341_s8 + $0x3c0] sm:$0xff] }
 0xe4b   :  { %3318 = vmatprep.subr.bf16.mxu0 %v3317_v0  ;;  %v2180_v0 = vld [vmem:[%s5341_s8 + $0x3e0] sm:$0xff] }
 0xe4c   :  { %v3355_v10 = vpack.c.bf16 %v2180_v0, %v2176_v63  ;;  %v2062_v63 = vld [vmem:[%s5341_s8 + $0x30] sm:$0xff]  ;;  %v2067_v0 = vld [vmem:[%s5341_s8 + $0x58] sm:$0xff] }
 0xe4e   :  { %3320 = vmatpush1.bf16.msra.mxu0 %v3319_v11  ;;  %v2184_v11 = vld [vmem:[%s5341_s8 + $0x400] sm:$0xff] }
 0xe4f   :  { %3322 = vmatprep.subr.bf16.mxu0 %v3321_v60  ;;  %v2188_v60 = vld [vmem:[%s5341_s8 + $0x420] sm:$0xff] }
 0xe50   :  { %v3359_v61 = vpack.c.bf16 %v2188_v60, %v2184_v11  ;;  %v2070_v11 = vld [vmem:[%s5341_s8 + $0x70] sm:$0xff]  ;;  %v2075_v60 = vld [vmem:[%s5341_s8 + $0x98] sm:$0xff] }
 0xe52   :  { %3324 = vmatpush1.bf16.msra.mxu0 %v3323_v32  ;;  %v2192_v32 = vld [vmem:[%s5341_s8 + $0x440] sm:$0xff] }
 0xe53   :  { %3326 = vmatprep.subr.bf16.mxu0 %v3325_v8  ;;  %v2196_v8 = vld [vmem:[%s5341_s8 + $0x460] sm:$0xff] }
 0xe54   :  { %v3363_v17 = vpack.c.bf16 %v2196_v8, %v2192_v32  ;;  %v2078_v32 = vld [vmem:[%s5341_s8 + $0xb0] sm:$0xff]  ;;  %v2083_v8 = vld [vmem:[%s5341_s8 + $0xd8] sm:$0xff] }
 0xe55   :  { %v3401_v20 = vpack.c.bf16 %v2087_v15, %v2083_v8  ;;  %v2154_v15 = vld [vmem:[%s5341_s8 + $0x310] sm:$0xff] }
 0xe56   :  { %3328 = vmatpush1.bf16.msra.mxu0 %v3327_v38  ;;  %v2200_v38 = vld [vmem:[%s5341_s8 + $0x480] sm:$0xff] }
 0xe57   :  { %3330 = vmatprep.subr.bf16.mxu0 %v3329_v26  ;;  %v2204_v26 = vld [vmem:[%s5341_s8 + $0x4a0] sm:$0xff] }
 0xe58   :  { %v3367_v41 = vpack.c.bf16 %v2204_v26, %v2200_v38  ;;  %v2091_v38 = vld [vmem:[%s5341_s8 + $0x118] sm:$0xff] }
 0xe59   :  { %v2095_v26 = vld [vmem:[%s5341_s8 + $0x138] sm:$0xff] }
 0xe5a   :  { %3332 = vmatpush1.bf16.msra.mxu0 %v3331_v49  ;;  %v2208_v49 = vld [vmem:[%s5341_s8 + $0x4c0] sm:$0xff]  ;;  %v3405_v34 = vpack.c.bf16 %v2095_v26, %v2091_v38  ;;  %v2162_v26 = vld [vmem:[%s5341_s8 + $0x350] sm:$0xff] }
 0xe5b   :  { %3334 = vmatprep.subr.bf16.mxu0 %v3333_v50  ;;  %v2212_v50 = vld [vmem:[%s5341_s8 + $0x4e0] sm:$0xff] }
 0xe5c   :  { %v3371_v55 = vpack.c.bf16 %v2212_v50, %v2208_v49  ;;  %v2099_v49 = vld [vmem:[%s5341_s8 + $0x158] sm:$0xff] }
 0xe5d   :  { %v2103_v50 = vld [vmem:[%s5341_s8 + $0x178] sm:$0xff] }
 0xe5e   :  { %3336 = vmatpush1.bf16.msra.mxu0 %v3335_v46  ;;  %v2216_v46 = vld [vmem:[%s5341_s8 + $0x500] sm:$0xff]  ;;  %v3409_v24 = vpack.c.bf16 %v2103_v50, %v2099_v49  ;;  %v2170_v50 = vld [vmem:[%s5341_s8 + $0x390] sm:$0xff] }
 0xe5f   :  { %3338 = vmatprep.subr.bf16.mxu0 %v3337_v47  ;;  %v2220_v47 = vld [vmem:[%s5341_s8 + $0x520] sm:$0xff] }
 0xe60   :  { %v3375_v3 = vpack.c.bf16 %v2220_v47, %v2216_v46  ;;  %v2107_v46 = vld [vmem:[%s5341_s8 + $0x198] sm:$0xff] }
 0xe61   :  { %v2111_v47 = vld [vmem:[%s5341_s8 + $0x1b8] sm:$0xff] }
 0xe62   :  { %3340 = vmatpush1.bf16.msra.mxu0 %v3339_v25  ;;  %v2224_v25 = vld [vmem:[%s5341_s8 + $0x540] sm:$0xff]  ;;  %v3413_v52 = vpack.c.bf16 %v2111_v47, %v2107_v46  ;;  %v2178_v47 = vld [vmem:[%s5341_s8 + $0x3d0] sm:$0xff] }
 0xe63   :  { %3342 = vmatprep.subr.bf16.mxu0 %v3341_v53  ;;  %v2228_v53 = vld [vmem:[%s5341_s8 + $0x560] sm:$0xff] }
 0xe64   :  { %v3379_v6 = vpack.c.bf16 %v2228_v53, %v2224_v25  ;;  %v2115_v25 = vld [vmem:[%s5341_s8 + $0x1d8] sm:$0xff] }
 0xe65   :  { %v2119_v53 = vld [vmem:[%s5341_s8 + $0x1f8] sm:$0xff] }
 0xe66   :  { %3344 = vmatpush1.bf16.msra.mxu0 %v3343_v39  ;;  %v2232_v39 = vld [vmem:[%s5341_s8 + $0x580] sm:$0xff]  ;;  %v3417_v22 = vpack.c.bf16 %v2119_v53, %v2115_v25  ;;  %v2186_v53 = vld [vmem:[%s5341_s8 + $0x410] sm:$0xff] }
 0xe67   :  { %3346 = vmatprep.subr.bf16.mxu0 %v3345_v30  ;;  %v2236_v30 = vld [vmem:[%s5341_s8 + $0x5a0] sm:$0xff] }
 0xe68   :  { %v3383_v35 = vpack.c.bf16 %v2236_v30, %v2232_v39  ;;  %v2123_v39 = vld [vmem:[%s5341_s8 + $0x218] sm:$0xff] }
 0xe69   :  { %v2127_v30 = vld [vmem:[%s5341_s8 + $0x238] sm:$0xff] }
 0xe6a   :  { %3348 = vmatpush1.bf16.msra.mxu0 %v3347_v13  ;;  %v2240_v13 = vld [vmem:[%s5341_s8 + $0x5c0] sm:$0xff]  ;;  %v3421_v12 = vpack.c.bf16 %v2127_v30, %v2123_v39  ;;  %v2194_v30 = vld [vmem:[%s5341_s8 + $0x450] sm:$0xff] }
 0xe6b   :  { %3350 = vmatprep.subr.bf16.mxu0 %v3349_v37  ;;  %v2244_v37 = vld [vmem:[%s5341_s8 + $0x5e0] sm:$0xff] }
 0xe6c   :  { %v3387_v54 = vpack.c.bf16 %v2244_v37, %v2240_v13  ;;  %v2131_v13 = vld [vmem:[%s5341_s8 + $0x258] sm:$0xff] }
 0xe6d   :  { %v2135_v37 = vld [vmem:[%s5341_s8 + $0x278] sm:$0xff] }
 0xe6e   :  { %3352 = vmatpush1.bf16.msra.mxu0 %v3351_v48  ;;  %v3389_v48 = vpack.c.bf16 %v2063_v29, %v2059_v43  ;;  %v3425_v29 = vpack.c.bf16 %v2135_v37, %v2131_v13  ;;  %v2202_v37 = vld [vmem:[%s5341_s8 + $0x490] sm:$0xff] }
 0xe6f   :  { %3354 = vmatprep.subr.bf16.mxu0 %v3353_v57  ;;  %v2058_v57 = vld [vmem:[%s5341_s8 + $0x10] sm:$0xff] }
 0xe70   :  { %v3391_v18 = vpack.c.bf16 %v2062_v63, %v2058_v57  ;;  %v2143_v57 = vld [vmem:[%s5341_s8 + $0x2b8] sm:$0xff] }
 0xe72   :  { %3356 = vmatpush1.bf16.msra.mxu0 %v3355_v10  ;;  %v3393_v10 = vpack.c.bf16 %v2071_v28, %v2067_v0  ;;  %v2138_v28 = vld [vmem:[%s5341_s8 + $0x290] sm:$0xff] }
 0xe73   :  { %3358 = vmatprep.subr.bf16.mxu0 %v3357_v2  ;;  %v2066_v2 = vld [vmem:[%s5341_s8 + $0x50] sm:$0xff] }
 0xe74   :  { %v3395_v51 = vpack.c.bf16 %v2070_v11, %v2066_v2  ;;  %v2151_v2 = vld [vmem:[%s5341_s8 + $0x2f8] sm:$0xff] }
 0xe75   :  { %2512 = vmatmul.mubr.f32.vlgmr.msra.gmra.mrb[6].mxu0 %v4722_v33 }
 0xe76   :  { %3360 = vmatpush1.bf16.msra.mxu0 %v3359_v61  ;;  %2582 = vmatprep.mubr.f32.mxu0 %v3702_v7  ;;  %v3397_v61 = vpack.c.bf16 %v2079_v14, %v2075_v60  ;;  %v2146_v14 = vld [vmem:[%s5341_s8 + $0x2d0] sm:$0xff] }
 0xe77   :  { %3362 = vmatprep.subr.bf16.mxu0 %v3361_v4  ;;  %v2074_v4 = vld [vmem:[%s5341_s8 + $0x90] sm:$0xff] }
 0xe7a   :  { %3364 = vmatpush1.bf16.msra.mxu0 %v3363_v17  ;;  %v2082_v17 = vld [vmem:[%s5341_s8 + $0xd0] sm:$0xff] }
 0xe7b   :  { %3366 = vmatprep.subr.bf16.mxu0 %v3365_v45  ;;  %v2086_v45 = vld [vmem:[%s5341_s8 + $0xf0] sm:$0xff] }
 0xe7c   :  { %v3403_v27 = vpack.c.bf16 %v2086_v45, %v2082_v17  ;;  %v2167_v17 = vld [vmem:[%s5341_s8 + $0x378] sm:$0xff] }
 0xe7e   :  { %3368 = vmatpush1.bf16.msra.mxu0 %v3367_v41  ;;  %v2090_v41 = vld [vmem:[%s5341_s8 + $0x110] sm:$0xff] }
 0xe7f   :  { %3370 = vmatprep.subr.bf16.mxu0 %v3369_v42  ;;  %v2094_v42 = vld [vmem:[%s5341_s8 + $0x130] sm:$0xff] }
 0xe80   :  { %v3407_v9 = vpack.c.bf16 %v2094_v42, %v2090_v41  ;;  %v2175_v41 = vld [vmem:[%s5341_s8 + $0x3b8] sm:$0xff] }
 0xe82   :  { %3372 = vmatpush1.bf16.msra.mxu0 %v3371_v55  ;;  %v2098_v55 = vld [vmem:[%s5341_s8 + $0x150] sm:$0xff] }
 0xe83   :  { %3374 = vmatprep.subr.bf16.mxu0 %v3373_v21  ;;  %v2102_v21 = vld [vmem:[%s5341_s8 + $0x170] sm:$0xff] }
 0xe84   :  { %v3411_v23 = vpack.c.bf16 %v2102_v21, %v2098_v55  ;;  %v2183_v55 = vld [vmem:[%s5341_s8 + $0x3f8] sm:$0xff] }
 0xe86   :  { %3376 = vmatpush1.bf16.msra.mxu0 %v3375_v3  ;;  %v2106_v3 = vld [vmem:[%s5341_s8 + $0x190] sm:$0xff] }
 0xe87   :  { %3378 = vmatprep.subr.bf16.mxu0 %v3377_v5  ;;  %v2110_v5 = vld [vmem:[%s5341_s8 + $0x1b0] sm:$0xff] }
 0xe88   :  { %v3415_v56 = vpack.c.bf16 %v2110_v5, %v2106_v3  ;;  %v2191_v3 = vld [vmem:[%s5341_s8 + $0x438] sm:$0xff] }
 0xe8a   :  { %3380 = vmatpush1.bf16.msra.mxu0 %v3379_v6  ;;  %v2114_v6 = vld [vmem:[%s5341_s8 + $0x1d0] sm:$0xff] }
 0xe8b   :  { %3382 = vmatprep.subr.bf16.mxu0 %v3381_v19  ;;  %v2118_v19 = vld [vmem:[%s5341_s8 + $0x1f0] sm:$0xff] }
 0xe8c   :  { %v3419_v31 = vpack.c.bf16 %v2118_v19, %v2114_v6  ;;  %v2199_v6 = vld [vmem:[%s5341_s8 + $0x478] sm:$0xff] }
 0xe8e   :  { %3384 = vmatpush1.bf16.msra.mxu0 %v3383_v35  ;;  %v2122_v35 = vld [vmem:[%s5341_s8 + $0x210] sm:$0xff] }
 0xe8f   :  { %3386 = vmatprep.subr.bf16.mxu0 %v3385_v36  ;;  %v2126_v36 = vld [vmem:[%s5341_s8 + $0x230] sm:$0xff] }
 0xe90   :  { %v3423_v43 = vpack.c.bf16 %v2126_v36, %v2122_v35  ;;  %v2207_v35 = vld [vmem:[%s5341_s8 + $0x4b8] sm:$0xff] }
 0xe92   :  { %3388 = vmatpush1.bf16.msra.mxu0 %v3387_v54  ;;  %v2134_v54 = vld [vmem:[%s5341_s8 + $0x270] sm:$0xff] }
 0xe93   :  { %3390 = vmatprep.subr.bf16.mxu0 %v3389_v48  ;;  %v2139_v48 = vld [vmem:[%s5341_s8 + $0x298] sm:$0xff]  ;;  %v3427_v63 = vpack.c.bf16 %v2134_v54, %v2130_v44  ;;  %v2210_v54 = vld [vmem:[%s5341_s8 + $0x4d0] sm:$0xff] }
 0xe94   :  { %v3429_v0 = vpack.c.bf16 %v2143_v57, %v2139_v48  ;;  %v2214_v48 = vld [vmem:[%s5341_s8 + $0x4f0] sm:$0xff]  ;;  %v2219_v57 = vld [vmem:[%s5341_s8 + $0x518] sm:$0xff] }
 0xe95   :  { %2583 = vmatmul.mubr.f32.vlgmr.msra.gmra.mrb[6].mxu0 %v5035_v1 }
 0xe96   :  { %3392 = vmatpush1.bf16.msra.mxu0 %v3391_v18  ;;  %2653 = vmatprep.mubr.f32.mxu0 %v4738_v40  ;;  %v3399_v40 = vpack.c.bf16 %v2078_v32, %v2074_v4  ;;  %v2142_v18 = vld [vmem:[%s5341_s8 + $0x2b0] sm:$0xff]  ;;  %v2159_v4 = vld [vmem:[%s5341_s8 + $0x338] sm:$0xff] }
 0xe97   :  { %3394 = vmatprep.subr.bf16.mxu0 %v3393_v10  ;;  %v2147_v10 = vld [vmem:[%s5341_s8 + $0x2d8] sm:$0xff]  ;;  %v3431_v11 = vpack.c.bf16 %v2142_v18, %v2138_v28  ;;  %v2218_v18 = vld [vmem:[%s5341_s8 + $0x510] sm:$0xff] }
 0xe98   :  { %v3433_v60 = vpack.c.bf16 %v2151_v2, %v2147_v10  ;;  %v2222_v10 = vld [vmem:[%s5341_s8 + $0x530] sm:$0xff]  ;;  %v2227_v2 = vld [vmem:[%s5341_s8 + $0x558] sm:$0xff] }
 0xe9a   :  { %3396 = vmatpush1.bf16.msra.mxu0 %v3395_v51  ;;  %v2150_v51 = vld [vmem:[%s5341_s8 + $0x2f0] sm:$0xff] }
 0xe9b   :  { %3398 = vmatprep.subr.bf16.mxu0 %v3397_v61  ;;  %v2155_v61 = vld [vmem:[%s5341_s8 + $0x318] sm:$0xff]  ;;  %v3435_v32 = vpack.c.bf16 %v2150_v51, %v2146_v14  ;;  %v2226_v51 = vld [vmem:[%s5341_s8 + $0x550] sm:$0xff] }
 0xe9c   :  { %v3437_v8 = vpack.c.bf16 %v2159_v4, %v2155_v61  ;;  %v2230_v61 = vld [vmem:[%s5341_s8 + $0x570] sm:$0xff]  ;;  %v2235_v4 = vld [vmem:[%s5341_s8 + $0x598] sm:$0xff] }
 0xe9e   :  { %3400 = vmatpush1.bf16.msra.mxu0 %v3399_v40  ;;  %v2158_v40 = vld [vmem:[%s5341_s8 + $0x330] sm:$0xff] }
 0xe9f   :  { %3402 = vmatprep.subr.bf16.mxu0 %v3401_v20  ;;  %v2163_v20 = vld [vmem:[%s5341_s8 + $0x358] sm:$0xff]  ;;  %v3439_v45 = vpack.c.bf16 %v2158_v40, %v2154_v15  ;;  %v2234_v40 = vld [vmem:[%s5341_s8 + $0x590] sm:$0xff] }
 0xea0   :  { %v3441_v38 = vpack.c.bf16 %v2167_v17, %v2163_v20  ;;  %v2238_v20 = vld [vmem:[%s5341_s8 + $0x5b0] sm:$0xff]  ;;  %v2243_v17 = vld [vmem:[%s5341_s8 + $0x5d8] sm:$0xff] }
 0xea2   :  { %3404 = vmatpush1.bf16.msra.mxu0 %v3403_v27  ;;  %v2166_v27 = vld [vmem:[%s5341_s8 + $0x370] sm:$0xff] }
 0xea3   :  { %3406 = vmatprep.subr.bf16.mxu0 %v3405_v34  ;;  %v2171_v34 = vld [vmem:[%s5341_s8 + $0x398] sm:$0xff]  ;;  %v3443_v42 = vpack.c.bf16 %v2166_v27, %v2162_v26  ;;  %v2242_v27 = vld [vmem:[%s5341_s8 + $0x5d0] sm:$0xff] }
 0xea4   :  { %v3445_v49 = vpack.c.bf16 %v2175_v41, %v2171_v34  ;;  %v2246_v34 = vld [vmem:[%s5341_s8 + $0x5f0] sm:$0xff] }
 0xea5   :  { %v3483_v41 = vpack.c.bf16 %v2246_v34, %v2242_v27 }
 0xea6   :  { %3408 = vmatpush1.bf16.msra.mxu0 %v3407_v9  ;;  %v2174_v9 = vld [vmem:[%s5341_s8 + $0x3b0] sm:$0xff] }
 0xea7   :  { %3410 = vmatprep.subr.bf16.mxu0 %v3409_v24  ;;  %v2179_v24 = vld [vmem:[%s5341_s8 + $0x3d8] sm:$0xff]  ;;  %v3447_v21 = vpack.c.bf16 %v2174_v9, %v2170_v50 }
 0xea8   :  { %v3449_v46 = vpack.c.bf16 %v2183_v55, %v2179_v24 }
 0xeaa   :  { %3412 = vmatpush1.bf16.msra.mxu0 %v3411_v23  ;;  %v2182_v23 = vld [vmem:[%s5341_s8 + $0x3f0] sm:$0xff] }
 0xeab   :  { %3414 = vmatprep.subr.bf16.mxu0 %v3413_v52  ;;  %v2187_v52 = vld [vmem:[%s5341_s8 + $0x418] sm:$0xff]  ;;  %v3451_v5 = vpack.c.bf16 %v2182_v23, %v2178_v47 }
 0xeac   :  { %v3453_v25 = vpack.c.bf16 %v2191_v3, %v2187_v52 }
 0xeae   :  { %3416 = vmatpush1.bf16.msra.mxu0 %v3415_v56  ;;  %v2190_v56 = vld [vmem:[%s5341_s8 + $0x430] sm:$0xff] }
 0xeaf   :  { %3418 = vmatprep.subr.bf16.mxu0 %v3417_v22  ;;  %v2195_v22 = vld [vmem:[%s5341_s8 + $0x458] sm:$0xff]  ;;  %v3455_v19 = vpack.c.bf16 %v2190_v56, %v2186_v53 }
 0xeb0   :  { %v3457_v39 = vpack.c.bf16 %v2199_v6, %v2195_v22 }
 0xeb2   :  { %3420 = vmatpush1.bf16.msra.mxu0 %v3419_v31  ;;  %v2198_v31 = vld [vmem:[%s5341_s8 + $0x470] sm:$0xff] }
 0xeb3   :  { %3422 = vmatprep.subr.bf16.mxu0 %v3421_v12  ;;  %v2203_v12 = vld [vmem:[%s5341_s8 + $0x498] sm:$0xff]  ;;  %v3459_v36 = vpack.c.bf16 %v2198_v31, %v2194_v30 }
 0xeb4   :  { %v3461_v13 = vpack.c.bf16 %v2207_v35, %v2203_v12 }
 0xeb6   :  { %3424 = vmatpush1.bf16.msra.mxu0 %v3423_v43  ;;  %v2206_v43 = vld [vmem:[%s5341_s8 + $0x4b0] sm:$0xff] }
 0xeb7   :  { %3426 = vmatprep.subr.bf16.mxu0 %v3425_v29  ;;  %v2211_v29 = vld [vmem:[%s5341_s8 + $0x4d8] sm:$0xff] }
 0xeba   :  { %3428 = vmatpush1.bf16.msra.mxu0 %v3427_v63  ;;  %v2223_v63 = vld [vmem:[%s5341_s8 + $0x538] sm:$0xff] }
 0xebb   :  { %3430 = vmatprep.subr.bf16.mxu0 %v3429_v0  ;;  %v3467_v0 = vpack.c.bf16 %v2214_v48, %v2210_v54  ;;  %v3469_v28 = vpack.c.bf16 %v2223_v63, %v2219_v57 }
 0xebe   :  { %3432 = vmatpush1.bf16.msra.mxu0 %v3431_v11  ;;  %v2231_v11 = vld [vmem:[%s5341_s8 + $0x578] sm:$0xff] }
 0xebf   :  { %3434 = vmatprep.subr.bf16.mxu0 %v3433_v60  ;;  %v3471_v60 = vpack.c.bf16 %v2222_v10, %v2218_v18  ;;  %v3473_v14 = vpack.c.bf16 %v2231_v11, %v2227_v2 }
 0xec2   :  { %3436 = vmatpush1.bf16.msra.mxu0 %v3435_v32  ;;  %v2239_v32 = vld [vmem:[%s5341_s8 + $0x5b8] sm:$0xff] }
 0xec3   :  { %3438 = vmatprep.subr.bf16.mxu0 %v3437_v8  ;;  %v3475_v8 = vpack.c.bf16 %v2230_v61, %v2226_v51  ;;  %v3477_v15 = vpack.c.bf16 %v2239_v32, %v2235_v4 }
 0xec6   :  { %3440 = vmatpush1.bf16.msra.mxu0 %v3439_v45  ;;  %v2247_v45 = vld [vmem:[%s5341_s8 + $0x5f8] sm:$0xff] }
 0xec7   :  { %3442 = vmatprep.subr.bf16.mxu0 %v3441_v38  ;;  %v3479_v38 = vpack.c.bf16 %v2238_v20, %v2234_v40  ;;  %v3481_v26 = vpack.c.bf16 %v2247_v45, %v2243_v17 }
 0xeca   :  { %3444 = vmatpush1.bf16.msra.mxu0 %v3443_v42  ;;  %v2731_v42 = vld [vmem:[%s5343_s10] sm:$0xf] }
 0xecb   :  { %3446 = vmatprep.subr.bf16.mxu0 %v3445_v49  ;;  %v2736_v49 = vrot.slane %v2731_v42, %v4171_v59  ;;  %v2740_v50 = vrot.slane %v2731_v42, %v4177_v62  ;;  %v2743_v59 = vsub.s32 2, %v4168_v58  ;;  %v2747_v62 = vsub.s32 3, %v4168_v58 }
 0xecd   :  { %v2744_v56 = vrot.slane %v2731_v42, %v2743_v59  ;;  %v2748_v22 = vrot.slane %v2731_v42, %v2747_v62 }
 0xece   :  { %3448 = vmatpush1.bf16.msra.mxu0 %v3447_v21 }
 0xecf   :  { %3450 = vmatprep.subr.bf16.mxu0 %v3449_v46 }
 0xed2   :  { %3452 = vmatpush1.bf16.msra.mxu0 %v3451_v5 }
 0xed3   :  { %3454 = vmatprep.subr.bf16.mxu0 %v3453_v25 }
 0xed5   :  { %2654 = vmatmul.mubr.f32.vlgmr.msra.gmra.mrb[8].mxu0 %v4722_v33  ;;  %v2215_v33 = vld [vmem:[%s5341_s8 + $0x4f8] sm:$0xff]  ;;  %s3705_s8 = smov [#allocation2]  }
 0xed6   :  { %3456 = vmatpush1.bf16.msra.mxu0 %v3455_v19  ;;  %2724 = vmatprep.mubr.f32.mxu0 %v3702_v7  ;;  %v3463_v7 = vpack.c.bf16 %v2206_v43, %v2202_v37  ;;  %v3465_v44 = vpack.c.bf16 %v2215_v33, %v2211_v29  ;;  %s2817_s10 = sshll.u32 %s3705_s8, 4  ;;  %s2818_s10 = int_to_ptr.vmem [resolvable:$true] %s2817_s10 }
 0xed7   :  { %3458 = vmatprep.subr.bf16.mxu0 %v3457_v39  ;;  %s3678_s21 = scalar_lea.vmem %s2818_s10, 128  ;;  %p3683_p1 = scmp.lt.s32.totalorder %s2818_s10, %s2818_s10 }
 0xed8   :  { %p3679_p0 = scmp.ne.s32.totalorder %s2818_s10, %s3678_s21  ;;  %p3684_p2 = scmp.lt.s32.totalorder %s3678_s21, %s3678_s21 }
 0xeda   :  { %3460 = vmatpush1.bf16.msra.mxu0 %v3459_v36  ;;  %p3685_p3 = por %p3684_p2, %p3683_p1 }
 0xedb   :  { %3462 = vmatprep.subr.bf16.mxu0 %v3461_v13 }
 0xedc   :  { %p3686_p4 = pnand %p3685_p3, %p3679_p0 }
 0xede   :  { %3464 = vmatpush1.bf16.msra.mxu0 %v3463_v7 }
 0xedf   :  { %3466 = vmatprep.subr.bf16.mxu0 %v3465_v44 }
 0xee2   :  { %3468 = vmatpush1.bf16.msra.mxu0 %v3467_v0 }
 0xee3   :  { %3470 = vmatprep.subr.bf16.mxu0 %v3469_v28 }
 0xee6   :  { %3472 = vmatpush1.bf16.msra.mxu0 %v3471_v60 }
 0xee7   :  { %3474 = vmatprep.subr.bf16.mxu0 %v3473_v14 }
 0xeea   :  { %3476 = vmatpush1.bf16.msra.mxu0 %v3475_v8 }
 0xeeb   :  { %3478 = vmatprep.subr.bf16.mxu0 %v3477_v15 }
 0xeee   :  { %3480 = vmatpush1.bf16.msra.mxu0 %v3479_v38 }
 0xeef   :  { %3482 = vmatprep.subr.bf16.mxu0 %v3481_v26 }
 0xef2   :  { %3484 = vmatpush1.bf16.msra.mxu0 %v3483_v41 }
 0xef5   :  { %2725 = vmatmul.mubr.f32.vlgmr.msra.gmra.mrb[8].mxu0 %v5035_v1 }
 0xf68   :  { %v2584_v9 = vpop.f32.mrb[6].mxu0 }
 0xf69   :  { %v2753_v24 = vadd.f32 %v2736_v49, %v2584_v9  ;;  %v2586_v55 = vpop.f32.mrb[7].mxu0 }
 0xf6a   :  { %v2754_v21 = vadd.f32 %v2740_v50, %v2586_v55 }
 0xf6b   :  { %v2869_v46 = vmul.f32 -1.442695, %v2753_v24 }
 0xf6c   :  { %v2870_v47 = vmul.f32 -1.442695, %v2754_v21 }
 0xf6d   :  { %3662 = vpow2.f32 %v2869_v46 }
 0xf6e   :  { %3664 = vpow2.f32 %v2870_v47 }
 0xf77   :  { %v3663_v23 = vpop.eup %3662 }
 0xf78   :  { %v3665_v52 = vpop.eup %3664  ;;  %v2769_v3 = vadd.f32 1.0, %v3663_v23 }
 0xf79   :  { %v2770_v1 = vadd.f32 1.0, %v3665_v52 }
 0xf7a   :  { %3666 = vrcp.f32 %v2769_v3 }
 0xf7b   :  { %3668 = vrcp.f32 %v2770_v1 }
 0xf84   :  { %v3667_v5 = vpop.eup %3666 }
 0xf85   :  { %v3669_v25 = vpop.eup %3668 }
 0xf86   :  { %v2785_v53 = vcombine.low %v3667_v5, %v3669_v25 }
 0xf88   :  { %v2793_v33 = vrot.slane %v2785_v53, %v4701_v16 }
 0xfc8   :  { %v2726_v6 = vpop.f32.mrb[8].mxu0 }
 0xfc9   :  { %v2755_v19 = vadd.f32 %v2744_v56, %v2726_v6  ;;  %v2728_v39 = vpop.f32.mrb[9].mxu0 }
 0xfca   :  { %v2756_v30 = vadd.f32 %v2748_v22, %v2728_v39 }
 0xfcb   :  { %v2871_v31 = vmul.f32 -1.442695, %v2755_v19 }
 0xfcc   :  { %v2872_v12 = vmul.f32 -1.442695, %v2756_v30 }
 0xfcd   :  { %3670 = vpow2.f32 %v2871_v31 }
 0xfce   :  { %3672 = vpow2.f32 %v2872_v12 }
 0xfd7   :  { %v3671_v35 = vpop.eup %3670 }
 0xfd8   :  { %v3673_v36 = vpop.eup %3672  ;;  %v2771_v13 = vadd.f32 1.0, %v3671_v35 }
 0xfd9   :  { %v2772_v37 = vadd.f32 1.0, %v3673_v36 }
 0xfda   :  { %3674 = vrcp.f32 %v2771_v13 }
 0xfdb   :  { %3676 = vrcp.f32 %v2772_v37 }
 0xfe4   :  { %v3675_v58 = vpop.eup %3674 }
 0xfe5   :  { %v3677_v43 = vpop.eup %3676 }
 0xfe6   :  { %v2786_v29 = vcombine.low %v3675_v58, %v3677_v43 }
 0xfe8   :  { %v2800_v7 = vrot.slane %v2786_v29, %v4701_v16 }
 0xfea   :  { %v2801_v44 = vcombine.low %v2793_v33, %v2800_v7 }
 0xfec   :  { %2810 = vst.msk [vmem:[#allocation2] sm:$0xff] %vm2809_vm8, %v2801_v44 }
 0xfed   :  { %3689 = shalt.err (!%p3686_p4)
}
 0xfee   :  { %s3690_s24 = scalar_lea.hbm %s5344_s11, 128 }
 0xfef   :  { %p3691_p5 = scmp.ne.s32.totalorder %s5344_s11, %s3690_s24  ;;  %p3694_p6 = scmp.lt.u32.totalorder %s3690_s24, %s5344_s11 }
 0xff1   :  { %p3696_p7 = pnand %p3694_p6, %p3691_p5 }
 0xff3   :  { %3699 = shalt.err (!%p3696_p7)
}
 0xff4   :  { %2820 = dma.vmem_to_hbm [thread:$0]  %s2818_s10, 128, %s5344_s11, [#allocation3]  }
 0xff5   :  { %3700 = dma.done.wait [#allocation3], 128  }
 0xff6   :  { %3701 = vsyncadd [#allocation3], 4294967168 }
 0xff7   :  { %2824 = vsyncpa [#allocation3], 1 }

</bundles_post_ra>
